<compile_context>
chip_gen: v6e
topology: v6e:2x2x1
jax: 0.10.0
libtpu: 0.0.40
codegen_flags: <defaults>
</compile_context>

<pallas_src>
import functools

import numpy as np
import jax
import jax.numpy as jnp
from jax.experimental import pallas as pl
from jax.experimental.pallas import tpu as pltpu

_VMEM_LIMIT = 32 * 1024 * 1024      # explicit scoped-VMEM budget (>= v5e 16MiB default)


# ----------------------------------------------------------------------------- kernels
def _conv_row_kernel(*refs, TH, KH, stride, dilation, relu, has_residual,
                     single_row_tile):
    """Fused Conv(+folded BN/1x1/scale)(+residual)(+ReLU) for one (batch, row-tile).

    refs (in order):
      x_ref : (1, Hp, Wp*Cin)        bf16  padded input, W and Cin folded into lanes
      w_ref : (KH, Wp*Cin, Wo*Cout)  bf16  block-Toeplitz weights
      b_ref : (TH, Wo*Cout)          f32   spatial bias map (handles folded-1x1 borders)
      r_ref : (1, TH, Wo*Cout)       f32   optional residual (accumulation chain)
      o_ref : (1, TH, Wo*Cout)             output row tile (bf16 or f32)
    """
    if has_residual:
        x_ref, w_ref, b_ref, r_ref, o_ref = refs
    else:
        x_ref, w_ref, b_ref, o_ref = refs
        r_ref = None

    t = pl.program_id(1)
    acc = None
    for kh in range(KH):                            # KH <= 3, statically unrolled
        if single_row_tile:                          # grid row-dim == 1: static offsets
            start = kh * dilation
        else:
            start = t * (TH * stride) + kh * dilation
        if stride == 1:
            rows = x_ref[0, pl.ds(start, TH), :]     # per-kh load right before the dot
        else:
            win = x_ref[0, pl.ds(start, (TH - 1) * stride + 1), :]
            rows = win[::stride, :]
        if rows.dtype != jnp.bfloat16:
            rows = rows.astype(jnp.bfloat16)
        part = jnp.dot(rows, w_ref[kh], preferred_element_type=jnp.float32)
        acc = part if acc is None else acc + part

    y = acc + b_ref[...]
    if has_residual:
        y = y + r_ref[0]
    if relu:
        y = jnp.maximum(y, 0.0)
    o_ref[0] = y.astype(o_ref.dtype)


def _conv1x1_kernel(x_ref, w_ref, b_ref, o_ref, *, relu):
    """Plain per-pixel 1x1 conv: (HW, Cin) @ (Cin, Cout) + b.  No Toeplitz zero waste."""
    x = x_ref[0]
    if x.dtype != jnp.bfloat16:
        x = x.astype(jnp.bfloat16)
    y = jnp.dot(x, w_ref[...], preferred_element_type=jnp.float32) + b_ref[...]
    if relu:
        y = jnp.maximum(y, 0.0)
    o_ref[0] = y.astype(o_ref.dtype)


# ----------------------------------------------------------------------- layer runners
def run_conv_layer(x2d, prep, residual=None):
    """Run one prepared Toeplitz conv layer.  x2d: (N, H_in, W_in*Cin)."""
    N = x2d.shape[0]
    Cin, pad = prep["Cin"], prep["pad"]
    if pad:
        x2d = jnp.pad(x2d, ((0, 0), (pad, pad), (pad * Cin, pad * Cin)))
    assert x2d.shape[1:] == (prep["Hp"], prep["Wp"] * Cin), (x2d.shape, prep["Hp"])
    TH, Ho, lane = prep["TH"], prep["Ho"], prep["Wo"] * prep["Cout"]
    n_row_tiles = Ho // TH

    in_specs = [
        pl.BlockSpec((1, prep["Hp"], prep["Wp"] * Cin), lambda n, t: (n, 0, 0)),
        # TODO(synk): tile along Wo*Cout + pl.Buffered(1) for production sizes.
        pl.BlockSpec((prep["KH"], prep["Wp"] * Cin, lane), lambda n, t: (0, 0, 0)),
        pl.BlockSpec((TH, lane), lambda n, t: (t, 0)),
    ]
    args = [x2d, prep["w_toep"], prep["bias_map"]]
    if residual is not None:
        in_specs.append(pl.BlockSpec((1, TH, lane), lambda n, t: (n, t, 0)))
        args.append(residual)

    kernel = functools.partial(
        _conv_row_kernel, TH=TH, KH=prep["KH"], stride=prep["stride"],
        dilation=prep["dilation"], relu=prep["relu"],
        has_residual=residual is not None, single_row_tile=(n_row_tiles == 1))

    return pl.pallas_call(
        kernel,
        out_shape=jax.ShapeDtypeStruct((N, Ho, lane), prep["out_dtype"]),
        grid_spec=pltpu.PrefetchScalarGridSpec(
            num_scalar_prefetch=0,
            grid=(N, n_row_tiles),
            in_specs=in_specs,
            out_specs=pl.BlockSpec((1, TH, lane), lambda n, t: (n, t, 0)),
        ),
        compiler_params=pltpu.CompilerParams(
            dimension_semantics=("parallel", "parallel"),
            vmem_limit_bytes=_VMEM_LIMIT),
    )(*args)


def run_conv1x1(x_pix, w, b, *, relu=False, out_dtype=jnp.float32):
    """1x1 conv fast path.  x_pix: (N, HW, Cin), w: (Cin, Cout), b: (1, Cout)."""
    N, HW, Cin = x_pix.shape
    Cout = w.shape[1]
    return pl.pallas_call(
        functools.partial(_conv1x1_kernel, relu=relu),
        out_shape=jax.ShapeDtypeStruct((N, HW, Cout), out_dtype),
        grid_spec=pltpu.PrefetchScalarGridSpec(
            num_scalar_prefetch=0,
            grid=(N,),
            in_specs=[pl.BlockSpec((1, HW, Cin), lambda n: (n, 0, 0)),
                      pl.BlockSpec((Cin, Cout), lambda n: (0, 0)),
                      pl.BlockSpec((1, Cout), lambda n: (0, 0))],
            out_specs=pl.BlockSpec((1, HW, Cout), lambda n: (n, 0, 0)),
        ),
        compiler_params=pltpu.CompilerParams(
            dimension_semantics=("parallel",),
            vmem_limit_bytes=_VMEM_LIMIT),
    )(x_pix, w, b)


# -------------------------------------------------------------------- weight preparation
def _fold_bn(p, eps=1e-5):
    """Fold inference BatchNorm into (HWIO weight, bias)."""
    s = p["gamma"] / jnp.sqrt(p["var"] + eps)
    w_hwio = jnp.transpose(p["w"], (2, 3, 1, 0)) * s       # (KH, KW, Cin, Cout)
    b = p["beta"] - p["mean"] * s
    return w_hwio, b


def _compose_head_1x1(w1, b1, w3, b3, *, H, W, stride, pad, dil):
    """Fold a ReLU-free 1x1 conv (w1,b1) into the following KxK conv (w3,b3).

    Exact: the conv part composes per-channel; the bias needs a spatial map because
    the KxK conv's zero padding is applied *after* the 1x1's bias in the original.
    """
    w = jnp.einsum("im,hwmo->hwio", w1[0, 0], w3)           # (KH, KW, Cin, Cout)
    c = jnp.einsum("hwmo,m->hwo", w3, b1)[:, :, None, :]    # (KH, KW, 1, Cout)
    ones = jnp.ones((1, H, W, 1), jnp.float32)
    tapsum = jax.lax.conv_general_dilated(
        ones, c, window_strides=(stride, stride),
        padding=((pad, pad), (pad, pad)), rhs_dilation=(dil, dil),
        dimension_numbers=("NHWC", "HWIO", "NHWC"))[0]      # (Ho, Wo, Cout)
    return w, tapsum + b3


def _compose_tail_1x1(w3, b3, wlin, blin_share, scale):
    """Fold a 1x1 (ConvLinear chunk) + scale into the preceding ReLU-free KxK conv."""
    w = jnp.einsum("hwim,mo->hwio", w3, wlin) * scale
    if b3.ndim == 1:
        b = (b3 @ wlin + blin_share) * scale
    else:                                                   # spatial bias map
        b = (jnp.einsum("hwm,mo->hwo", b3, wlin) + blin_share) * scale
    return w, b


def _build_row_toeplitz(w_hwio, Wp, Wo, stride, dilation):
    """Expand (KH, KW, Cin, Cout) weights into (KH, Wp*Cin, Wo*Cout) so one matmul per
    kh computes the whole conv along W (stride/dilation encoded for free)."""
    KH, KW, Cin, Cout = w_hwio.shape
    kh, kw, ci, co, wo = np.meshgrid(
        np.arange(KH), np.arange(KW), np.arange(Cin), np.arange(Cout), np.arange(Wo),
        indexing="ij")
    rows = ((wo * stride + kw * dilation) * Cin + ci).astype(np.int32)
    cols = (wo * Cout + co).astype(np.int32)
    vals = jnp.broadcast_to(w_hwio[..., None], (KH, KW, Cin, Cout, Wo)).reshape(-1)
    t = jnp.zeros((KH, Wp * Cin, Wo * Cout), jnp.float32)
    return t.at[kh.astype(np.int32).reshape(-1), rows.reshape(-1),
                cols.reshape(-1)].set(vals)


def _lane_pad_cout(wo, cout):
    """Smallest c >= cout with (wo*c) % 128 == 0 (search window +32), else cout."""
    if (wo * cout) % 128 == 0:
        return cout
    for c in range(cout + 1, cout + 33):
        if (wo * c) % 128 == 0:
            return c
    return cout


def _pick_row_tile(Ho, batch):
    """Full-height tiles (fat MXU M); split once at batch==1 so both v7x TCs get work."""
    if batch == 1 and Ho % 2 == 0 and Ho >= 16:
        return Ho // 2
    return Ho


def _prep_layer(w_hwio, bias, *, H, W, stride, pad, dil, relu, out_dtype, batch):
    KH, KW, Cin, Cout = w_hwio.shape
    Hp, Wp = H + 2 * pad, W + 2 * pad
    Ho = (Hp - dil * (KH - 1) - 1) // stride + 1
    Wo = (Wp - dil * (KW - 1) - 1) // stride + 1
    w_toep = _build_row_toeplitz(w_hwio.astype(jnp.float32), Wp, Wo, stride, dil)
    w_toep = w_toep.astype(jnp.bfloat16)
    if bias.ndim == 1:
        bmap = jnp.broadcast_to(bias[None, None, :], (Ho, Wo, Cout))
    else:
        bmap = bias
    bmap = bmap.reshape(Ho, Wo * Cout).astype(jnp.float32)
    return dict(w_toep=w_toep, bias_map=bmap, KH=KH, Cin=Cin, Cout=Cout, Hp=Hp, Wp=Wp,
                Ho=Ho, Wo=Wo, pad=pad, stride=stride, dilation=dil, relu=relu,
                out_dtype=out_dtype, TH=_pick_row_tile(Ho, batch))


def prepare_branch(plist, cfgs, wlin_chunk, blin_share, scale, *, N, H, W,
                   tail_relu, eps=1e-5):
    folded = [_fold_bn(p, eps) for p in plist]
    c0 = cfgs[0]
    if (c0["k"] == 1 and not c0["relu"] and c0["stride"] == 1 and c0["pad"] == 0
            and len(cfgs) >= 2):
        # Fold the leading ReLU-free 1x1 reduce into the next 3x3 (exact).
        w1, b1 = folded[0]
        w2, b2 = folded[1]
        c2 = cfgs[1]
        wc, bmap = _compose_head_1x1(w1, b1, w2, b2, H=H, W=W, stride=c2["stride"],
                                     pad=c2["pad"], dil=c2["dil"])
        layers = [[wc, bmap, dict(c2)]]
        rest = list(zip(folded[2:], cfgs[2:]))
    else:
        layers = []
        rest = list(zip(folded, cfgs))
    for (wk, bk), ck in rest:
        layers.append([wk, bk, dict(ck)])

    # Fold ConvLinear's per-branch chunk (and the RFB scale) into the linear tail.
    wt, bt, ct = layers[-1]
    assert not ct["relu"], "tail conv must be ReLU-free to fold ConvLinear into it"
    wt, bt = _compose_tail_1x1(wt, bt, wlin_chunk, blin_share, scale)
    layers[-1] = [wt, bt, ct]

    preps = []
    h, w = H, W
    n_layers = len(layers)
    for li in range(n_layers):
        wi, bi, ci = layers[li]
        KH, KW = wi.shape[0], wi.shape[1]
        st, pd, dl = ci["stride"], ci["pad"], ci["dil"]
        hp, wp = h + 2 * pd, w + 2 * pd
        ho = (hp - dl * (KH - 1) - 1) // st + 1
        wo = (wp - dl * (KW - 1) - 1) // st + 1
        if li < n_layers - 1:
            # Zero-pad intermediate Cout so Wo*Cout % 128 == 0 (unmasked stores).
            cout = wi.shape[3]
            cnew = _lane_pad_cout(wo, cout)
            if cnew > cout:
                dc = cnew - cout
                wi = jnp.pad(wi, ((0, 0), (0, 0), (0, 0), (0, dc)))
                bi = jnp.pad(bi, [(0, 0)] * (bi.ndim - 1) + [(0, dc)])
                layers[li + 1][0] = jnp.pad(layers[li + 1][0],
                                            ((0, 0), (0, 0), (0, dc), (0, 0)))
        is_tail = li == n_layers - 1
        preps.append(_prep_layer(
            wi, bi, H=h, W=w, stride=st, pad=pd, dil=dl,
            relu=(tail_relu if is_tail else ci["relu"]),
            out_dtype=(jnp.float32 if is_tail else jnp.bfloat16),
            batch=N))
        h, w = ho, wo
    return preps


def prepare_rfb(params, configs, rfb_scale, *, N, H, W, eps=1e-5):
    """One-time weight preparation (BN fold, 1x1 folds, Toeplitz expansion)."""
    wlin_hwio, blin = _fold_bn(params["conv_linear"], eps)
    wlin2d = wlin_hwio[0, 0]                                 # (6*inter, out_planes)
    out_planes = wlin2d.shape[1]

    branches = []
    off = 0
    for bi, name in enumerate(("branch0", "branch1", "branch2")):
        cfgs = configs[name]
        ct = cfgs[-1]["cout"]
        chunk = wlin2d[off:off + ct, :]
        off += ct
        share = blin if bi == 0 else jnp.zeros_like(blin)    # ConvLinear bias added once
        branches.append(prepare_branch(params[name], cfgs, chunk, share, rfb_scale,
                                       N=N, H=H, W=W, tail_relu=(bi == 2), eps=eps))

    sc_cfg = configs["shortcut"]
    w_sc, b_sc = _fold_bn(params["shortcut"], eps)
    if sc_cfg["stride"] == 1 and sc_cfg["k"] == 1:
        shortcut = dict(mode="1x1",
                        w=w_sc[0, 0].astype(jnp.bfloat16),
                        b=b_sc.reshape(1, -1).astype(jnp.float32))
    else:
        shortcut = dict(mode="conv",
                        layer=_prep_layer(w_sc, b_sc, H=H, W=W, stride=sc_cfg["stride"],
                                          pad=sc_cfg["pad"], dil=sc_cfg["dil"],
                                          relu=False, out_dtype=jnp.float32, batch=N))

    tail0 = branches[0][-1]
    return dict(branches=branches, shortcut=shortcut,
                Ho=tail0["Ho"], Wo=tail0["Wo"], out_planes=out_planes)


# ------------------------------------------------------------------- BasicRFB module
def rfb_layer_configs(in_planes, out_planes, stride=1, vision=1, map_reduce=8):
    inter = in_planes // map_reduce
    return {
        "branch0": [
            dict(cin=in_planes, cout=inter, k=1, stride=1, pad=0, dil=1, relu=False),
            dict(cin=inter, cout=2 * inter, k=3, stride=stride, pad=1, dil=1, relu=True),
            dict(cin=2 * inter, cout=2 * inter, k=3, stride=1,
                 pad=vision + 1, dil=vision + 1, relu=False),
        ],
        "branch1": [
            dict(cin=in_planes, cout=inter, k=1, stride=1, pad=0, dil=1, relu=False),
            dict(cin=inter, cout=2 * inter, k=3, stride=stride, pad=1, dil=1, relu=True),
            dict(cin=2 * inter, cout=2 * inter, k=3, stride=1,
                 pad=vision + 2, dil=vision + 2, relu=False),
        ],
        "branch2": [
            dict(cin=in_planes, cout=inter, k=1, stride=1, pad=0, dil=1, relu=False),
            dict(cin=inter, cout=(inter // 2) * 3, k=3, stride=1, pad=1, dil=1, relu=True),
            dict(cin=(inter // 2) * 3, cout=2 * inter, k=3, stride=stride, pad=1, dil=1,
                 relu=True),
            dict(cin=2 * inter, cout=2 * inter, k=3, stride=1,
                 pad=vision + 4, dil=vision + 4, relu=False),
        ],
        "conv_linear": dict(cin=6 * inter, cout=out_planes, k=1, stride=1, pad=0, dil=1,
                            relu=False),
        "shortcut": dict(cin=in_planes, cout=out_planes, k=1, stride=stride, pad=0, dil=1,
                         relu=False),
    }


def basic_rfb_forward(x_nchw, prepared):
    """BasicRFB forward, NCHW in / NCHW out (layout converted once at the boundary)."""
    N, C, H, W = x_nchw.shape
    x_nhwc = jnp.transpose(x_nchw, (0, 2, 3, 1)).astype(jnp.bfloat16)
    x2d = x_nhwc.reshape(N, H, W * C)                        # lane-dense W*C layout

    sc = prepared["shortcut"]
    if sc["mode"] == "1x1":
        cout = sc["w"].shape[1]
        short = run_conv1x1(x_nhwc.reshape(N, H * W, C), sc["w"], sc["b"])
        short = short.reshape(N, H, W * cout)
    else:
        short = run_conv_layer(x2d, sc["layer"])

    # ReLU(sum_b tail_b(h_b) + shortcut) via the fused residual chain:
    # the tails already contain ConvLinear's chunks and the RFB scale, and the last
    # tail (branch2) applies the final ReLU.
    acc = short
    for layers in prepared["branches"]:
        h = x2d
        for lp in layers[:-1]:
            h = run_conv_layer(h, lp)
        acc = run_conv_layer(h, layers[-1], residual=acc)

    Ho, Wo, Cp = prepared["Ho"], prepared["Wo"], prepared["out_planes"]
    out = acc.reshape(N, Ho, Wo, Cp)
    return jnp.transpose(out, (0, 3, 1, 2))                  # back to NCHW once


# -------------------------------------------------------------------- pure-JAX reference
def _basic_conv_ref(x_nhwc, p, *, stride, padding, dilation, relu, eps=1e-5):
    w = jnp.transpose(p["w"], (2, 3, 1, 0))                  # HWIO
    y = jax.lax.conv_general_dilated(
        x_nhwc, w, window_strides=(stride, stride),
        padding=((padding, padding), (padding, padding)),
        rhs_dilation=(dilation, dilation),
        dimension_numbers=("NHWC", "HWIO", "NHWC"))
    s = p["gamma"] / jnp.sqrt(p["var"] + eps)
    y = y * s + (p["beta"] - p["mean"] * s)
    return jnp.maximum(y, 0.0) if relu else y


def basic_rfb_reference(x_nchw, params, configs, rfb_scale):
    x = jnp.transpose(x_nchw, (0, 2, 3, 1))

    def run_branch(name):
        h = x
        for p, c in zip(params[name], configs[name]):
            h = _basic_conv_ref(h, p, stride=c["stride"], padding=c["pad"],
                                dilation=c["dil"], relu=c["relu"])
        return h

    cat = jnp.concatenate([run_branch("branch0"), run_branch("branch1"),
                           run_branch("branch2")], axis=-1)
    out = _basic_conv_ref(cat, params["conv_linear"], stride=1, padding=0, dilation=1,
                          relu=False)
    short = _basic_conv_ref(x, params["shortcut"], stride=configs["shortcut"]["stride"],
                            padding=0, dilation=1, relu=False)
    out = jnp.maximum(out * rfb_scale + short, 0.0)
    return jnp.transpose(out, (0, 3, 1, 2))


# ------------------------------------------------------------------------------- main
def _make_conv_params(key, cfg):
    cin, cout, k = cfg["cin"], cfg["cout"], cfg["k"]
    kw_, kg, kb, km, kv = jax.random.split(key, 5)
    w = jax.random.normal(kw_, (cout, cin, k, k), jnp.float32) / np.sqrt(cin * k * k)
    return {
        "w": w,
        "gamma": 1.0 + 0.05 * jax.random.normal(kg, (cout,), jnp.float32),
        "beta": 0.1 * jax.random.normal(kb, (cout,), jnp.float32),
        "mean": 0.05 * jax.random.normal(km, (cout,), jnp.float32),
        "var": jax.random.uniform(kv, (cout,), jnp.float32, minval=0.8, maxval=1.2),
    }


if __name__ == "__main__":
    # BasicRFB(in_planes=32, out_planes=32, stride=1, scale=0.1, vision=1, groups=1)
    N, C, H, W = 2, 32, 16, 16
    out_planes, stride, rfb_scale, vision = 32, 1, 0.1, 1

    configs = rfb_layer_configs(C, out_planes, stride=stride, vision=vision)

    key = jax.random.PRNGKey(0)
    key, kx = jax.random.split(key)
    x = jax.random.normal(kx, (N, C, H, W), jnp.float32)

    params = {}
    for name in ("branch0", "branch1", "branch2"):
        plist = []
        for c in configs[name]:
            key, sub = jax.random.split(key)
            plist.append(_make_conv_params(sub, c))
        params[name] = plist
    for name in ("conv_linear", "shortcut"):
        key, sub = jax.random.split(key)
        params[name] = _make_conv_params(sub, configs[name])

    # One-time weight prep (BN fold, 1x1 folds, Toeplitz expansion), then jitted forward.
    prepared = prepare_rfb(params, configs, rfb_scale, N=N, H=H, W=W)
    fwd = jax.jit(lambda xx: basic_rfb_forward(xx, prepared))

    out = jax.block_until_ready(fwd(x))
    ref = jax.block_until_ready(basic_rfb_reference(x, params, configs, rfb_scale))

    assert out.shape == (N, out_planes, H // stride, W // stride), out.shape
    # bf16 MXU operands + bf16 inter-layer activations -> inference-grade tolerance.
    assert jnp.allclose(out, ref, rtol=5e-2, atol=5e-2), \
        float(jnp.max(jnp.abs(out - ref)))

    print("KERNEL_OK")
</pallas_src>

<mosaic_0001>
module attributes {stable_mosaic.version = 11 : i64} {
  func.func @_conv_row_kernel(%arg0: i32, %arg1: i32, %arg2: memref<1x18x576xbf16, #tpu.memory_space<vmem>>, %arg3: memref<3x576x128xbf16, #tpu.memory_space<vmem>>, %arg4: memref<16x128xf32, #tpu.memory_space<vmem>>, %arg5: memref<1x16x128xbf16, #tpu.memory_space<vmem>>) attributes {dimension_semantics = [#tpu.dimension_semantics<parallel>, #tpu.dimension_semantics<parallel>], iteration_bounds = array<i64: 2, 1>, scalar_prefetch = 0 : i64, scratch_operands = 0 : i64, tpu.core_type = #tpu.core_type<tc>, window_params = [{transform_indices = @transform_0, window_bounds = array<i64: 1, 18, 576>}, {pipeline_mode = #tpu.pipeline_mode<synchronous>, transform_indices = @transform_1, window_bounds = array<i64: 3, 576, 128>}, {transform_indices = @transform_2, window_bounds = array<i64: 16, 128>}, {transform_indices = @transform_3, window_bounds = array<i64: 1, 16, 128>}]} {
    %c0 = arith.constant 0 : index
    %c0_0 = arith.constant 0 : index
    %c0_1 = arith.constant 0 : index
    %0 = vector.load %arg2[%c0, %c0_0, %c0_1] : memref<1x18x576xbf16, #tpu.memory_space<vmem>>, vector<1x16x576xbf16>
    %1 = vector.shape_cast %0 : vector<1x16x576xbf16> to vector<16x576xbf16>
    %c0_2 = arith.constant 0 : index
    %c0_3 = arith.constant 0 : index
    %c0_4 = arith.constant 0 : index
    %2 = vector.load %arg3[%c0_2, %c0_3, %c0_4] : memref<3x576x128xbf16, #tpu.memory_space<vmem>>, vector<1x576x128xbf16>
    %3 = vector.shape_cast %2 : vector<1x576x128xbf16> to vector<576x128xbf16>
    %cst = arith.constant dense<0.000000e+00> : vector<16x128xf32>
    %4 = tpu.matmul %1, %3, %cst {dimension_numbers = #tpu.dot_dimension_numbers<[1], [0], [0], [1], [0, 0, 1, 1], [], []>} : vector<16x576xbf16>, vector<576x128xbf16>, vector<16x128xf32> -> vector<16x128xf32>
    %c0_5 = arith.constant 0 : index
    %c1 = arith.constant 1 : index
    %c0_6 = arith.constant 0 : index
    %5 = vector.load %arg2[%c0_5, %c1, %c0_6] : memref<1x18x576xbf16, #tpu.memory_space<vmem>>, vector<1x16x576xbf16>
    %6 = vector.shape_cast %5 : vector<1x16x576xbf16> to vector<16x576xbf16>
    %c1_7 = arith.constant 1 : index
    %c0_8 = arith.constant 0 : index
    %c0_9 = arith.constant 0 : index
    %7 = vector.load %arg3[%c1_7, %c0_8, %c0_9] : memref<3x576x128xbf16, #tpu.memory_space<vmem>>, vector<1x576x128xbf16>
    %8 = vector.shape_cast %7 : vector<1x576x128xbf16> to vector<576x128xbf16>
    %cst_10 = arith.constant dense<0.000000e+00> : vector<16x128xf32>
    %9 = tpu.matmul %6, %8, %cst_10 {dimension_numbers = #tpu.dot_dimension_numbers<[1], [0], [0], [1], [0, 0, 1, 1], [], []>} : vector<16x576xbf16>, vector<576x128xbf16>, vector<16x128xf32> -> vector<16x128xf32>
    %10 = arith.addf %4, %9 : vector<16x128xf32>
    %c0_11 = arith.constant 0 : index
    %c2 = arith.constant 2 : index
    %c0_12 = arith.constant 0 : index
    %11 = vector.load %arg2[%c0_11, %c2, %c0_12] : memref<1x18x576xbf16, #tpu.memory_space<vmem>>, vector<1x16x576xbf16>
    %12 = vector.shape_cast %11 : vector<1x16x576xbf16> to vector<16x576xbf16>
    %c2_13 = arith.constant 2 : index
    %c0_14 = arith.constant 0 : index
    %c0_15 = arith.constant 0 : index
    %13 = vector.load %arg3[%c2_13, %c0_14, %c0_15] : memref<3x576x128xbf16, #tpu.memory_space<vmem>>, vector<1x576x128xbf16>
    %14 = vector.shape_cast %13 : vector<1x576x128xbf16> to vector<576x128xbf16>
    %cst_16 = arith.constant dense<0.000000e+00> : vector<16x128xf32>
    %15 = tpu.matmul %12, %14, %cst_16 {dimension_numbers = #tpu.dot_dimension_numbers<[1], [0], [0], [1], [0, 0, 1, 1], [], []>} : vector<16x576xbf16>, vector<576x128xbf16>, vector<16x128xf32> -> vector<16x128xf32>
    %16 = arith.addf %10, %15 : vector<16x128xf32>
    %c0_17 = arith.constant 0 : index
    %c0_18 = arith.constant 0 : index
    %17 = vector.load %arg4[%c0_17, %c0_18] : memref<16x128xf32, #tpu.memory_space<vmem>>, vector<16x128xf32>
    %18 = arith.addf %16, %17 : vector<16x128xf32>
    %cst_19 = arith.constant 0.000000e+00 : f32
    %19 = vector.broadcast %cst_19 : f32 to vector<16x128xf32>
    %20 = arith.maximumf %18, %19 : vector<16x128xf32>
    %21 = arith.truncf %20 : vector<16x128xf32> to vector<16x128xbf16>
    %c0_20 = arith.constant 0 : index
    %c0_21 = arith.constant 0 : index
    %c0_22 = arith.constant 0 : index
    %22 = vector.load %arg5[%c0_20, %c0_21, %c0_22] : memref<1x16x128xbf16, #tpu.memory_space<vmem>>, vector<1x16x128xbf16>
    %23 = vector.shape_cast %22 : vector<1x16x128xbf16> to vector<16x128xbf16>
    %24 = vector.shape_cast %21 : vector<16x128xbf16> to vector<1x16x128xbf16>
    tpu.vector_store %arg5[%c0_20, %c0_21, %c0_22], %24 {strides = array<i32>} : memref<1x16x128xbf16, #tpu.memory_space<vmem>>, vector<1x16x128xbf16>,
    return
  }
  func.func @transform_0(%arg0: i32, %arg1: i32) -> (i32, i32, i32) {
    %c0_i32 = arith.constant 0 : i32
    %c0_i32_0 = arith.constant 0 : i32
    %c0_i32_1 = arith.constant 0 : i32
    return %arg0, %c0_i32, %c0_i32_0 : i32, i32, i32
  }
  func.func @transform_1(%arg0: i32, %arg1: i32) -> (i32, i32, i32) {
    %c0_i32 = arith.constant 0 : i32
    %c0_i32_0 = arith.constant 0 : i32
    %c0_i32_1 = arith.constant 0 : i32
    %c0_i32_2 = arith.constant 0 : i32
    return %c0_i32, %c0_i32_0, %c0_i32_1 : i32, i32, i32
  }
  func.func @transform_2(%arg0: i32, %arg1: i32) -> (i32, i32) {
    %c0_i32 = arith.constant 0 : i32
    %c0_i32_0 = arith.constant 0 : i32
    return %arg1, %c0_i32 : i32, i32
  }
  func.func @transform_3(%arg0: i32, %arg1: i32) -> (i32, i32, i32) {
    %c0_i32 = arith.constant 0 : i32
    %c0_i32_0 = arith.constant 0 : i32
    return %arg0, %arg1, %c0_i32 : i32, i32, i32
  }
}

module attributes {stable_mosaic.version = 11 : i64} {
  func.func @_conv_row_kernel(%arg0: i32, %arg1: i32, %arg2: memref<1x18x144xbf16, #tpu.memory_space<vmem>>, %arg3: memref<3x144x128xbf16, #tpu.memory_space<vmem>>, %arg4: memref<16x128xf32, #tpu.memory_space<vmem>>, %arg5: memref<1x16x128xbf16, #tpu.memory_space<vmem>>) attributes {dimension_semantics = [#tpu.dimension_semantics<parallel>, #tpu.dimension_semantics<parallel>], iteration_bounds = array<i64: 2, 1>, scalar_prefetch = 0 : i64, scratch_operands = 0 : i64, tpu.core_type = #tpu.core_type<tc>, window_params = [{transform_indices = @transform_0, window_bounds = array<i64: 1, 18, 144>}, {pipeline_mode = #tpu.pipeline_mode<synchronous>, transform_indices = @transform_1, window_bounds = array<i64: 3, 144, 128>}, {transform_indices = @transform_2, window_bounds = array<i64: 16, 128>}, {transform_indices = @transform_3, window_bounds = array<i64: 1, 16, 128>}]} {
    %c0 = arith.constant 0 : index
    %c0_0 = arith.constant 0 : index
    %c0_1 = arith.constant 0 : index
    %0 = vector.load %arg2[%c0, %c0_0, %c0_1] : memref<1x18x144xbf16, #tpu.memory_space<vmem>>, vector<1x16x144xbf16>
    %1 = vector.shape_cast %0 : vector<1x16x144xbf16> to vector<16x144xbf16>
    %c0_2 = arith.constant 0 : index
    %c0_3 = arith.constant 0 : index
    %c0_4 = arith.constant 0 : index
    %2 = vector.load %arg3[%c0_2, %c0_3, %c0_4] : memref<3x144x128xbf16, #tpu.memory_space<vmem>>, vector<1x144x128xbf16>
    %3 = vector.shape_cast %2 : vector<1x144x128xbf16> to vector<144x128xbf16>
    %cst = arith.constant dense<0.000000e+00> : vector<16x128xf32>
    %4 = tpu.matmul %1, %3, %cst {dimension_numbers = #tpu.dot_dimension_numbers<[1], [0], [0], [1], [0, 0, 1, 1], [], []>} : vector<16x144xbf16>, vector<144x128xbf16>, vector<16x128xf32> -> vector<16x128xf32>
    %c0_5 = arith.constant 0 : index
    %c1 = arith.constant 1 : index
    %c0_6 = arith.constant 0 : index
    %5 = vector.load %arg2[%c0_5, %c1, %c0_6] : memref<1x18x144xbf16, #tpu.memory_space<vmem>>, vector<1x16x144xbf16>
    %6 = vector.shape_cast %5 : vector<1x16x144xbf16> to vector<16x144xbf16>
    %c1_7 = arith.constant 1 : index
    %c0_8 = arith.constant 0 : index
    %c0_9 = arith.constant 0 : index
    %7 = vector.load %arg3[%c1_7, %c0_8, %c0_9] : memref<3x144x128xbf16, #tpu.memory_space<vmem>>, vector<1x144x128xbf16>
    %8 = vector.shape_cast %7 : vector<1x144x128xbf16> to vector<144x128xbf16>
    %cst_10 = arith.constant dense<0.000000e+00> : vector<16x128xf32>
    %9 = tpu.matmul %6, %8, %cst_10 {dimension_numbers = #tpu.dot_dimension_numbers<[1], [0], [0], [1], [0, 0, 1, 1], [], []>} : vector<16x144xbf16>, vector<144x128xbf16>, vector<16x128xf32> -> vector<16x128xf32>
    %10 = arith.addf %4, %9 : vector<16x128xf32>
    %c0_11 = arith.constant 0 : index
    %c2 = arith.constant 2 : index
    %c0_12 = arith.constant 0 : index
    %11 = vector.load %arg2[%c0_11, %c2, %c0_12] : memref<1x18x144xbf16, #tpu.memory_space<vmem>>, vector<1x16x144xbf16>
    %12 = vector.shape_cast %11 : vector<1x16x144xbf16> to vector<16x144xbf16>
    %c2_13 = arith.constant 2 : index
    %c0_14 = arith.constant 0 : index
    %c0_15 = arith.constant 0 : index
    %13 = vector.load %arg3[%c2_13, %c0_14, %c0_15] : memref<3x144x128xbf16, #tpu.memory_space<vmem>>, vector<1x144x128xbf16>
    %14 = vector.shape_cast %13 : vector<1x144x128xbf16> to vector<144x128xbf16>
    %cst_16 = arith.constant dense<0.000000e+00> : vector<16x128xf32>
    %15 = tpu.matmul %12, %14, %cst_16 {dimension_numbers = #tpu.dot_dimension_numbers<[1], [0], [0], [1], [0, 0, 1, 1], [], []>} : vector<16x144xbf16>, vector<144x128xbf16>, vector<16x128xf32> -> vector<16x128xf32>
    %16 = arith.addf %10, %15 : vector<16x128xf32>
    %c0_17 = arith.constant 0 : index
    %c0_18 = arith.constant 0 : index
    %17 = vector.load %arg4[%c0_17, %c0_18] : memref<16x128xf32, #tpu.memory_space<vmem>>, vector<16x128xf32>
    %18 = arith.addf %16, %17 : vector<16x128xf32>
    %cst_19 = arith.constant 0.000000e+00 : f32
    %19 = vector.broadcast %cst_19 : f32 to vector<16x128xf32>
    %20 = arith.maximumf %18, %19 : vector<16x128xf32>
    %21 = arith.truncf %20 : vector<16x128xf32> to vector<16x128xbf16>
    %c0_20 = arith.constant 0 : index
    %c0_21 = arith.constant 0 : index
    %c0_22 = arith.constant 0 : index
    %22 = vector.load %arg5[%c0_20, %c0_21, %c0_22] : memref<1x16x128xbf16, #tpu.memory_space<vmem>>, vector<1x16x128xbf16>
    %23 = vector.shape_cast %22 : vector<1x16x128xbf16> to vector<16x128xbf16>
    %24 = vector.shape_cast %21 : vector<16x128xbf16> to vector<1x16x128xbf16>
    tpu.vector_store %arg5[%c0_20, %c0_21, %c0_22], %24 {strides = array<i32>} : memref<1x16x128xbf16, #tpu.memory_space<vmem>>, vector<1x16x128xbf16>,
    return
  }
  func.func @transform_0(%arg0: i32, %arg1: i32) -> (i32, i32, i32) {
    %c0_i32 = arith.constant 0 : i32
    %c0_i32_0 = arith.constant 0 : i32
    %c0_i32_1 = arith.constant 0 : i32
    return %arg0, %c0_i32, %c0_i32_0 : i32, i32, i32
  }
  func.func @transform_1(%arg0: i32, %arg1: i32) -> (i32, i32, i32) {
    %c0_i32 = arith.constant 0 : i32
    %c0_i32_0 = arith.constant 0 : i32
    %c0_i32_1 = arith.constant 0 : i32
    %c0_i32_2 = arith.constant 0 : i32
    return %c0_i32, %c0_i32_0, %c0_i32_1 : i32, i32, i32
  }
  func.func @transform_2(%arg0: i32, %arg1: i32) -> (i32, i32) {
    %c0_i32 = arith.constant 0 : i32
    %c0_i32_0 = arith.constant 0 : i32
    return %arg1, %c0_i32 : i32, i32
  }
  func.func @transform_3(%arg0: i32, %arg1: i32) -> (i32, i32, i32) {
    %c0_i32 = arith.constant 0 : i32
    %c0_i32_0 = arith.constant 0 : i32
    return %arg0, %arg1, %c0_i32 : i32, i32, i32
  }
}

module attributes {stable_mosaic.version = 11 : i64} {
  func.func @_conv1x1_kernel(%arg0: i32, %arg1: memref<1x256x32xbf16, #tpu.memory_space<vmem>>, %arg2: memref<32x32xbf16, #tpu.memory_space<vmem>>, %arg3: memref<1x32xf32, #tpu.memory_space<vmem>>, %arg4: memref<1x256x32xf32, #tpu.memory_space<vmem>>) attributes {dimension_semantics = [#tpu.dimension_semantics<parallel>], iteration_bounds = array<i64: 2>, scalar_prefetch = 0 : i64, scratch_operands = 0 : i64, tpu.core_type = #tpu.core_type<tc>, window_params = [{transform_indices = @transform_0, window_bounds = array<i64: 1, 256, 32>}, {pipeline_mode = #tpu.pipeline_mode<synchronous>, transform_indices = @transform_1, window_bounds = array<i64: 32, 32>}, {pipeline_mode = #tpu.pipeline_mode<synchronous>, transform_indices = @transform_2, window_bounds = array<i64: 1, 32>}, {transform_indices = @transform_3, window_bounds = array<i64: 1, 256, 32>}]} {
    %c0 = arith.constant 0 : index
    %c0_0 = arith.constant 0 : index
    %c0_1 = arith.constant 0 : index
    %0 = vector.load %arg1[%c0, %c0_0, %c0_1] : memref<1x256x32xbf16, #tpu.memory_space<vmem>>, vector<1x256x32xbf16>
    %1 = vector.shape_cast %0 : vector<1x256x32xbf16> to vector<256x32xbf16>
    %c0_2 = arith.constant 0 : index
    %c0_3 = arith.constant 0 : index
    %2 = vector.load %arg2[%c0_2, %c0_3] : memref<32x32xbf16, #tpu.memory_space<vmem>>, vector<32x32xbf16>
    %cst = arith.constant dense<0.000000e+00> : vector<256x32xf32>
    %3 = tpu.matmul %1, %2, %cst {dimension_numbers = #tpu.dot_dimension_numbers<[1], [0], [0], [1], [0, 0, 1, 1], [], []>} : vector<256x32xbf16>, vector<32x32xbf16>, vector<256x32xf32> -> vector<256x32xf32>
    %c0_4 = arith.constant 0 : index
    %c0_5 = arith.constant 0 : index
    %4 = vector.load %arg3[%c0_4, %c0_5] : memref<1x32xf32, #tpu.memory_space<vmem>>, vector<1x32xf32>
    %5 = vector.broadcast %4 : vector<1x32xf32> to vector<256x32xf32>
    %6 = arith.addf %3, %5 : vector<256x32xf32>
    %c0_6 = arith.constant 0 : index
    %c0_7 = arith.constant 0 : index
    %c0_8 = arith.constant 0 : index
    %7 = vector.load %arg4[%c0_6, %c0_7, %c0_8] : memref<1x256x32xf32, #tpu.memory_space<vmem>>, vector<1x256x32xf32>
    %8 = vector.shape_cast %7 : vector<1x256x32xf32> to vector<256x32xf32>
    %9 = vector.shape_cast %6 : vector<256x32xf32> to vector<1x256x32xf32>
    tpu.vector_store %arg4[%c0_6, %c0_7, %c0_8], %9 {strides = array<i32>} : memref<1x256x32xf32, #tpu.memory_space<vmem>>, vector<1x256x32xf32>,
    return
  }
  func.func @transform_0(%arg0: i32) -> (i32, i32, i32) {
    %c0_i32 = arith.constant 0 : i32
    %c0_i32_0 = arith.constant 0 : i32
    %c0_i32_1 = arith.constant 0 : i32
    return %arg0, %c0_i32, %c0_i32_0 : i32, i32, i32
  }
  func.func @transform_1(%arg0: i32) -> (i32, i32) {
    %c0_i32 = arith.constant 0 : i32
    %c0_i32_0 = arith.constant 0 : i32
    %c0_i32_1 = arith.constant 0 : i32
    return %c0_i32, %c0_i32_0 : i32, i32
  }
  func.func @transform_2(%arg0: i32) -> (i32, i32) {
    %c0_i32 = arith.constant 0 : i32
    %c0_i32_0 = arith.constant 0 : i32
    %c0_i32_1 = arith.constant 0 : i32
    return %c0_i32, %c0_i32_0 : i32, i32
  }
  func.func @transform_3(%arg0: i32) -> (i32, i32, i32) {
    %c0_i32 = arith.constant 0 : i32
    %c0_i32_0 = arith.constant 0 : i32
    %c0_i32_1 = arith.constant 0 : i32
    return %arg0, %c0_i32, %c0_i32_0 : i32, i32, i32
  }
}

module attributes {stable_mosaic.version = 11 : i64} {
  func.func @_conv_row_kernel(%arg0: i32, %arg1: i32, %arg2: memref<1x20x160xbf16, #tpu.memory_space<vmem>>, %arg3: memref<3x160x512xbf16, #tpu.memory_space<vmem>>, %arg4: memref<16x512xf32, #tpu.memory_space<vmem>>, %arg5: memref<1x16x512xf32, #tpu.memory_space<vmem>>, %arg6: memref<1x16x512xf32, #tpu.memory_space<vmem>>) attributes {dimension_semantics = [#tpu.dimension_semantics<parallel>, #tpu.dimension_semantics<parallel>], iteration_bounds = array<i64: 2, 1>, scalar_prefetch = 0 : i64, scratch_operands = 0 : i64, tpu.core_type = #tpu.core_type<tc>, window_params = [{transform_indices = @transform_0, window_bounds = array<i64: 1, 20, 160>}, {pipeline_mode = #tpu.pipeline_mode<synchronous>, transform_indices = @transform_1, window_bounds = array<i64: 3, 160, 512>}, {transform_indices = @transform_2, window_bounds = array<i64: 16, 512>}, {transform_indices = @transform_3, window_bounds = array<i64: 1, 16, 512>}, {transform_indices = @transform_4, window_bounds = array<i64: 1, 16, 512>}]} {
    %c0 = arith.constant 0 : index
    %c0_0 = arith.constant 0 : index
    %c0_1 = arith.constant 0 : index
    %0 = vector.load %arg2[%c0, %c0_0, %c0_1] : memref<1x20x160xbf16, #tpu.memory_space<vmem>>, vector<1x16x160xbf16>
    %1 = vector.shape_cast %0 : vector<1x16x160xbf16> to vector<16x160xbf16>
    %c0_2 = arith.constant 0 : index
    %c0_3 = arith.constant 0 : index
    %c0_4 = arith.constant 0 : index
    %2 = vector.load %arg3[%c0_2, %c0_3, %c0_4] : memref<3x160x512xbf16, #tpu.memory_space<vmem>>, vector<1x160x512xbf16>
    %3 = vector.shape_cast %2 : vector<1x160x512xbf16> to vector<160x512xbf16>
    %cst = arith.constant dense<0.000000e+00> : vector<16x512xf32>
    %4 = tpu.matmul %1, %3, %cst {dimension_numbers = #tpu.dot_dimension_numbers<[1], [0], [0], [1], [0, 0, 1, 1], [], []>} : vector<16x160xbf16>, vector<160x512xbf16>, vector<16x512xf32> -> vector<16x512xf32>
    %c0_5 = arith.constant 0 : index
    %c2 = arith.constant 2 : index
    %c0_6 = arith.constant 0 : index
    %5 = vector.load %arg2[%c0_5, %c2, %c0_6] : memref<1x20x160xbf16, #tpu.memory_space<vmem>>, vector<1x16x160xbf16>
    %6 = vector.shape_cast %5 : vector<1x16x160xbf16> to vector<16x160xbf16>
    %c1 = arith.constant 1 : index
    %c0_7 = arith.constant 0 : index
    %c0_8 = arith.constant 0 : index
    %7 = vector.load %arg3[%c1, %c0_7, %c0_8] : memref<3x160x512xbf16, #tpu.memory_space<vmem>>, vector<1x160x512xbf16>
    %8 = vector.shape_cast %7 : vector<1x160x512xbf16> to vector<160x512xbf16>
    %cst_9 = arith.constant dense<0.000000e+00> : vector<16x512xf32>
    %9 = tpu.matmul %6, %8, %cst_9 {dimension_numbers = #tpu.dot_dimension_numbers<[1], [0], [0], [1], [0, 0, 1, 1], [], []>} : vector<16x160xbf16>, vector<160x512xbf16>, vector<16x512xf32> -> vector<16x512xf32>
    %10 = arith.addf %4, %9 : vector<16x512xf32>
    %c0_10 = arith.constant 0 : index
    %c4 = arith.constant 4 : index
    %c0_11 = arith.constant 0 : index
    %11 = vector.load %arg2[%c0_10, %c4, %c0_11] : memref<1x20x160xbf16, #tpu.memory_space<vmem>>, vector<1x16x160xbf16>
    %12 = vector.shape_cast %11 : vector<1x16x160xbf16> to vector<16x160xbf16>
    %c2_12 = arith.constant 2 : index
    %c0_13 = arith.constant 0 : index
    %c0_14 = arith.constant 0 : index
    %13 = vector.load %arg3[%c2_12, %c0_13, %c0_14] : memref<3x160x512xbf16, #tpu.memory_space<vmem>>, vector<1x160x512xbf16>
    %14 = vector.shape_cast %13 : vector<1x160x512xbf16> to vector<160x512xbf16>
    %cst_15 = arith.constant dense<0.000000e+00> : vector<16x512xf32>
    %15 = tpu.matmul %12, %14, %cst_15 {dimension_numbers = #tpu.dot_dimension_numbers<[1], [0], [0], [1], [0, 0, 1, 1], [], []>} : vector<16x160xbf16>, vector<160x512xbf16>, vector<16x512xf32> -> vector<16x512xf32>
    %16 = arith.addf %10, %15 : vector<16x512xf32>
    %c0_16 = arith.constant 0 : index
    %c0_17 = arith.constant 0 : index
    %17 = vector.load %arg4[%c0_16, %c0_17] : memref<16x512xf32, #tpu.memory_space<vmem>>, vector<16x512xf32>
    %18 = arith.addf %16, %17 : vector<16x512xf32>
    %c0_18 = arith.constant 0 : index
    %c0_19 = arith.constant 0 : index
    %c0_20 = arith.constant 0 : index
    %19 = vector.load %arg5[%c0_18, %c0_19, %c0_20] : memref<1x16x512xf32, #tpu.memory_space<vmem>>, vector<1x16x512xf32>
    %20 = vector.shape_cast %19 : vector<1x16x512xf32> to vector<16x512xf32>
    %21 = arith.addf %18, %20 : vector<16x512xf32>
    %c0_21 = arith.constant 0 : index
    %c0_22 = arith.constant 0 : index
    %c0_23 = arith.constant 0 : index
    %22 = vector.load %arg6[%c0_21, %c0_22, %c0_23] : memref<1x16x512xf32, #tpu.memory_space<vmem>>, vector<1x16x512xf32>
    %23 = vector.shape_cast %22 : vector<1x16x512xf32> to vector<16x512xf32>
    %24 = vector.shape_cast %21 : vector<16x512xf32> to vector<1x16x512xf32>
    tpu.vector_store %arg6[%c0_21, %c0_22, %c0_23], %24 {strides = array<i32>} : memref<1x16x512xf32, #tpu.memory_space<vmem>>, vector<1x16x512xf32>,
    return
  }
  func.func @transform_0(%arg0: i32, %arg1: i32) -> (i32, i32, i32) {
    %c0_i32 = arith.constant 0 : i32
    %c0_i32_0 = arith.constant 0 : i32
    %c0_i32_1 = arith.constant 0 : i32
    return %arg0, %c0_i32, %c0_i32_0 : i32, i32, i32
  }
  func.func @transform_1(%arg0: i32, %arg1: i32) -> (i32, i32, i32) {
    %c0_i32 = arith.constant 0 : i32
    %c0_i32_0 = arith.constant 0 : i32
    %c0_i32_1 = arith.constant 0 : i32
    %c0_i32_2 = arith.constant 0 : i32
    return %c0_i32, %c0_i32_0, %c0_i32_1 : i32, i32, i32
  }
  func.func @transform_2(%arg0: i32, %arg1: i32) -> (i32, i32) {
    %c0_i32 = arith.constant 0 : i32
    %c0_i32_0 = arith.constant 0 : i32
    return %arg1, %c0_i32 : i32, i32
  }
  func.func @transform_3(%arg0: i32, %arg1: i32) -> (i32, i32, i32) {
    %c0_i32 = arith.constant 0 : i32
    %c0_i32_0 = arith.constant 0 : i32
    return %arg0, %arg1, %c0_i32 : i32, i32, i32
  }
  func.func @transform_4(%arg0: i32, %arg1: i32) -> (i32, i32, i32) {
    %c0_i32 = arith.constant 0 : i32
    %c0_i32_0 = arith.constant 0 : i32
    return %arg0, %arg1, %c0_i32 : i32, i32, i32
  }
}

module attributes {stable_mosaic.version = 11 : i64} {
  func.func @_conv_row_kernel(%arg0: i32, %arg1: i32, %arg2: memref<1x22x176xbf16, #tpu.memory_space<vmem>>, %arg3: memref<3x176x512xbf16, #tpu.memory_space<vmem>>, %arg4: memref<16x512xf32, #tpu.memory_space<vmem>>, %arg5: memref<1x16x512xf32, #tpu.memory_space<vmem>>, %arg6: memref<1x16x512xf32, #tpu.memory_space<vmem>>) attributes {dimension_semantics = [#tpu.dimension_semantics<parallel>, #tpu.dimension_semantics<parallel>], iteration_bounds = array<i64: 2, 1>, scalar_prefetch = 0 : i64, scratch_operands = 0 : i64, tpu.core_type = #tpu.core_type<tc>, window_params = [{transform_indices = @transform_0, window_bounds = array<i64: 1, 22, 176>}, {pipeline_mode = #tpu.pipeline_mode<synchronous>, transform_indices = @transform_1, window_bounds = array<i64: 3, 176, 512>}, {transform_indices = @transform_2, window_bounds = array<i64: 16, 512>}, {transform_indices = @transform_3, window_bounds = array<i64: 1, 16, 512>}, {transform_indices = @transform_4, window_bounds = array<i64: 1, 16, 512>}]} {
    %c0 = arith.constant 0 : index
    %c0_0 = arith.constant 0 : index
    %c0_1 = arith.constant 0 : index
    %0 = vector.load %arg2[%c0, %c0_0, %c0_1] : memref<1x22x176xbf16, #tpu.memory_space<vmem>>, vector<1x16x176xbf16>
    %1 = vector.shape_cast %0 : vector<1x16x176xbf16> to vector<16x176xbf16>
    %c0_2 = arith.constant 0 : index
    %c0_3 = arith.constant 0 : index
    %c0_4 = arith.constant 0 : index
    %2 = vector.load %arg3[%c0_2, %c0_3, %c0_4] : memref<3x176x512xbf16, #tpu.memory_space<vmem>>, vector<1x176x512xbf16>
    %3 = vector.shape_cast %2 : vector<1x176x512xbf16> to vector<176x512xbf16>
    %cst = arith.constant dense<0.000000e+00> : vector<16x512xf32>
    %4 = tpu.matmul %1, %3, %cst {dimension_numbers = #tpu.dot_dimension_numbers<[1], [0], [0], [1], [0, 0, 1, 1], [], []>} : vector<16x176xbf16>, vector<176x512xbf16>, vector<16x512xf32> -> vector<16x512xf32>
    %c0_5 = arith.constant 0 : index
    %c3 = arith.constant 3 : index
    %c0_6 = arith.constant 0 : index
    %5 = vector.load %arg2[%c0_5, %c3, %c0_6] : memref<1x22x176xbf16, #tpu.memory_space<vmem>>, vector<1x16x176xbf16>
    %6 = vector.shape_cast %5 : vector<1x16x176xbf16> to vector<16x176xbf16>
    %c1 = arith.constant 1 : index
    %c0_7 = arith.constant 0 : index
    %c0_8 = arith.constant 0 : index
    %7 = vector.load %arg3[%c1, %c0_7, %c0_8] : memref<3x176x512xbf16, #tpu.memory_space<vmem>>, vector<1x176x512xbf16>
    %8 = vector.shape_cast %7 : vector<1x176x512xbf16> to vector<176x512xbf16>
    %cst_9 = arith.constant dense<0.000000e+00> : vector<16x512xf32>
    %9 = tpu.matmul %6, %8, %cst_9 {dimension_numbers = #tpu.dot_dimension_numbers<[1], [0], [0], [1], [0, 0, 1, 1], [], []>} : vector<16x176xbf16>, vector<176x512xbf16>, vector<16x512xf32> -> vector<16x512xf32>
    %10 = arith.addf %4, %9 : vector<16x512xf32>
    %c0_10 = arith.constant 0 : index
    %c6 = arith.constant 6 : index
    %c0_11 = arith.constant 0 : index
    %11 = vector.load %arg2[%c0_10, %c6, %c0_11] : memref<1x22x176xbf16, #tpu.memory_space<vmem>>, vector<1x16x176xbf16>
    %12 = vector.shape_cast %11 : vector<1x16x176xbf16> to vector<16x176xbf16>
    %c2 = arith.constant 2 : index
    %c0_12 = arith.constant 0 : index
    %c0_13 = arith.constant 0 : index
    %13 = vector.load %arg3[%c2, %c0_12, %c0_13] : memref<3x176x512xbf16, #tpu.memory_space<vmem>>, vector<1x176x512xbf16>
    %14 = vector.shape_cast %13 : vector<1x176x512xbf16> to vector<176x512xbf16>
    %cst_14 = arith.constant dense<0.000000e+00> : vector<16x512xf32>
    %15 = tpu.matmul %12, %14, %cst_14 {dimension_numbers = #tpu.dot_dimension_numbers<[1], [0], [0], [1], [0, 0, 1, 1], [], []>} : vector<16x176xbf16>, vector<176x512xbf16>, vector<16x512xf32> -> vector<16x512xf32>
    %16 = arith.addf %10, %15 : vector<16x512xf32>
    %c0_15 = arith.constant 0 : index
    %c0_16 = arith.constant 0 : index
    %17 = vector.load %arg4[%c0_15, %c0_16] : memref<16x512xf32, #tpu.memory_space<vmem>>, vector<16x512xf32>
    %18 = arith.addf %16, %17 : vector<16x512xf32>
    %c0_17 = arith.constant 0 : index
    %c0_18 = arith.constant 0 : index
    %c0_19 = arith.constant 0 : index
    %19 = vector.load %arg5[%c0_17, %c0_18, %c0_19] : memref<1x16x512xf32, #tpu.memory_space<vmem>>, vector<1x16x512xf32>
    %20 = vector.shape_cast %19 : vector<1x16x512xf32> to vector<16x512xf32>
    %21 = arith.addf %18, %20 : vector<16x512xf32>
    %c0_20 = arith.constant 0 : index
    %c0_21 = arith.constant 0 : index
    %c0_22 = arith.constant 0 : index
    %22 = vector.load %arg6[%c0_20, %c0_21, %c0_22] : memref<1x16x512xf32, #tpu.memory_space<vmem>>, vector<1x16x512xf32>
    %23 = vector.shape_cast %22 : vector<1x16x512xf32> to vector<16x512xf32>
    %24 = vector.shape_cast %21 : vector<16x512xf32> to vector<1x16x512xf32>
    tpu.vector_store %arg6[%c0_20, %c0_21, %c0_22], %24 {strides = array<i32>} : memref<1x16x512xf32, #tpu.memory_space<vmem>>, vector<1x16x512xf32>,
    return
  }
  func.func @transform_0(%arg0: i32, %arg1: i32) -> (i32, i32, i32) {
    %c0_i32 = arith.constant 0 : i32
    %c0_i32_0 = arith.constant 0 : i32
    %c0_i32_1 = arith.constant 0 : i32
    return %arg0, %c0_i32, %c0_i32_0 : i32, i32, i32
  }
  func.func @transform_1(%arg0: i32, %arg1: i32) -> (i32, i32, i32) {
    %c0_i32 = arith.constant 0 : i32
    %c0_i32_0 = arith.constant 0 : i32
    %c0_i32_1 = arith.constant 0 : i32
    %c0_i32_2 = arith.constant 0 : i32
    return %c0_i32, %c0_i32_0, %c0_i32_1 : i32, i32, i32
  }
  func.func @transform_2(%arg0: i32, %arg1: i32) -> (i32, i32) {
    %c0_i32 = arith.constant 0 : i32
    %c0_i32_0 = arith.constant 0 : i32
    return %arg1, %c0_i32 : i32, i32
  }
  func.func @transform_3(%arg0: i32, %arg1: i32) -> (i32, i32, i32) {
    %c0_i32 = arith.constant 0 : i32
    %c0_i32_0 = arith.constant 0 : i32
    return %arg0, %arg1, %c0_i32 : i32, i32, i32
  }
  func.func @transform_4(%arg0: i32, %arg1: i32) -> (i32, i32, i32) {
    %c0_i32 = arith.constant 0 : i32
    %c0_i32_0 = arith.constant 0 : i32
    return %arg0, %arg1, %c0_i32 : i32, i32, i32
  }
}

module attributes {stable_mosaic.version = 11 : i64} {
  func.func @_conv_row_kernel(%arg0: i32, %arg1: i32, %arg2: memref<1x26x208xbf16, #tpu.memory_space<vmem>>, %arg3: memref<3x208x512xbf16, #tpu.memory_space<vmem>>, %arg4: memref<16x512xf32, #tpu.memory_space<vmem>>, %arg5: memref<1x16x512xf32, #tpu.memory_space<vmem>>, %arg6: memref<1x16x512xf32, #tpu.memory_space<vmem>>) attributes {dimension_semantics = [#tpu.dimension_semantics<parallel>, #tpu.dimension_semantics<parallel>], iteration_bounds = array<i64: 2, 1>, scalar_prefetch = 0 : i64, scratch_operands = 0 : i64, tpu.core_type = #tpu.core_type<tc>, window_params = [{transform_indices = @transform_0, window_bounds = array<i64: 1, 26, 208>}, {pipeline_mode = #tpu.pipeline_mode<synchronous>, transform_indices = @transform_1, window_bounds = array<i64: 3, 208, 512>}, {transform_indices = @transform_2, window_bounds = array<i64: 16, 512>}, {transform_indices = @transform_3, window_bounds = array<i64: 1, 16, 512>}, {transform_indices = @transform_4, window_bounds = array<i64: 1, 16, 512>}]} {
    %c0 = arith.constant 0 : index
    %c0_0 = arith.constant 0 : index
    %c0_1 = arith.constant 0 : index
    %0 = vector.load %arg2[%c0, %c0_0, %c0_1] : memref<1x26x208xbf16, #tpu.memory_space<vmem>>, vector<1x16x208xbf16>
    %1 = vector.shape_cast %0 : vector<1x16x208xbf16> to vector<16x208xbf16>
    %c0_2 = arith.constant 0 : index
    %c0_3 = arith.constant 0 : index
    %c0_4 = arith.constant 0 : index
    %2 = vector.load %arg3[%c0_2, %c0_3, %c0_4] : memref<3x208x512xbf16, #tpu.memory_space<vmem>>, vector<1x208x512xbf16>
    %3 = vector.shape_cast %2 : vector<1x208x512xbf16> to vector<208x512xbf16>
    %cst = arith.constant dense<0.000000e+00> : vector<16x512xf32>
    %4 = tpu.matmul %1, %3, %cst {dimension_numbers = #tpu.dot_dimension_numbers<[1], [0], [0], [1], [0, 0, 1, 1], [], []>} : vector<16x208xbf16>, vector<208x512xbf16>, vector<16x512xf32> -> vector<16x512xf32>
    %c0_5 = arith.constant 0 : index
    %c5 = arith.constant 5 : index
    %c0_6 = arith.constant 0 : index
    %5 = vector.load %arg2[%c0_5, %c5, %c0_6] : memref<1x26x208xbf16, #tpu.memory_space<vmem>>, vector<1x16x208xbf16>
    %6 = vector.shape_cast %5 : vector<1x16x208xbf16> to vector<16x208xbf16>
    %c1 = arith.constant 1 : index
    %c0_7 = arith.constant 0 : index
    %c0_8 = arith.constant 0 : index
    %7 = vector.load %arg3[%c1, %c0_7, %c0_8] : memref<3x208x512xbf16, #tpu.memory_space<vmem>>, vector<1x208x512xbf16>
    %8 = vector.shape_cast %7 : vector<1x208x512xbf16> to vector<208x512xbf16>
    %cst_9 = arith.constant dense<0.000000e+00> : vector<16x512xf32>
    %9 = tpu.matmul %6, %8, %cst_9 {dimension_numbers = #tpu.dot_dimension_numbers<[1], [0], [0], [1], [0, 0, 1, 1], [], []>} : vector<16x208xbf16>, vector<208x512xbf16>, vector<16x512xf32> -> vector<16x512xf32>
    %10 = arith.addf %4, %9 : vector<16x512xf32>
    %c0_10 = arith.constant 0 : index
    %c10 = arith.constant 10 : index
    %c0_11 = arith.constant 0 : index
    %11 = vector.load %arg2[%c0_10, %c10, %c0_11] : memref<1x26x208xbf16, #tpu.memory_space<vmem>>, vector<1x16x208xbf16>
    %12 = vector.shape_cast %11 : vector<1x16x208xbf16> to vector<16x208xbf16>
    %c2 = arith.constant 2 : index
    %c0_12 = arith.constant 0 : index
    %c0_13 = arith.constant 0 : index
    %13 = vector.load %arg3[%c2, %c0_12, %c0_13] : memref<3x208x512xbf16, #tpu.memory_space<vmem>>, vector<1x208x512xbf16>
    %14 = vector.shape_cast %13 : vector<1x208x512xbf16> to vector<208x512xbf16>
    %cst_14 = arith.constant dense<0.000000e+00> : vector<16x512xf32>
    %15 = tpu.matmul %12, %14, %cst_14 {dimension_numbers = #tpu.dot_dimension_numbers<[1], [0], [0], [1], [0, 0, 1, 1], [], []>} : vector<16x208xbf16>, vector<208x512xbf16>, vector<16x512xf32> -> vector<16x512xf32>
    %16 = arith.addf %10, %15 : vector<16x512xf32>
    %c0_15 = arith.constant 0 : index
    %c0_16 = arith.constant 0 : index
    %17 = vector.load %arg4[%c0_15, %c0_16] : memref<16x512xf32, #tpu.memory_space<vmem>>, vector<16x512xf32>
    %18 = arith.addf %16, %17 : vector<16x512xf32>
    %c0_17 = arith.constant 0 : index
    %c0_18 = arith.constant 0 : index
    %c0_19 = arith.constant 0 : index
    %19 = vector.load %arg5[%c0_17, %c0_18, %c0_19] : memref<1x16x512xf32, #tpu.memory_space<vmem>>, vector<1x16x512xf32>
    %20 = vector.shape_cast %19 : vector<1x16x512xf32> to vector<16x512xf32>
    %21 = arith.addf %18, %20 : vector<16x512xf32>
    %cst_20 = arith.constant 0.000000e+00 : f32
    %22 = vector.broadcast %cst_20 : f32 to vector<16x512xf32>
    %23 = arith.maximumf %21, %22 : vector<16x512xf32>
    %c0_21 = arith.constant 0 : index
    %c0_22 = arith.constant 0 : index
    %c0_23 = arith.constant 0 : index
    %24 = vector.load %arg6[%c0_21, %c0_22, %c0_23] : memref<1x16x512xf32, #tpu.memory_space<vmem>>, vector<1x16x512xf32>
    %25 = vector.shape_cast %24 : vector<1x16x512xf32> to vector<16x512xf32>
    %26 = vector.shape_cast %23 : vector<16x512xf32> to vector<1x16x512xf32>
    tpu.vector_store %arg6[%c0_21, %c0_22, %c0_23], %26 {strides = array<i32>} : memref<1x16x512xf32, #tpu.memory_space<vmem>>, vector<1x16x512xf32>,
    return
  }
  func.func @transform_0(%arg0: i32, %arg1: i32) -> (i32, i32, i32) {
    %c0_i32 = arith.constant 0 : i32
    %c0_i32_0 = arith.constant 0 : i32
    %c0_i32_1 = arith.constant 0 : i32
    return %arg0, %c0_i32, %c0_i32_0 : i32, i32, i32
  }
  func.func @transform_1(%arg0: i32, %arg1: i32) -> (i32, i32, i32) {
    %c0_i32 = arith.constant 0 : i32
    %c0_i32_0 = arith.constant 0 : i32
    %c0_i32_1 = arith.constant 0 : i32
    %c0_i32_2 = arith.constant 0 : i32
    return %c0_i32, %c0_i32_0, %c0_i32_1 : i32, i32, i32
  }
  func.func @transform_2(%arg0: i32, %arg1: i32) -> (i32, i32) {
    %c0_i32 = arith.constant 0 : i32
    %c0_i32_0 = arith.constant 0 : i32
    return %arg1, %c0_i32 : i32, i32
  }
  func.func @transform_3(%arg0: i32, %arg1: i32) -> (i32, i32, i32) {
    %c0_i32 = arith.constant 0 : i32
    %c0_i32_0 = arith.constant 0 : i32
    return %arg0, %arg1, %c0_i32 : i32, i32, i32
  }
  func.func @transform_4(%arg0: i32, %arg1: i32) -> (i32, i32, i32) {
    %c0_i32 = arith.constant 0 : i32
    %c0_i32_0 = arith.constant 0 : i32
    return %arg0, %arg1, %c0_i32 : i32, i32, i32
  }
}

</mosaic_0001>

<bundles_post_ra>
// kernel: _lambda_.14
= control target key start
LH: loop header
LB: loop body
LE: loop exit
PB: predicated region body
PF: predicated region fallthrough
CT: control target
= control target key end

     0   :  { %s935_s12 = smov 0   ;;  %s937_s13 = smov 0   ;;  %s1109_s0 = inlined_call_operand.vmem [shape: bf16[2,18,144], index: 0, kind: input, shape index: {}]   ;;  %s1110_s1 = inlined_call_operand.vmem [shape: bf16[3,144,128], index: 1, kind: input, shape index: {}]   ;;  %s1111_s2 = inlined_call_operand.vmem [shape: f32[16,128], index: 2, kind: input, shape index: {}]   ;;  %s1112_s3 = inlined_call_operand.vmem [shape: bf16[2,16,128], index: 3, kind: output, shape index: {}]  }
   0x1   :  { %s939_s14 = smov 0  }
   0x2 LB: > { %s25_s15 = sadd.s32 1, %s908_s13  ;;  %p743_p0 = scmp.ge.s32.totalorder %s912_s14, 1  ;;  %s912_s14 = sphi %s939_s14, %s13_s14   ;;  %s908_s13 = sphi %s937_s13, %s1114_s13   ;;  %s904_s12 = sphi %s935_s12, %s1113_s12  }
   0x3   : > { %p27_p1 = scmp.ge.s32.totalorder %s25_s15, 2  ;;  %p162_p2 = scmp.lt.s32.totalorder %s912_s14, 3 }
   0x5   : > { %s1116_s15 = smov (%p27_p1, %s25_s15), 0  ;;  %p163_p3 = pnand %p743_p0, %p162_p2 }
   0x6   : > { %p195_p4 = scmp.lt.s32.totalorder (!%p163_p3), %s904_s12, 1 }
   0x7   : > { %166 = sbr.rel (%p163_p3) target bundleno = 291 (0x123), region = 32 }
   0xc   : > { %v857_v0 = vld [vmem:[%s1110_s1 + $0x80] sm:$0xff]   ;;  %v914_v1 = vmov 0   ;;  %v858_v2 = vld [vmem:[%s1110_s1 + $0x38] sm:$0xff]   ;;  %v860_v4 = vld [vmem:[%s1110_s1 + $0x30] sm:$0xff]   ;;  %s1118_s12 = smov (!%p195_p4, %s904_s12), 1  ;;  %vm350_vm0 = vcmask 130048  }
   0xd   : > { %354 = vmatprep.subr.bf16.mxu0 %v914_v1  ;;  %452 = vmatprep.subr.bf16.mxu1 %v914_v1  ;;  %v859_v3 = vld [vmem:[%s1110_s1 + $0x78] sm:$0xff]   ;;  %v861_v5 = vld [vmem:[%s1110_s1 + $0x70] sm:$0xff]   ;;  %v862_v6 = vld [vmem:[%s1110_s1 + $0x28] sm:$0xff]   ;;  %s831_s5 = smul.u32 24, %s1118_s12  ;;  %vm270_vm1 = vsmask.f32 7424 }
   0xe   : > { %355 = vmatpush1.bf16.msra.mxu0 %v857_v0  ;;  %453 = vmatpush1.bf16.msra.mxu1 %v858_v2  ;;  %v863_v7 = vld [vmem:[%s1110_s1 + $0x68] sm:$0xff]   ;;  %v864_v8 = vld [vmem:[%s1110_s1 + $0x20] sm:$0xff]   ;;  %v866_v10 = vld [vmem:[%s1110_s1 + $0x18] sm:$0xff]   ;;  %vm518_vm2 = vcmask 1046528  }
   0xf   : > { %356 = vmatprep.subr.bf16.mxu0 %v914_v1  ;;  %454 = vmatprep.subr.bf16.mxu1 %v914_v1  ;;  %v865_v9 = vld [vmem:[%s1110_s1 + $0x60] sm:$0xff]   ;;  %s998_s16 = scalar_lea.vmem %s1109_s0, %s831_s5  ;;  %v867_v11 = vld [vmem:[%s1110_s1 + $0x58] sm:$0xff]   ;;  %v868_v15 = vld [vmem:[%s1110_s1 + $0x10] sm:$0xff]   ;;  %s823_s5 = sshll.u32 %s1118_s12, 3 }
  0x10   : > { %v217_v12 = vld [vmem:[%s998_s16] sm:$0xff]  ;;  %v1006_v13 = vld [vmem:[%s998_s16 + $0x8] sm:$0xff]  ;;  %v237_v14 = vld [vmem:[%s998_s16 + $0x10] sm:$0x11]  ;;  %s214_s8 = scalar_lea.vmem %s1112_s3, %s823_s5 }
  0x11   : > { %v766_v16 = vcombine.high %v217_v12, %v1006_v13  ;;  %v768_v17 = vcombine.high %v237_v14, %v237_v14  ;;  %v765_v18 = vcombine.low %v217_v12, %v1006_v13  ;;  %v869_v22 = vld [vmem:[%s1110_s1 + $0x50] sm:$0xff]   ;;  %v870_v23 = vld [vmem:[%s1110_s1 + $0x8] sm:$0xff]   ;;  %v1023_v24 = vcombine.low %v237_v14, %v237_v14  ;;  %v872_v33 = vld [vmem:[%s1110_s1] sm:$0xff]  }
  0x12   : > { %357 = vmatpush1.bf16.msra.mxu0 %v859_v3  ;;  %455 = vmatpush1.bf16.msra.mxu1 %v860_v4  ;;  %v871_v28 = vld [vmem:[%s1110_s1 + $0x48] sm:$0xff]   ;;  %v493_v35 = vld [vmem:[%s998_s16] sm:$0xee]  ;;  %v881_v47 = vld [vmem:[%s1110_s1 + $0xb8] sm:$0xff]  }
  0x13   : > { %358 = vmatprep.subr.bf16.mxu0 %v914_v1  ;;  %456 = vmatprep.subr.bf16.mxu1 %v914_v1  ;;  %v284_v19 = vshrl.u32 %v766_v16, 16  ;;  %v286_v20 = vshll.u32 %v766_v16, 16  ;;  %v291_v21 = vshll.u32 %v768_v17, 16  ;;  %v274_v25 = vshll.u32 %v765_v18, 16  ;;  %v873_v36 = vld [vmem:[%s1110_s1 + $0x88] sm:$0xff]   ;;  %v874_v40 = vld [vmem:[%s1110_s1 + $0x40] sm:$0xff]  }
  0x14   : > { %788 = vmatprep.mubr.msk.bf16.mxu1 %vm350_vm0, %v766_v16  ;;  %v272_v30 = vshrl.u32 %v765_v18, 16  ;;  %v279_v32 = vshll.u32 %v1023_v24, 16  ;;  %v808_v39 = vcombine.high %v493_v35, %v1006_v13  ;;  %v523_v42 = vrot.slane %v768_v17, 1  ;;  %v879_v44 = vld [vmem:[%s1110_s1 + $0xc8] sm:$0xff]   ;;  %v880_v46 = vld [vmem:[%s1110_s1 + $0xc0] sm:$0xff]   ;;  %v882_v48 = vld [vmem:[%s1110_s1 + $0xb0] sm:$0xff]  }
  0x15   : > { %v288_v26 = vrot.slane %v286_v20, 1  ;;  %v293_v27 = vrot.slane %v291_v21, 1  ;;  %v276_v31 = vrot.slane %v274_v25, 1  ;;  %v883_v49 = vld [vmem:[%s1110_s1 + $0xa8] sm:$0xff]   ;;  %v884_v50 = vld [vmem:[%s1110_s1 + $0xa0] sm:$0xff]   ;;  %v885_v51 = vld [vmem:[%s1110_s1 + $0x98] sm:$0xff]   ;;  %v807_v53 = vcombine.low %v493_v35, %v1006_v13 }
  0x16   : > { %359 = vmatpush1.bf16.msra.mxu0 %v861_v5  ;;  %457 = vmatpush1.bf16.msra.mxu1 %v862_v6  ;;  %v281_v38 = vrot.slane %v279_v32, 1  ;;  %v522_v41 = vrot.slane %v808_v39, 1  ;;  %v886_v52 = vld [vmem:[%s1110_s1 + $0x90] sm:$0xff]   ;;  %v520_v56 = vrot.slane %v1023_v24, 1 }
  0x17   : > { %360 = vmatprep.subr.bf16.mxu0 %v914_v1  ;;  %458 = vmatprep.subr.bf16.mxu1 %v914_v1  ;;  %v289_v29 = vor.u32 %v288_v26, %v284_v19  ;;  %v277_v37 = vor.u32 %v276_v31, %v272_v30  ;;  %v887_v54 = vld [vmem:[%s1110_s1 + $0xd0] sm:$0xff]   ;;  %v519_v55 = vrot.slane %v807_v53, 1 }
  0x18   : > { %v524_v45 = vsel %vm518_vm2, %v522_v41, %v523_v42 }
  0x19   : > { %v294_v34 = vsel %vm270_vm1, %v289_v29, %v293_v27  ;;  %v282_v43 = vsel %vm270_vm1, %v277_v37, %v281_v38  ;;  %v521_v57 = vsel %vm518_vm2, %v519_v55, %v520_v56 }
  0x1a   : > { %361 = vmatpush1.bf16.msra.mxu0 %v863_v7  ;;  %459 = vmatpush1.bf16.msra.mxu1 %v864_v8 }
  0x1b   : > { %362 = vmatprep.subr.bf16.mxu0 %v914_v1  ;;  %460 = vmatprep.subr.bf16.mxu1 %v914_v1 }
  0x1c   : > { %778 = vmatprep.mubr.msk.bf16.mxu0 %vm350_vm0, %v294_v34 }
  0x1e   : > { %363 = vmatpush1.bf16.msra.mxu0 %v865_v9  ;;  %461 = vmatpush1.bf16.msra.mxu1 %v866_v10  ;;  %v627_v9 = vld [vmem:[%s1111_s2 + $0x8] sm:$0xff] }
  0x1f   : > { %364 = vmatprep.subr.bf16.mxu0 %v914_v1  ;;  %462 = vmatprep.subr.bf16.mxu1 %v914_v1 }
  0x22   : > { %365 = vmatpush1.bf16.msra.mxu0 %v867_v11  ;;  %463 = vmatpush1.bf16.msra.mxu1 %v868_v15 }
  0x23   : > { %366 = vmatprep.subr.bf16.mxu0 %v914_v1  ;;  %464 = vmatprep.subr.bf16.mxu1 %v914_v1 }
  0x26   : > { %367 = vmatpush1.bf16.msra.mxu0 %v869_v22  ;;  %465 = vmatpush1.bf16.msra.mxu1 %v870_v23 }
  0x27   : > { %368 = vmatprep.subr.bf16.mxu0 %v914_v1  ;;  %466 = vmatprep.subr.bf16.mxu1 %v914_v1 }
  0x2a   : > { %369 = vmatpush1.bf16.msra.mxu0 %v871_v28  ;;  %467 = vmatpush1.bf16.msra.mxu1 %v872_v33 }
  0x2b   : > { %384 = vmatprep.subr.bf16.mxu0 %v914_v1  ;;  %482 = vmatprep.subr.bf16.mxu1 %v914_v1 }
  0x2e   : > { %385 = vmatpush2.bf16.msra.mxu0 %v873_v36  ;;  %483 = vmatpush2.bf16.msra.mxu1 %v874_v40 }
  0x2f   : > { %583 = vmatprep.subr.bf16.mxu0 %v914_v1 }
  0x31   : > { %387 = vmatmul.mubr.bf16.vlgmr.msra.gmra.mxu0 %v282_v43  ;;  %485 = vmatmul.mubr.bf16.vlgmr.msra.gmra.mxu1 %v765_v18 }
  0x32   : > { %584 = vmatpush1.bf16.msra.mxu0 %v879_v44  ;;  %818 = vmatprep.mubr.msk.bf16.mxu0 %vm350_vm0, %v524_v45 }
  0x33   : > { %585 = vmatprep.subr.bf16.mxu0 %v914_v1 }
  0x36   : > { %586 = vmatpush1.bf16.msra.mxu0 %v880_v46 }
  0x37   : > { %587 = vmatprep.subr.bf16.mxu0 %v914_v1 }
  0x3a   : > { %588 = vmatpush1.bf16.msra.mxu0 %v881_v47 }
  0x3b   : > { %589 = vmatprep.subr.bf16.mxu0 %v914_v1 }
  0x3e   : > { %590 = vmatpush1.bf16.msra.mxu0 %v882_v48 }
  0x3f   : > { %591 = vmatprep.subr.bf16.mxu0 %v914_v1 }
  0x42   : > { %592 = vmatpush1.bf16.msra.mxu0 %v883_v49 }
  0x43   : > { %593 = vmatprep.subr.bf16.mxu0 %v914_v1 }
  0x46   : > { %594 = vmatpush1.bf16.msra.mxu0 %v884_v50 }
  0x47   : > { %595 = vmatprep.subr.bf16.mxu0 %v914_v1 }
  0x4a   : > { %596 = vmatpush1.bf16.msra.mxu0 %v885_v51 }
  0x4b   : > { %597 = vmatprep.subr.bf16.mxu0 %v914_v1 }
  0x4e   : > { %598 = vmatpush1.bf16.msra.mxu0 %v886_v52 }
  0x4f   : > { %613 = vmatprep.subr.bf16.mxu0 %v914_v1  ;;  %v626_v1 = vld [vmem:[%s1111_s2] sm:$0xff] }
  0x52   : > { %614 = vmatpush2.bf16.msra.mxu0 %v887_v54 }
  0x55   : > { %616 = vmatmul.mubr.bf16.vlgmr.msra.gmra.mxu0 %v521_v57 }
  0xf1   : > { %v388_v58 = vpop.f32.mrf.mxu0  ;;  %v486_v59 = vpop.f32.mrf.mxu1 }
  0xf2   : > { %v487_v3 = vadd.f32 %v486_v59, %v388_v58 }
  0xf3   : > { %v390_v60 = vpop.f32.mrf.mxu0  ;;  %v488_v61 = vpop.f32.mrf.mxu1 }
  0xf5   : > { %v391_v62 = vpop.f32.mrf.mxu0  ;;  %v489_v63 = vpop.f32.mrf.mxu1 }
  0xf6   : > { %v490_v7 = vadd.f32 %v489_v63, %v391_v62 }
  0xf7   : > { %v393_v0 = vpop.f32.mrf.mxu0  ;;  %v491_v2 = vpop.f32.mrf.mxu1 }
 0x115   : > { %v617_v4 = vpop.f32.mrf.mxu0 }
 0x116   : > { %v624_v5 = vadd.f32 %v617_v4, %v487_v3 }
 0x117   : > { %v619_v6 = vpop.f32.mrf.mxu0 }
 0x118   : > { %v628_v10 = vadd.f32 %v626_v1, %v624_v5 }
 0x119   : > { %v620_v8 = vpop.f32.mrf.mxu0 }
 0x11a   : > { %v625_v11 = vadd.f32 %v620_v8, %v490_v7  ;;  %v630_v14 = vmax.f32 %v628_v10, 0.0 }
 0x11b   : > { %v622_v12 = vpop.f32.mrf.mxu0 }
 0x11c   : > { %v629_v13 = vadd.f32 %v627_v9, %v625_v11 }
 0x11e   : > { %v631_v15 = vmax.f32 %v629_v13, 0.0 }
 0x120   : > { %v829_v16 = vpack.c.bf16 %v631_v15, %v630_v14 }
 0x122   : > { %830 = vst [vmem:[%s214_s8] sm:$0xff] %v829_v16  }
 0x123 PF: > { %s13_s14 = sadd.s32 1, %s912_s14   ;;  %s1113_s12 = smov %s908_s13 }
 0x124   : > { %p10_p5 = scmp.ge.s32.totalorder %s13_s14, 4   ;;  %s1114_s13 = smov %s1116_s15 }
 0x126   :  { %12 = sbr.rel (!%p10_p5) target bundleno = 2 (0x2), region = 67 }

// kernel: _lambda_.8
= control target key start
LH: loop header
LB: loop body
LE: loop exit
PB: predicated region body
PF: predicated region fallthrough
CT: control target
= control target key end

     0   :  { %s764_s12 = smov 0   ;;  %s928_s0 = inlined_call_operand.vmem [shape: bf16[2,256,32], index: 0, kind: input, shape index: {}]   ;;  %s929_s1 = inlined_call_operand.vmem [shape: bf16[32,32], index: 1, kind: input, shape index: {}]   ;;  %s930_s2 = inlined_call_operand.vmem [shape: f32[1,32], index: 2, kind: input, shape index: {}]   ;;  %s931_s3 = inlined_call_operand.vmem [shape: f32[2,256,32], index: 3, kind: output, shape index: {}]  }
   0x1 LB: > { %s604_s13 = sadd.s32 4294967295, %s742_s12   ;;  %p608_p0 = scmp.ge.s32.totalorder %s742_s12, 1  ;;  %s742_s12 = sphi %s764_s12, %s13_s12  }
   0x2   : > { %p137_p1 = scmp.lt.s32.totalorder %s742_s12, 3 }
   0x4   : > { %p138_p2 = pnand %p608_p0, %p137_p1 }
   0x5   : > { %p161_p3 = scmp.lt.s32.totalorder (!%p138_p2), %s604_s13, 1 }
   0x6   : > { %141 = sbr.rel (%p138_p2) target bundleno = 246 (0xf6), region = 32 }
   0xb   : > { %v718_v0 = vld [vmem:[%s929_s1 + $0x8] sm:$0xff]   ;;  %v719_v1 = vld [vmem:[%s929_s1] sm:$0xff]   ;;  %s933_s13 = smov (!%p161_p3, %s604_s13), 1  ;;  %vm307_vm0 = vcmask 261120  }
   0xc   : > { %670 = vmatprep.subr.bf16.mxu0 %v718_v0  ;;  %706 = vmatprep.subr.bf16.mxu1 %v718_v0  ;;  %s650_s18 = sshll.u32 %s933_s13, 7  ;;  %s651_s22 = sshll.u32 %s933_s13, 8  ;;  %v822_v18 = vld [vmem:[%s930_s2] ss:$0 sm:$0xff] }
   0xd   : > { %671 = vmatpush3.bf16.msra.mxu0 %v718_v0  ;;  %708 = vmatpush3.bf16.msra.mxu1 %v718_v0  ;;  %s784_s21 = scalar_lea.vmem %s928_s0, %s650_s18  ;;  %s827_s27 = scalar_lea.vmem %s931_s3, %s651_s22 }
   0xe   : > { %672 = vmatprep.subr.bf16.mxu0 %v719_v1  ;;  %707 = vmatprep.subr.bf16.mxu1 %v719_v1  ;;  %v720_v2 = vld [vmem:[%s784_s21] sm:$0xff]   ;;  %v722_v4 = vld [vmem:[%s784_s21 + $0x8] sm:$0xff]   ;;  %v724_v6 = vld [vmem:[%s784_s21 + $0x10] sm:$0xff]  }
   0xf   : > { %v721_v3 = vld [vmem:[%s784_s21 + $0x40] sm:$0xff]   ;;  %674 = vmatprep.mubr.msk.bf16.mxu0 %vm307_vm0, %v720_v2  ;;  %v723_v5 = vld [vmem:[%s784_s21 + $0x48] sm:$0xff]   ;;  %v725_v7 = vld [vmem:[%s784_s21 + $0x50] sm:$0xff]  }
  0x10   : > { %690 = vmatprep.mubr.msk.bf16.mxu1 %vm307_vm0, %v721_v3  ;;  %v726_v8 = vld [vmem:[%s784_s21 + $0x18] sm:$0xff]   ;;  %v728_v10 = vld [vmem:[%s784_s21 + $0x20] sm:$0xff]   ;;  %v730_v12 = vld [vmem:[%s784_s21 + $0x28] sm:$0xff]  }
  0x11   : > { %673 = vmatpush3.bf16.msra.mxu0 %v719_v1  ;;  %709 = vmatpush3.bf16.msra.mxu1 %v719_v1  ;;  %v727_v9 = vld [vmem:[%s784_s21 + $0x58] sm:$0xff]   ;;  %v729_v11 = vld [vmem:[%s784_s21 + $0x60] sm:$0xff]   ;;  %v731_v13 = vld [vmem:[%s784_s21 + $0x68] sm:$0xff]  }
  0x12   : > { %v732_v14 = vld [vmem:[%s784_s21 + $0x30] sm:$0xff]   ;;  %v734_v16 = vld [vmem:[%s784_s21 + $0x38] sm:$0xff]  }
  0x13   : > { %v733_v15 = vld [vmem:[%s784_s21 + $0x70] sm:$0xff]   ;;  %v735_v17 = vld [vmem:[%s784_s21 + $0x78] sm:$0xff]  }
  0x14   : > { %675 = vmatmul.mubr.msk.bf16.vlgmr.msra.gmra.mxu0 %vm307_vm0, %v722_v4  ;;  %691 = vmatmul.mubr.msk.bf16.vlgmr.msra.gmra.mxu1 %vm307_vm0, %v723_v5 }
  0x15   : > { %678 = vmatprep.mubr.msk.bf16.mxu0 %vm307_vm0, %v724_v6  ;;  %694 = vmatprep.mubr.msk.bf16.mxu1 %vm307_vm0, %v725_v7 }
  0x1c   : > { %679 = vmatmul.mubr.msk.bf16.gmra.mxu0 %vm307_vm0, %v726_v8  ;;  %695 = vmatmul.mubr.msk.bf16.gmra.mxu1 %vm307_vm0, %v727_v9 }
  0x1d   : > { %682 = vmatprep.mubr.msk.bf16.mxu0 %vm307_vm0, %v728_v10  ;;  %698 = vmatprep.mubr.msk.bf16.mxu1 %vm307_vm0, %v729_v11 }
  0x24   : > { %683 = vmatmul.mubr.msk.bf16.gmra.mxu0 %vm307_vm0, %v730_v12  ;;  %699 = vmatmul.mubr.msk.bf16.gmra.mxu1 %vm307_vm0, %v731_v13 }
  0x25   : > { %686 = vmatprep.mubr.msk.bf16.mxu0 %vm307_vm0, %v732_v14  ;;  %702 = vmatprep.mubr.msk.bf16.mxu1 %vm307_vm0, %v733_v15 }
  0x2c   : > { %687 = vmatmul.mubr.msk.bf16.gmra.mxu0 %vm307_vm0, %v734_v16  ;;  %703 = vmatmul.mubr.msk.bf16.gmra.mxu1 %vm307_vm0, %v735_v17 }
  0xd4   : > { %v676_v19 = vpop.f32.mrf.mxu0  ;;  %v692_v21 = vpop.f32.mrf.mxu1 }
  0xd5   : > { %v399_v20 = vadd.f32 %v676_v19, %v822_v18  ;;  %v463_v22 = vadd.f32 %v692_v21, %v822_v18 }
  0xd6   : > { %v390_v23 = vpop.f32.mrf.mxu0  ;;  %v454_v25 = vpop.f32.mrf.mxu1 }
  0xd7   : > { %519 = vst.msk [vmem:[%s827_s27 + $0x10] sm:$0xff] %vm307_vm0, %v399_v20  ;;  %v391_v24 = vadd.f32 %v822_v18, %v390_v23  ;;  %535 = vst.msk [vmem:[%s827_s27 + $0x90] sm:$0xff] %vm307_vm0, %v463_v22  ;;  %v455_v26 = vadd.f32 %v822_v18, %v454_v25 }
  0xd8   : > { %v677_v27 = vpop.f32.mrf.mxu0  ;;  %v693_v29 = vpop.f32.mrf.mxu1 }
  0xd9   : > { %517 = vst.msk [vmem:[%s827_s27] sm:$0xff] %vm307_vm0, %v391_v24  ;;  %v402_v28 = vadd.f32 %v677_v27, %v822_v18  ;;  %533 = vst.msk [vmem:[%s827_s27 + $0x80] sm:$0xff] %vm307_vm0, %v455_v26  ;;  %v466_v30 = vadd.f32 %v693_v29, %v822_v18 }
  0xda   : > { %v393_v31 = vpop.f32.mrf.mxu0  ;;  %v457_v33 = vpop.f32.mrf.mxu1 }
  0xdb   : > { %520 = vst.msk [vmem:[%s827_s27 + $0x18] sm:$0xff] %vm307_vm0, %v402_v28  ;;  %v394_v32 = vadd.f32 %v822_v18, %v393_v31  ;;  %536 = vst.msk [vmem:[%s827_s27 + $0x98] sm:$0xff] %vm307_vm0, %v466_v30  ;;  %v458_v34 = vadd.f32 %v822_v18, %v457_v33 }
  0xdc   : > { %v680_v35 = vpop.f32.mrf.mxu0  ;;  %v696_v37 = vpop.f32.mrf.mxu1 }
  0xdd   : > { %518 = vst.msk [vmem:[%s827_s27 + $0x8] sm:$0xff] %vm307_vm0, %v394_v32  ;;  %v415_v36 = vadd.f32 %v680_v35, %v822_v18  ;;  %534 = vst.msk [vmem:[%s827_s27 + $0x88] sm:$0xff] %vm307_vm0, %v458_v34  ;;  %v479_v38 = vadd.f32 %v696_v37, %v822_v18 }
  0xde   : > { %v406_v39 = vpop.f32.mrf.mxu0  ;;  %v470_v41 = vpop.f32.mrf.mxu1 }
  0xdf   : > { %523 = vst.msk [vmem:[%s827_s27 + $0x30] sm:$0xff] %vm307_vm0, %v415_v36  ;;  %v407_v40 = vadd.f32 %v822_v18, %v406_v39  ;;  %539 = vst.msk [vmem:[%s827_s27 + $0xb0] sm:$0xff] %vm307_vm0, %v479_v38  ;;  %v471_v42 = vadd.f32 %v822_v18, %v470_v41 }
  0xe0   : > { %v681_v43 = vpop.f32.mrf.mxu0  ;;  %v697_v45 = vpop.f32.mrf.mxu1 }
  0xe1   : > { %521 = vst.msk [vmem:[%s827_s27 + $0x20] sm:$0xff] %vm307_vm0, %v407_v40  ;;  %v418_v44 = vadd.f32 %v681_v43, %v822_v18  ;;  %537 = vst.msk [vmem:[%s827_s27 + $0xa0] sm:$0xff] %vm307_vm0, %v471_v42  ;;  %v482_v46 = vadd.f32 %v697_v45, %v822_v18 }
  0xe2   : > { %v409_v47 = vpop.f32.mrf.mxu0  ;;  %v473_v49 = vpop.f32.mrf.mxu1 }
  0xe3   : > { %524 = vst.msk [vmem:[%s827_s27 + $0x38] sm:$0xff] %vm307_vm0, %v418_v44  ;;  %v410_v48 = vadd.f32 %v822_v18, %v409_v47  ;;  %540 = vst.msk [vmem:[%s827_s27 + $0xb8] sm:$0xff] %vm307_vm0, %v482_v46  ;;  %v474_v50 = vadd.f32 %v822_v18, %v473_v49 }
  0xe4   : > { %v684_v51 = vpop.f32.mrf.mxu0  ;;  %v700_v53 = vpop.f32.mrf.mxu1 }
  0xe5   : > { %522 = vst.msk [vmem:[%s827_s27 + $0x28] sm:$0xff] %vm307_vm0, %v410_v48  ;;  %v431_v52 = vadd.f32 %v684_v51, %v822_v18  ;;  %538 = vst.msk [vmem:[%s827_s27 + $0xa8] sm:$0xff] %vm307_vm0, %v474_v50  ;;  %v495_v54 = vadd.f32 %v700_v53, %v822_v18 }
  0xe6   : > { %v422_v55 = vpop.f32.mrf.mxu0  ;;  %v486_v57 = vpop.f32.mrf.mxu1 }
  0xe7   : > { %527 = vst.msk [vmem:[%s827_s27 + $0x50] sm:$0xff] %vm307_vm0, %v431_v52  ;;  %v423_v56 = vadd.f32 %v822_v18, %v422_v55  ;;  %543 = vst.msk [vmem:[%s827_s27 + $0xd0] sm:$0xff] %vm307_vm0, %v495_v54  ;;  %v487_v58 = vadd.f32 %v822_v18, %v486_v57 }
  0xe8   : > { %v685_v59 = vpop.f32.mrf.mxu0  ;;  %v701_v61 = vpop.f32.mrf.mxu1 }
  0xe9   : > { %525 = vst.msk [vmem:[%s827_s27 + $0x40] sm:$0xff] %vm307_vm0, %v423_v56  ;;  %v434_v60 = vadd.f32 %v685_v59, %v822_v18  ;;  %541 = vst.msk [vmem:[%s827_s27 + $0xc0] sm:$0xff] %vm307_vm0, %v487_v58  ;;  %v498_v62 = vadd.f32 %v701_v61, %v822_v18 }
  0xea   : > { %v425_v63 = vpop.f32.mrf.mxu0  ;;  %v489_v1 = vpop.f32.mrf.mxu1 }
  0xeb   : > { %528 = vst.msk [vmem:[%s827_s27 + $0x58] sm:$0xff] %vm307_vm0, %v434_v60  ;;  %v426_v0 = vadd.f32 %v822_v18, %v425_v63  ;;  %544 = vst.msk [vmem:[%s827_s27 + $0xd8] sm:$0xff] %vm307_vm0, %v498_v62  ;;  %v490_v2 = vadd.f32 %v822_v18, %v489_v1 }
  0xec   : > { %v688_v3 = vpop.f32.mrf.mxu0  ;;  %v704_v5 = vpop.f32.mrf.mxu1 }
  0xed   : > { %526 = vst.msk [vmem:[%s827_s27 + $0x48] sm:$0xff] %vm307_vm0, %v426_v0  ;;  %v447_v4 = vadd.f32 %v688_v3, %v822_v18  ;;  %542 = vst.msk [vmem:[%s827_s27 + $0xc8] sm:$0xff] %vm307_vm0, %v490_v2  ;;  %v511_v6 = vadd.f32 %v704_v5, %v822_v18 }
  0xee   : > { %v438_v7 = vpop.f32.mrf.mxu0  ;;  %v502_v9 = vpop.f32.mrf.mxu1 }
  0xef   : > { %531 = vst.msk [vmem:[%s827_s27 + $0x70] sm:$0xff] %vm307_vm0, %v447_v4  ;;  %v439_v8 = vadd.f32 %v822_v18, %v438_v7  ;;  %547 = vst.msk [vmem:[%s827_s27 + $0xf0] sm:$0xff] %vm307_vm0, %v511_v6  ;;  %v503_v10 = vadd.f32 %v822_v18, %v502_v9 }
  0xf0   : > { %v689_v11 = vpop.f32.mrf.mxu0  ;;  %v705_v13 = vpop.f32.mrf.mxu1 }
  0xf1   : > { %529 = vst.msk [vmem:[%s827_s27 + $0x60] sm:$0xff] %vm307_vm0, %v439_v8  ;;  %v450_v12 = vadd.f32 %v689_v11, %v822_v18  ;;  %545 = vst.msk [vmem:[%s827_s27 + $0xe0] sm:$0xff] %vm307_vm0, %v503_v10  ;;  %v514_v14 = vadd.f32 %v705_v13, %v822_v18 }
  0xf2   : > { %v441_v15 = vpop.f32.mrf.mxu0  ;;  %v505_v17 = vpop.f32.mrf.mxu1 }
  0xf3   : > { %532 = vst.msk [vmem:[%s827_s27 + $0x78] sm:$0xff] %vm307_vm0, %v450_v12  ;;  %v442_v16 = vadd.f32 %v822_v18, %v441_v15  ;;  %548 = vst.msk [vmem:[%s827_s27 + $0xf8] sm:$0xff] %vm307_vm0, %v514_v14  ;;  %v506_v19 = vadd.f32 %v822_v18, %v505_v17 }
  0xf5   : > { %530 = vst.msk [vmem:[%s827_s27 + $0x68] sm:$0xff] %vm307_vm0, %v442_v16  ;;  %546 = vst.msk [vmem:[%s827_s27 + $0xe8] sm:$0xff] %vm307_vm0, %v506_v19 }
  0xf6 PF: > { %s13_s12 = sadd.s32 1, %s742_s12  }
  0xf7   : > { %p10_p4 = scmp.ge.s32.totalorder %s13_s12, 4  }
  0xf9   :  { %12 = sbr.rel (!%p10_p4) target bundleno = 1 (0x1), region = 62 }

// kernel: _lambda_.9
= control target key start
LH: loop header
LB: loop body
LE: loop exit
PB: predicated region body
PF: predicated region fallthrough
CT: control target
= control target key end

     0   :  { %s2393_s12 = smov 0   ;;  %s2395_s13 = smov 0   ;;  %s2865_s0 = inlined_call_operand.vmem [shape: bf16[2,18,576], index: 0, kind: input, shape index: {}]   ;;  %s2866_s1 = inlined_call_operand.vmem [shape: bf16[3,576,128], index: 1, kind: input, shape index: {}]   ;;  %s2867_s2 = inlined_call_operand.vmem [shape: f32[16,128], index: 2, kind: input, shape index: {}]   ;;  %s2868_s3 = inlined_call_operand.vmem [shape: bf16[2,16,128], index: 3, kind: output, shape index: {}]  }
   0x1   :  { %s2397_s14 = smov 0  }
   0x2 LB: > { %s25_s15 = sadd.s32 1, %s2365_s13  ;;  %p1728_p0 = scmp.ge.s32.totalorder %s2369_s14, 1  ;;  %s2369_s14 = sphi %s2397_s14, %s13_s14   ;;  %s2365_s13 = sphi %s2395_s13, %s2870_s13   ;;  %s2361_s12 = sphi %s2393_s12, %s2869_s12  }
   0x3   : > { %p27_p1 = scmp.ge.s32.totalorder %s25_s15, 2  ;;  %p162_p2 = scmp.lt.s32.totalorder %s2369_s14, 3 }
   0x5   : > { %s2872_s15 = smov (%p27_p1, %s25_s15), 0  ;;  %p163_p3 = pnand %p1728_p0, %p162_p2 }
   0x6   : > { %p195_p4 = scmp.lt.s32.totalorder (!%p163_p3), %s2361_s12, 1 }
   0x7   : > { %166 = sbr.rel (%p163_p3) target bundleno = 350 (0x15e), region = 32 }
   0xc   : > { %v2224_v0 = vld [vmem:[%s2866_s1 + $0x198] sm:$0xff]   ;;  %v2228_v4 = vld [vmem:[%s2866_s1 + $0x190] sm:$0xff]   ;;  %v2232_v8 = vld [vmem:[%s2866_s1 + $0x188] sm:$0xff]   ;;  %s2874_s12 = smov (!%p195_p4, %s2361_s12), 1  ;;  %vm405_vm0 = vsmask.f32 7424 }
   0xd   : > { %v2225_v1 = vld [vmem:[%s2866_s1 + $0x218] sm:$0xff]   ;;  %2014 = vmatprep.subr.bf16.mxu0 %v2224_v0  ;;  %v2229_v5 = vld [vmem:[%s2866_s1 + $0x210] sm:$0xff]   ;;  %v2233_v9 = vld [vmem:[%s2866_s1 + $0x208] sm:$0xff]   ;;  %s2197_s22 = smul.u32 60, %s2874_s12  ;;  %v2371_v46 = vmov 0.0   ;;  %vm2372_vm1 = vmmov 0  }
   0xe   : > { %v2226_v2 = vld [vmem:[%s2866_s1 + $0x158] sm:$0xff]   ;;  %2036 = vmatprep.subr.bf16.mxu1 %v2225_v1  ;;  %v2230_v6 = vld [vmem:[%s2866_s1 + $0x150] sm:$0xff]   ;;  %v2234_v10 = vld [vmem:[%s2866_s1 + $0x148] sm:$0xff]   ;;  %vm686_vm2 = vcmask 523264   ;;  %vm1247_vm3 = vcmask 1046528   ;;  %s2006_s16 = sshll.u32 %s2874_s12, 3 }
   0xf   : > { %v2227_v3 = vld [vmem:[%s2866_s1 + $0x1d8] sm:$0xff]   ;;  %2015 = vmatpush3.bf16.msra.mxu0 %v2226_v2  ;;  %v2231_v7 = vld [vmem:[%s2866_s1 + $0x1d0] sm:$0xff]   ;;  %v2235_v11 = vld [vmem:[%s2866_s1 + $0x1c8] sm:$0xff]   ;;  %s2511_s6 = scalar_lea.vmem %s2865_s0, %s2197_s22  ;;  %s214_s19 = scalar_lea.vmem %s2868_s3, %s2006_s16 }
  0x10   : > { %2037 = vmatpush3.bf16.msra.mxu1 %v2227_v3  ;;  %2016 = vmatprep.subr.bf16.mxu0 %v2228_v4  ;;  %v2236_v12 = vld [vmem:[%s2866_s1 + $0x180] sm:$0xff]   ;;  %v2240_v16 = vld [vmem:[%s2866_s1 + $0x178] sm:$0xff]   ;;  %v2244_v20 = vld [vmem:[%s2866_s1 + $0x170] sm:$0xff]  }
  0x11   : > { %2038 = vmatprep.subr.bf16.mxu1 %v2229_v5  ;;  %v2237_v13 = vld [vmem:[%s2866_s1 + $0x200] sm:$0xff]   ;;  %v2241_v17 = vld [vmem:[%s2866_s1 + $0x1f8] sm:$0xff]   ;;  %v2245_v21 = vld [vmem:[%s2866_s1 + $0x1f0] sm:$0xff]  }
  0x12   : > { %v2238_v14 = vld [vmem:[%s2866_s1 + $0x140] sm:$0xff]   ;;  %v2242_v18 = vld [vmem:[%s2866_s1 + $0x138] sm:$0xff]   ;;  %v2246_v22 = vld [vmem:[%s2866_s1 + $0x130] sm:$0xff]  }
  0x13   : > { %2017 = vmatpush3.bf16.msra.mxu0 %v2230_v6  ;;  %v2239_v15 = vld [vmem:[%s2866_s1 + $0x1c0] sm:$0xff]   ;;  %v2243_v19 = vld [vmem:[%s2866_s1 + $0x1b8] sm:$0xff]   ;;  %v2247_v23 = vld [vmem:[%s2866_s1 + $0x1b0] sm:$0xff]  }
  0x14   : > { %2039 = vmatpush3.bf16.msra.mxu1 %v2231_v7  ;;  %2018 = vmatprep.subr.bf16.mxu0 %v2232_v8  ;;  %v2248_v24 = vld [vmem:[%s2866_s1 + $0x168] sm:$0xff]   ;;  %v2252_v28 = vld [vmem:[%s2866_s1 + $0x160] sm:$0xff]   ;;  %v2521_v33 = vld [vmem:[%s2511_s6 + $0x14] sm:$0xff] }
  0x15   : > { %2040 = vmatprep.subr.bf16.mxu1 %v2233_v9  ;;  %v2249_v25 = vld [vmem:[%s2866_s1 + $0x1e8] sm:$0xff]   ;;  %v2253_v29 = vld [vmem:[%s2866_s1 + $0x1e0] sm:$0xff]   ;;  %v296_v39 = vld [vmem:[%s2511_s6 + $0x30] sm:$0x11] }
  0x16   : > { %v2250_v26 = vld [vmem:[%s2866_s1 + $0x128] sm:$0xff]   ;;  %v2254_v30 = vld [vmem:[%s2866_s1 + $0x120] sm:$0xff]   ;;  %v2540_v43 = vcombine.high %v296_v39, %v296_v39  ;;  %v2545_v45 = vcombine.low %v296_v39, %v296_v39  ;;  %v2264_v47 = vld [vmem:[%s2866_s1 + $0x78] sm:$0xff]  }
  0x17   : > { %2019 = vmatpush3.bf16.msra.mxu0 %v2234_v10  ;;  %v2251_v27 = vld [vmem:[%s2866_s1 + $0x1a8] sm:$0xff]   ;;  %v2255_v31 = vld [vmem:[%s2866_s1 + $0x1a0] sm:$0xff]   ;;  %v2265_v6 = vld [vmem:[%s2866_s1 + $0x238] sm:$0xff]  }
  0x18   : > { %2041 = vmatpush3.bf16.msra.mxu1 %v2235_v11  ;;  %2020 = vmatprep.subr.bf16.mxu0 %v2236_v12  ;;  %v217_v32 = vld [vmem:[%s2511_s6] sm:$0xff]  ;;  %v295_v34 = vld [vmem:[%s2511_s6 + $0x28] sm:$0x11]  ;;  %v450_v54 = vshll.u32 %v2540_v43, 16  ;;  %v438_v2 = vshll.u32 %v2545_v45, 16  ;;  %v2266_v12 = vld [vmem:[%s2866_s1 + $0x38] sm:$0xff]  }
  0x19   : > { %2042 = vmatprep.subr.bf16.mxu1 %v2237_v13  ;;  %v1805_v35 = vcombine.high %v217_v32, %v2521_v33  ;;  %v2525_v36 = vcombine.high %v295_v34, %v295_v34  ;;  %v218_v37 = vld [vmem:[%s2511_s6 + $0x8] sm:$0xff]  ;;  %v2529_v38 = vld [vmem:[%s2511_s6 + $0x1c] sm:$0xff]  ;;  %v2533_v40 = vcombine.low %v217_v32, %v2521_v33  ;;  %v2535_v41 = vcombine.low %v295_v34, %v295_v34  ;;  %v2267_v13 = vld [vmem:[%s2866_s1 + $0x70] sm:$0xff]  }
  0x1a   : > { %v2538_v42 = vcombine.high %v218_v37, %v2529_v38  ;;  %v2543_v44 = vcombine.low %v218_v37, %v2529_v38  ;;  %v452_v61 = vrot.slane %v450_v54, 1  ;;  %v440_v8 = vrot.slane %v438_v2, 1  ;;  %v2278_v34 = vld [vmem:[%s2866_s1 + $0x58] sm:$0xff]   ;;  %v2283_v39 = vld [vmem:[%s2866_s1 + $0xf0] sm:$0xff]   ;;  %v2291_v54 = vld [vmem:[%s2866_s1 + $0xe0] sm:$0xff]  }
  0x1b   : > { %2021 = vmatpush3.bf16.msra.mxu0 %v2238_v14  ;;  %v419_v48 = vshrl.u32 %v1805_v35, 16  ;;  %v421_v49 = vshll.u32 %v1805_v35, 16  ;;  %v426_v50 = vshll.u32 %v2525_v36, 16  ;;  %v407_v51 = vshrl.u32 %v2533_v40, 16  ;;  %v2281_v37 = vld [vmem:[%s2866_s1 + $0xb8] sm:$0xff]   ;;  %v2303_v2 = vld [vmem:[%s2866_s1 + $0xc0] sm:$0xff]  }
  0x1c   : > { %2043 = vmatpush3.bf16.msra.mxu1 %v2239_v15  ;;  %2022 = vmatprep.subr.bf16.mxu0 %v2240_v16  ;;  %v443_v52 = vshrl.u32 %v2538_v42, 16  ;;  %v445_v53 = vshll.u32 %v2538_v42, 16  ;;  %v409_v55 = vshll.u32 %v2533_v40, 16  ;;  %v414_v58 = vshll.u32 %v2535_v41, 16  ;;  %v2268_v15 = vld [vmem:[%s2866_s1 + $0x230] sm:$0xff]  }
  0x1d   : > { %2044 = vmatprep.subr.bf16.mxu1 %v2241_v17  ;;  %v423_v56 = vrot.slane %v421_v49, 1  ;;  %v428_v57 = vrot.slane %v426_v50, 1  ;;  %v431_v59 = vshrl.u32 %v2543_v44, 16  ;;  %v433_v63 = vshll.u32 %v2543_v44, 16  ;;  %v2269_v16 = vld [vmem:[%s2866_s1 + $0x30] sm:$0xff]   ;;  %v2270_v17 = vld [vmem:[%s2866_s1 + $0x68] sm:$0xff]  }
  0x1e   : > { %v447_v60 = vrot.slane %v445_v53, 1  ;;  %v411_v62 = vrot.slane %v409_v55, 1  ;;  %v416_v1 = vrot.slane %v414_v58, 1  ;;  %v2282_v49 = vld [vmem:[%s2866_s1 + $0x50] sm:$0xff]   ;;  %v2286_v53 = vld [vmem:[%s2866_s1 + $0x48] sm:$0xff]   ;;  %v2294_v58 = vld [vmem:[%s2866_s1 + $0xd8] sm:$0xff]  }
  0x1f   : > { %2023 = vmatpush3.bf16.msra.mxu0 %v2242_v18  ;;  %v424_v0 = vor.u32 %v423_v56, %v419_v48  ;;  %v435_v5 = vrot.slane %v433_v63, 1  ;;  %v2271_v18 = vld [vmem:[%s2866_s1 + $0x228] sm:$0xff]   ;;  %v2280_v48 = vld [vmem:[%s2866_s1 + $0x18] sm:$0xff]   ;;  %v2285_v50 = vld [vmem:[%s2866_s1 + $0xb0] sm:$0xff]  }
  0x20   : > { %2045 = vmatpush3.bf16.msra.mxu1 %v2243_v19  ;;  %2024 = vmatprep.subr.bf16.mxu0 %v2244_v20  ;;  %v448_v3 = vor.u32 %v447_v60, %v443_v52  ;;  %v412_v4 = vor.u32 %v411_v62, %v407_v51  ;;  %v2272_v19 = vld [vmem:[%s2866_s1 + $0x28] sm:$0xff]   ;;  %v219_v20 = vld [vmem:[%s2511_s6 + $0x10] sm:$0xf]  ;;  %v2290_v56 = vld [vmem:[%s2866_s1 + $0x40] sm:$0xff]  }
  0x21   : > { %2046 = vmatprep.subr.bf16.mxu1 %v2245_v21  ;;  %v429_v7 = vsel %vm405_vm0, %v424_v0, %v428_v57  ;;  %v436_v11 = vor.u32 %v435_v5, %v431_v59  ;;  %v2595_v21 = vld [vmem:[%s2511_s6 + $0x24] sm:$0xf]  ;;  %v2287_v51 = vld [vmem:[%s2866_s1 + $0xe8] sm:$0xff]   ;;  %v2284_v52 = vld [vmem:[%s2866_s1 + $0x10] sm:$0xff]  }
  0x22   : > { %722 = vmatprep.mubr.bf16.mxu0 %v429_v7  ;;  %v453_v9 = vsel %vm405_vm0, %v448_v3, %v452_v61  ;;  %v417_v10 = vsel %vm405_vm0, %v412_v4, %v416_v1  ;;  %v2288_v55 = vld [vmem:[%s2866_s1 + $0x8] sm:$0xff]   ;;  %v2293_v57 = vld [vmem:[%s2866_s1 + $0xa0] sm:$0xff]   ;;  %v2295_v60 = vld [vmem:[%s2866_s1 + $0x98] sm:$0xff]  }
  0x23   : > { %2025 = vmatpush3.bf16.msra.mxu0 %v2246_v22  ;;  %763 = vmatprep.mubr.bf16.mxu1 %v453_v9  ;;  %v441_v14 = vsel %vm405_vm0, %v436_v11, %v440_v8  ;;  %v2273_v22 = vld [vmem:[%s2866_s1 + $0x60] sm:$0xff]   ;;  %v2297_v61 = vld [vmem:[%s2866_s1 + $0xd0] sm:$0xff]   ;;  %v2296_v62 = vld [vmem:[%s2866_s1 + $0x118] sm:$0xff]  }
  0x24   : > { %2047 = vmatpush3.bf16.msra.mxu1 %v2247_v23  ;;  %2026 = vmatprep.subr.bf16.mxu0 %v2248_v24  ;;  %v2601_v23 = vcombine.low %v219_v20, %v2595_v21  ;;  %v2604_v24 = vld [vmem:[%s2511_s6 + $0x38] ss:$0 sps:$4 sm:$0x11]   ;;  %v2292_v59 = vld [vmem:[%s2866_s1] sm:$0xff]   ;;  %v2298_v63 = vld [vmem:[%s2866_s1 + $0x90] sm:$0xff]  }
  0x25   : > { %2048 = vmatprep.subr.bf16.mxu1 %v2249_v25  ;;  %v2274_v25 = vld [vmem:[%s2866_s1 + $0x220] sm:$0xff]   ;;  %v2300_v0 = vld [vmem:[%s2866_s1 + $0xc8] sm:$0xff]   ;;  %v2299_v1 = vld [vmem:[%s2866_s1 + $0x110] sm:$0xff]  }
  0x26   : > { %v2302_v3 = vld [vmem:[%s2866_s1 + $0x108] sm:$0xff]   ;;  %v2304_v4 = vld [vmem:[%s2866_s1 + $0x80] sm:$0xff]   ;;  %v2306_v5 = vld [vmem:[%s2866_s1 + $0x2b8] sm:$0xff]  }
  0x27   : > { %2027 = vmatpush3.bf16.msra.mxu0 %v2250_v26  ;;  %v455_v26 = vshrl.u32 %v2601_v23, 16  ;;  %v2307_v7 = vld [vmem:[%s2866_s1 + $0x338] sm:$0xff]   ;;  %v2310_v9 = vld [vmem:[%s2866_s1 + $0x2b0] sm:$0xff]  }
  0x28   : > { %2049 = vmatpush3.bf16.msra.mxu1 %v2251_v27  ;;  %2028 = vmatprep.subr.bf16.mxu0 %v2252_v28  ;;  %v457_v27 = vshll.u32 %v2601_v23, 16  ;;  %v462_v28 = vshll.u32 %v2604_v24, 16  ;;  %v2308_v8 = vld [vmem:[%s2866_s1 + $0x278] sm:$0xff]   ;;  %v2311_v11 = vld [vmem:[%s2866_s1 + $0x330] sm:$0xff]  }
  0x29   : > { %2050 = vmatprep.subr.bf16.mxu1 %v2253_v29  ;;  %v2279_v29 = vld [vmem:[%s2866_s1 + $0xf8] sm:$0xff]  }
  0x2a   : > { %v464_v32 = vrot.slane %v462_v28, 1  ;;  %v2322_v20 = vld [vmem:[%s2866_s1 + $0x298] sm:$0xff]   ;;  %v2327_v28 = vld [vmem:[%s2866_s1 + $0x310] sm:$0xff]  }
  0x2b   : > { %2029 = vmatpush3.bf16.msra.mxu0 %v2254_v30  ;;  %v2275_v30 = vld [vmem:[%s2866_s1 + $0x20] sm:$0xff]  }
  0x2c   : > { %2051 = vmatpush3.bf16.msra.mxu1 %v2255_v31  ;;  %2161 = vmatprep.subr.bf16.mxu0 %v2371_v46  ;;  %v459_v31 = vrot.slane %v457_v27, 1  ;;  %v2325_v27 = vld [vmem:[%s2866_s1 + $0x2d8] sm:$0xff]  }
  0x2d   : > { %2063 = vmatprep.subr.bf16.mxu1 %v2264_v47 }
  0x2e   : > { %723 = vmatmul.mubr.bf16.vlgmr.msra.gmra.mxu0 %v417_v10  ;;  %v2309_v10 = vld [vmem:[%s2866_s1 + $0x2f8] sm:$0xff]  }
  0x2f   : > { %2162 = vmatpush3.bf16.msra.mxu0 %v2265_v6  ;;  %2169 = vmatprep.mubr.msk.bf16.mxu0 %vm2372_vm1, %v2371_v46  ;;  %v2305_v6 = vld [vmem:[%s2866_s1 + $0x100] sm:$0xff]  }
  0x30   : > { %764 = vmatmul.mubr.bf16.vlgmr.msra.gmra.mxu1 %v441_v14  ;;  %2163 = vmatprep.subr.bf16.mxu0 %v2371_v46  ;;  %v2315_v14 = vld [vmem:[%s2866_s1 + $0x328] sm:$0xff]  }
  0x31   : > { %2064 = vmatpush3.bf16.msra.mxu1 %v2266_v12  ;;  %1067 = vmatprep.mubr.bf16.mxu1 %v1805_v35  ;;  %v460_v35 = vor.u32 %v459_v31, %v455_v26  ;;  %v2312_v12 = vld [vmem:[%s2866_s1 + $0x270] sm:$0xff]  }
  0x32   : > { %2065 = vmatprep.subr.bf16.mxu1 %v2267_v13  ;;  %v2314_v13 = vld [vmem:[%s2866_s1 + $0x2a8] sm:$0xff]   ;;  %v2326_v26 = vld [vmem:[%s2866_s1 + $0x290] sm:$0xff]  }
  0x33   : > { %2164 = vmatpush3.bf16.msra.mxu0 %v2268_v15  ;;  %v465_v47 = vsel %vm405_vm0, %v460_v35, %v464_v32  ;;  %v2316_v15 = vld [vmem:[%s2866_s1 + $0x268] sm:$0xff]   ;;  %v2329_v31 = vld [vmem:[%s2866_s1 + $0x2d0] sm:$0xff]   ;;  %v1158_v32 = vld [vmem:[%s2511_s6] sm:$0xee] }
  0x34   : > { %2165 = vmatprep.subr.bf16.mxu0 %v2371_v46  ;;  %v1159_v35 = vld [vmem:[%s2511_s6 + $0x8] sm:$0xee] }
  0x35   : > { %2066 = vmatpush3.bf16.msra.mxu1 %v2269_v16  ;;  %v2318_v16 = vld [vmem:[%s2866_s1 + $0x2a0] sm:$0xff]  }
  0x36   : > { %2067 = vmatprep.subr.bf16.mxu1 %v2270_v17  ;;  %v2317_v17 = vld [vmem:[%s2866_s1 + $0x2e8] sm:$0xff]  }
  0x37   : > { %2166 = vmatpush3.bf16.msra.mxu0 %v2271_v18  ;;  %v2319_v18 = vld [vmem:[%s2866_s1 + $0x320] sm:$0xff]  }
  0x38   : > { %2167 = vmatprep.subr.bf16.mxu0 %v2371_v46 }
  0x39   : > { %2068 = vmatpush3.bf16.msra.mxu1 %v2272_v19  ;;  %v2320_v19 = vld [vmem:[%s2866_s1 + $0x260] sm:$0xff]  }
  0x3a   : > { %2069 = vmatprep.subr.bf16.mxu1 %v2273_v22  ;;  %v2321_v22 = vld [vmem:[%s2866_s1 + $0x2e0] sm:$0xff]  }
  0x3b   : > { %2168 = vmatpush3.bf16.msra.mxu0 %v2274_v25  ;;  %v2324_v25 = vld [vmem:[%s2866_s1 + $0x258] sm:$0xff]  }
  0x3c   : > { %2085 = vmatprep.subr.bf16.mxu0 %v2279_v29  ;;  %v2328_v29 = vld [vmem:[%s2866_s1 + $0x250] sm:$0xff]  }
  0x3d   : > { %2070 = vmatpush3.bf16.msra.mxu1 %v2275_v30  ;;  %v2330_v30 = vld [vmem:[%s2866_s1 + $0x288] sm:$0xff]  }
  0x3e   : > { %2170 = vmatmul.mubr.msk.bf16.vlgmr.msra.gmra.mxu0 %vm686_vm2, %v465_v47  ;;  %2071 = vmatprep.subr.bf16.mxu1 %v2278_v34  ;;  %v1252_v34 = vrot.slane %v2525_v36, 1  ;;  %v1963_v47 = vcombine.high %v1159_v35, %v2529_v38  ;;  %v1960_v36 = vcombine.low %v1158_v32, %v2521_v33 }
  0x3f   : > { %2086 = vmatpush3.bf16.msra.mxu0 %v2281_v37  ;;  %1108 = vmatprep.mubr.bf16.mxu0 %v2538_v42  ;;  %v2289_v42 = vld [vmem:[%s2866_s1 + $0xa8] sm:$0xff]  }
  0x40   : > { %2087 = vmatprep.subr.bf16.mxu0 %v2283_v39  ;;  %v2331_v37 = vld [vmem:[%s2866_s1 + $0x308] sm:$0xff]   ;;  %v1961_v39 = vcombine.high %v1158_v32, %v2521_v33 }
  0x41   : > { %2072 = vmatpush3.bf16.msra.mxu1 %v2280_v48  ;;  %v1258_v48 = vrot.slane %v2540_v43, 1  ;;  %v2333_v43 = vld [vmem:[%s2866_s1 + $0x2c8] sm:$0xff]  }
  0x42   : > { %2073 = vmatprep.subr.bf16.mxu1 %v2282_v49  ;;  %v2332_v49 = vld [vmem:[%s2866_s1 + $0x248] sm:$0xff]  }
  0x43   : > { %2088 = vmatpush3.bf16.msra.mxu0 %v2285_v50  ;;  %v2334_v50 = vld [vmem:[%s2866_s1 + $0x280] sm:$0xff]  }
  0x44   : > { %2089 = vmatprep.subr.bf16.mxu0 %v2287_v51  ;;  %v1251_v51 = vrot.slane %v1961_v39, 1 }
  0x45   : > { %2074 = vmatpush3.bf16.msra.mxu1 %v2284_v52  ;;  %v1257_v52 = vrot.slane %v1963_v47, 1 }
  0x46   : > { %2075 = vmatprep.subr.bf16.mxu1 %v2286_v53  ;;  %v1962_v53 = vcombine.low %v1159_v35, %v2529_v38  ;;  %v1253_v33 = vsel %vm1247_vm3, %v1251_v51, %v1252_v34  ;;  %v2337_v38 = vld [vmem:[%s2866_s1 + $0x2c0] sm:$0xff]  }
  0x47   : > { %2090 = vmatpush3.bf16.msra.mxu0 %v2289_v42  ;;  %v2335_v42 = vld [vmem:[%s2866_s1 + $0x300] sm:$0xff]  }
  0x48   : > { %2091 = vmatprep.subr.bf16.mxu0 %v2291_v54  ;;  %v1259_v54 = vsel %vm1247_vm3, %v1257_v52, %v1258_v48 }
  0x49   : > { %2076 = vmatpush3.bf16.msra.mxu1 %v2288_v55  ;;  %v2336_v55 = vld [vmem:[%s2866_s1 + $0x240] sm:$0xff]  }
  0x4a   : > { %2077 = vmatprep.subr.bf16.mxu1 %v2290_v56  ;;  %v1248_v56 = vrot.slane %v1960_v36, 1 }
  0x4b   : > { %2092 = vmatpush3.bf16.msra.mxu0 %v2293_v57  ;;  %v1249_v57 = vrot.slane %v2535_v41, 1 }
  0x4c   : > { %2093 = vmatprep.subr.bf16.mxu0 %v2294_v58  ;;  %v1254_v58 = vrot.slane %v1962_v53, 1 }
  0x4d   : > { %2078 = vmatpush3.bf16.msra.mxu1 %v2292_v59  ;;  %v1255_v59 = vrot.slane %v2545_v45, 1  ;;  %v1160_v45 = vld [vmem:[%s2511_s6 + $0x10] sm:$0xe] }
  0x4e   : > { %2173 = vmatprep.subr.bf16.mxu1 %v2371_v46 }
  0x4f   : > { %2094 = vmatpush3.bf16.msra.mxu0 %v2295_v60  ;;  %v1250_v60 = vsel %vm1247_vm3, %v1248_v56, %v1249_v57  ;;  %v1256_v41 = vsel %vm1247_vm3, %v1254_v58, %v1255_v59 }
  0x50   : > { %1068 = vmatmul.mubr.bf16.vlgmr.msra.gmra.mxu1 %v2533_v40  ;;  %2095 = vmatprep.subr.bf16.mxu0 %v2297_v61  ;;  %v2301_v40 = vld [vmem:[%s2866_s1 + $0x88] sm:$0xff]   ;;  %v2342_v61 = vld [vmem:[%s2866_s1 + $0x358] sm:$0xff]  }
  0x51   : > { %2174 = vmatpush3.bf16.msra.mxu1 %v2296_v62  ;;  %2181 = vmatprep.mubr.msk.bf16.mxu1 %vm2372_vm1, %v2371_v46  ;;  %v2343_v62 = vld [vmem:[%s2866_s1 + $0x350] sm:$0xff]  }
  0x52   : > { %2175 = vmatprep.subr.bf16.mxu1 %v2371_v46 }
  0x53   : > { %2096 = vmatpush3.bf16.msra.mxu0 %v2298_v63  ;;  %v2344_v63 = vld [vmem:[%s2866_s1 + $0x348] sm:$0xff]  }
  0x54   : > { %2097 = vmatprep.subr.bf16.mxu0 %v2300_v0  ;;  %v1964_v0 = vcombine.low %v1160_v45, %v2595_v21 }
  0x55   : > { %2176 = vmatpush3.bf16.msra.mxu1 %v2299_v1  ;;  %v2345_v1 = vld [vmem:[%s2866_s1 + $0x340] sm:$0xff]  }
  0x56   : > { %2177 = vmatprep.subr.bf16.mxu1 %v2371_v46 }
  0x57   : > { %2098 = vmatpush3.bf16.msra.mxu0 %v2301_v40  ;;  %v1260_v40 = vrot.slane %v1964_v0, 1  ;;  %v1611_v0 = vld [vmem:[%s2867_s2] sm:$0xff] }
  0x58   : > { %2099 = vmatprep.subr.bf16.mxu0 %v2303_v2  ;;  %v1261_v2 = vrot.slane %v2604_v24, 1 }
  0x59   : > { %2178 = vmatpush3.bf16.msra.mxu1 %v2302_v3 }
  0x5a   : > { %2179 = vmatprep.subr.bf16.mxu1 %v2371_v46  ;;  %v1262_v3 = vsel %vm1247_vm3, %v1260_v40, %v1261_v2 }
  0x5b   : > { %2100 = vmatpush3.bf16.msra.mxu0 %v2304_v4 }
  0x5c   : > { %2112 = vmatprep.subr.bf16.mxu0 %v2306_v5 }
  0x5d   : > { %2180 = vmatpush3.bf16.msra.mxu1 %v2305_v6 }
  0x5e   : > { %1109 = vmatmul.mubr.bf16.vlgmr.msra.gmra.mxu0 %v2543_v44  ;;  %2134 = vmatprep.subr.bf16.mxu1 %v2307_v7  ;;  %v2313_v44 = vld [vmem:[%s2866_s1 + $0x2f0] sm:$0xff]  }
  0x5f   : > { %2113 = vmatpush3.bf16.msra.mxu0 %v2308_v8  ;;  %1518 = vmatprep.mubr.bf16.mxu0 %v1253_v33 }
  0x60   : > { %2182 = vmatmul.mubr.msk.bf16.vlgmr.msra.gmra.mxu1 %vm686_vm2, %v2601_v23  ;;  %2114 = vmatprep.subr.bf16.mxu0 %v2310_v9  ;;  %v2323_v23 = vld [vmem:[%s2866_s1 + $0x318] sm:$0xff]  }
  0x61   : > { %2135 = vmatpush3.bf16.msra.mxu1 %v2309_v10  ;;  %1559 = vmatprep.mubr.bf16.mxu1 %v1259_v54 }
  0x62   : > { %2136 = vmatprep.subr.bf16.mxu1 %v2311_v11 }
  0x63   : > { %2115 = vmatpush3.bf16.msra.mxu0 %v2312_v12 }
  0x64   : > { %2116 = vmatprep.subr.bf16.mxu0 %v2314_v13 }
  0x65   : > { %2137 = vmatpush3.bf16.msra.mxu1 %v2313_v44 }
  0x66   : > { %2138 = vmatprep.subr.bf16.mxu1 %v2315_v14 }
  0x67   : > { %2117 = vmatpush3.bf16.msra.mxu0 %v2316_v15 }
  0x68   : > { %2118 = vmatprep.subr.bf16.mxu0 %v2318_v16 }
  0x69   : > { %2139 = vmatpush3.bf16.msra.mxu1 %v2317_v17 }
  0x6a   : > { %2140 = vmatprep.subr.bf16.mxu1 %v2319_v18 }
  0x6b   : > { %2119 = vmatpush3.bf16.msra.mxu0 %v2320_v19 }
  0x6c   : > { %2120 = vmatprep.subr.bf16.mxu0 %v2322_v20 }
  0x6d   : > { %2141 = vmatpush3.bf16.msra.mxu1 %v2321_v22 }
  0x6e   : > { %2142 = vmatprep.subr.bf16.mxu1 %v2323_v23 }
  0x6f   : > { %2121 = vmatpush3.bf16.msra.mxu0 %v2324_v25 }
  0x70   : > { %2122 = vmatprep.subr.bf16.mxu0 %v2326_v26 }
  0x71   : > { %2143 = vmatpush3.bf16.msra.mxu1 %v2325_v27 }
  0x72   : > { %2144 = vmatprep.subr.bf16.mxu1 %v2327_v28 }
  0x73   : > { %2123 = vmatpush3.bf16.msra.mxu0 %v2328_v29 }
  0x74   : > { %2124 = vmatprep.subr.bf16.mxu0 %v2330_v30 }
  0x75   : > { %2145 = vmatpush3.bf16.msra.mxu1 %v2329_v31 }
  0x76   : > { %2146 = vmatprep.subr.bf16.mxu1 %v2331_v37 }
  0x77   : > { %2125 = vmatpush3.bf16.msra.mxu0 %v2332_v49 }
  0x78   : > { %2126 = vmatprep.subr.bf16.mxu0 %v2334_v50 }
  0x79   : > { %2147 = vmatpush3.bf16.msra.mxu1 %v2333_v43 }
  0x7a   : > { %2148 = vmatprep.subr.bf16.mxu1 %v2335_v42 }
  0x7b   : > { %2127 = vmatpush3.bf16.msra.mxu0 %v2336_v55 }
  0x7c   : > { %2185 = vmatprep.subr.bf16.mxu0 %v2371_v46 }
  0x7d   : > { %2149 = vmatpush3.bf16.msra.mxu1 %v2337_v38 }
  0x7e   : > { %1519 = vmatmul.mubr.bf16.vlgmr.msra.gmra.mxu0 %v1250_v60 }
  0x7f   : > { %2186 = vmatpush3.bf16.msra.mxu0 %v2342_v61  ;;  %2193 = vmatprep.mubr.msk.bf16.mxu0 %vm2372_vm1, %v2371_v46 }
  0x80   : > { %1560 = vmatmul.mubr.bf16.vlgmr.msra.gmra.mxu1 %v1256_v41  ;;  %2187 = vmatprep.subr.bf16.mxu0 %v2371_v46 }
  0x83   : > { %2188 = vmatpush3.bf16.msra.mxu0 %v2343_v62 }
  0x84   : > { %2189 = vmatprep.subr.bf16.mxu0 %v2371_v46 }
  0x87   : > { %2190 = vmatpush3.bf16.msra.mxu0 %v2344_v63 }
  0x88   : > { %2191 = vmatprep.subr.bf16.mxu0 %v2371_v46 }
  0x8b   : > { %2192 = vmatpush3.bf16.msra.mxu0 %v2345_v1 }
  0x8e   : > { %2194 = vmatmul.mubr.msk.bf16.vlgmr.msra.gmra.mxu0 %vm686_vm2, %v1262_v3  ;;  %v1612_v3 = vld [vmem:[%s2867_s2 + $0x8] sm:$0xff] }
  0xee   : > { %v2030_v4 = vpop.f32.mrf.mxu0 }
  0xf0   : > { %v2052_v5 = vpop.f32.mrf.mxu1  ;;  %v2031_v21 = vpop.f32.mrf.mxu0 }
  0xf1   : > { %v2032_v6 = vadd.f32 %v2031_v21, %v2030_v4 }
  0xf2   : > { %v2053_v7 = vpop.f32.mrf.mxu1  ;;  %v2033_v8 = vpop.f32.mrf.mxu0 }
  0xf3   : > { %v2054_v12 = vadd.f32 %v2053_v7, %v2052_v5 }
  0xf4   : > { %v2034_v9 = vpop.f32.mrf.mxu0  ;;  %v2055_v11 = vpop.f32.mrf.mxu1 }
  0xf5   : > { %v2035_v10 = vadd.f32 %v2034_v9, %v2033_v8  ;;  %v766_v24 = vadd.f32 %v2054_v12, %v2032_v6 }
  0xf6   : > { %v2056_v13 = vpop.f32.mrf.mxu1 }
  0xf7   : > { %v2057_v44 = vadd.f32 %v2056_v13, %v2055_v11 }
  0xf9   : > { %v769_v16 = vadd.f32 %v2057_v44, %v2035_v10 }
  0xfe   : > { %v806_v14 = vpop.f32.mrf.mxu0 }
  0xff   : > { %v807_v46 = vadd.f32 %v806_v14, %v766_v24 }
 0x100   : > { %v2171_v15 = vpop.f32.mrf.mxu0 }
 0x102   : > { %v809_v17 = vpop.f32.mrf.mxu0 }
 0x103   : > { %v810_v18 = vadd.f32 %v809_v17, %v769_v16 }
 0x104   : > { %v2172_v19 = vpop.f32.mrf.mxu0 }
 0x110   : > { %v2079_v20 = vpop.f32.mrf.mxu1 }
 0x112   : > { %v2080_v22 = vpop.f32.mrf.mxu1 }
 0x113   : > { %v2081_v48 = vadd.f32 %v2080_v22, %v2079_v20 }
 0x114   : > { %v2082_v23 = vpop.f32.mrf.mxu1 }
 0x115   : > { %v1070_v51 = vadd.f32 %v2081_v48, %v807_v46 }
 0x116   : > { %v2083_v25 = vpop.f32.mrf.mxu1 }
 0x117   : > { %v2084_v52 = vadd.f32 %v2083_v25, %v2082_v23 }
 0x119   : > { %v1073_v56 = vadd.f32 %v2084_v52, %v810_v18 }
 0x11e   : > { %v2101_v30 = vpop.f32.mrf.mxu0 }
 0x120   : > { %v1151_v26 = vpop.f32.mrf.mxu1  ;;  %v2102_v31 = vpop.f32.mrf.mxu0 }
 0x121   : > { %v2103_v50 = vadd.f32 %v2102_v31, %v2101_v30 }
 0x122   : > { %v2183_v27 = vpop.f32.mrf.mxu1  ;;  %v2104_v32 = vpop.f32.mrf.mxu0 }
 0x123   : > { %v1111_v54 = vadd.f32 %v2103_v50, %v1070_v51 }
 0x124   : > { %v1154_v28 = vpop.f32.mrf.mxu1  ;;  %v2105_v34 = vpop.f32.mrf.mxu0 }
 0x125   : > { %v2106_v55 = vadd.f32 %v2105_v34, %v2104_v32  ;;  %v1152_v60 = vadd.f32 %v1151_v26, %v1111_v54 }
 0x126   : > { %v2184_v29 = vpop.f32.mrf.mxu1 }
 0x127   : > { %v1114_v61 = vadd.f32 %v2106_v55, %v1073_v56 }
 0x129   : > { %v1155_v40 = vadd.f32 %v1154_v28, %v1114_v61 }
 0x13e   : > { %v2128_v35 = vpop.f32.mrf.mxu0 }
 0x140   : > { %v2150_v37 = vpop.f32.mrf.mxu1  ;;  %v2129_v39 = vpop.f32.mrf.mxu0 }
 0x141   : > { %v2130_v43 = vadd.f32 %v2129_v39, %v2128_v35 }
 0x142   : > { %v2151_v47 = vpop.f32.mrf.mxu1  ;;  %v2131_v49 = vpop.f32.mrf.mxu0 }
 0x143   : > { %v2152_v53 = vadd.f32 %v2151_v47, %v2150_v37 }
 0x144   : > { %v2153_v36 = vpop.f32.mrf.mxu1  ;;  %v2132_v42 = vpop.f32.mrf.mxu0 }
 0x145   : > { %v2133_v57 = vadd.f32 %v2132_v42, %v2131_v49  ;;  %v1562_v58 = vadd.f32 %v2152_v53, %v2130_v43 }
 0x146   : > { %v2154_v33 = vpop.f32.mrf.mxu1 }
 0x147   : > { %v2155_v38 = vadd.f32 %v2154_v33, %v2153_v36 }
 0x149   : > { %v1565_v63 = vadd.f32 %v2155_v38, %v2133_v57 }
 0x14e   : > { %v1602_v59 = vpop.f32.mrf.mxu0 }
 0x14f   : > { %v1603_v41 = vadd.f32 %v1602_v59, %v1562_v58 }
 0x150   : > { %v2195_v62 = vpop.f32.mrf.mxu0 }
 0x151   : > { %v1609_v45 = vadd.f32 %v1603_v41, %v1152_v60 }
 0x152   : > { %v1605_v1 = vpop.f32.mrf.mxu0 }
 0x153   : > { %v1606_v2 = vadd.f32 %v1605_v1, %v1565_v63  ;;  %v1613_v5 = vadd.f32 %v1611_v0, %v1609_v45 }
 0x154   : > { %v2196_v4 = vpop.f32.mrf.mxu0 }
 0x155   : > { %v1610_v21 = vadd.f32 %v1606_v2, %v1155_v40  ;;  %v1615_v7 = vmax.f32 %v1613_v5, 0.0 }
 0x157   : > { %v1614_v6 = vadd.f32 %v1612_v3, %v1610_v21 }
 0x159   : > { %v1616_v8 = vmax.f32 %v1614_v6, 0.0 }
 0x15b   : > { %v2012_v9 = vpack.c.bf16 %v1616_v8, %v1615_v7 }
 0x15d   : > { %2013 = vst [vmem:[%s214_s19] sm:$0xff] %v2012_v9  }
 0x15e PF: > { %s13_s14 = sadd.s32 1, %s2369_s14   ;;  %s2869_s12 = smov %s2365_s13 }
 0x15f   : > { %p10_p5 = scmp.ge.s32.totalorder %s13_s14, 4   ;;  %s2870_s13 = smov %s2872_s15 }
 0x161   :  { %12 = sbr.rel (!%p10_p5) target bundleno = 2 (0x2), region = 67 }

// kernel: _lambda_.10
= control target key start
LH: loop header
LB: loop body
LE: loop exit
PB: predicated region body
PF: predicated region fallthrough
CT: control target
= control target key end

     0   :  { %s1995_s15 = smov 0   ;;  %s1997_s16 = smov 0   ;;  %s2479_s0 = inlined_call_operand.vmem [shape: bf16[2,20,160], index: 0, kind: input, shape index: {}]   ;;  %s2480_s1 = inlined_call_operand.vmem [shape: bf16[3,160,512], index: 1, kind: input, shape index: {}]   ;;  %s2481_s2 = inlined_call_operand.vmem [shape: f32[16,512], index: 2, kind: input, shape index: {}]   ;;  %s2482_s3 = inlined_call_operand.vmem [shape: f32[2,16,512], index: 3, kind: input, shape index: {}]   ;;  %s2483_s4 = inlined_call_operand.vmem [shape: f32[2,16,512], index: 4, kind: output, shape index: {}]  }
   0x1   :  { %s1999_s17 = smov 0  }
   0x2 LB: > { %s26_s18 = sadd.s32 1, %s1964_s16  ;;  %p1505_p0 = scmp.ge.s32.totalorder %s1968_s17, 1  ;;  %s1968_s17 = sphi %s1999_s17, %s14_s17   ;;  %s1964_s16 = sphi %s1997_s16, %s2485_s16   ;;  %s1960_s15 = sphi %s1995_s15, %s2484_s15  }
   0x3   : > { %p28_p1 = scmp.ge.s32.totalorder %s26_s18, 2  ;;  %p206_p2 = scmp.lt.s32.totalorder %s1968_s17, 3 }
   0x5   : > { %s2487_s18 = smov (%p28_p1, %s26_s18), 0  ;;  %p207_p3 = pnand %p1505_p0, %p206_p2 }
   0x6   : > { %p253_p4 = scmp.lt.s32.totalorder (!%p207_p3), %s1960_s15, 1 }
   0x7   : > { %210 = sbr.rel (%p207_p3) target bundleno = 340 (0x154), region = 36 }
   0xc   : > { %v1756_v0 = vld [vmem:[%s2480_s1 + $0x224] ss:$16 sps:$4 sm:$0xff]   ;;  %v1758_v1 = vld [vmem:[%s2480_s1 + $0x22c] ss:$16 sps:$4 sm:$0xff]   ;;  %v1760_v2 = vld [vmem:[%s2480_s1 + $0x220] ss:$16 sps:$4 sm:$0xff]  }
   0xd   : > { %598 = vmatprep.subr.bf16.mxu0 %v1756_v0  ;;  %v1761_v3 = vld [vmem:[%s2480_s1 + $0x228] ss:$16 sps:$4 sm:$0xff]   ;;  %641 = vmatprep.subr.bf16.mxu1 %v1758_v1  ;;  %v1762_v4 = vld [vmem:[%s2480_s1 + $0x204] ss:$16 sps:$4 sm:$0xff]   ;;  %v1764_v5 = vld [vmem:[%s2480_s1 + $0x20c] ss:$16 sps:$4 sm:$0xff]  }
   0xe   : > { %599 = vmatpush1.bf16.msra.mxu0 %v1760_v2  ;;  %642 = vmatpush1.bf16.msra.mxu1 %v1761_v3  ;;  %v1766_v6 = vld [vmem:[%s2480_s1 + $0x200] ss:$16 sps:$4 sm:$0xff]   ;;  %v1767_v7 = vld [vmem:[%s2480_s1 + $0x208] ss:$16 sps:$4 sm:$0xff]   ;;  %v1768_v8 = vld [vmem:[%s2480_s1 + $0x1e4] ss:$16 sps:$4 sm:$0xff]  }
   0xf   : > { %600 = vmatprep.subr.bf16.mxu0 %v1762_v4  ;;  %643 = vmatprep.subr.bf16.mxu1 %v1764_v5  ;;  %v1770_v9 = vld [vmem:[%s2480_s1 + $0x1ec] ss:$16 sps:$4 sm:$0xff]   ;;  %v1772_v10 = vld [vmem:[%s2480_s1 + $0x1e0] ss:$16 sps:$4 sm:$0xff]   ;;  %v1773_v11 = vld [vmem:[%s2480_s1 + $0x1e8] ss:$16 sps:$4 sm:$0xff]  }
  0x10   : > { %v1774_v12 = vld [vmem:[%s2480_s1 + $0x1c4] ss:$16 sps:$4 sm:$0xff]   ;;  %v1776_v13 = vld [vmem:[%s2480_s1 + $0x1cc] ss:$16 sps:$4 sm:$0xff]   ;;  %v1778_v14 = vld [vmem:[%s2480_s1 + $0x1c0] ss:$16 sps:$4 sm:$0xff]  }
  0x11   : > { %v1779_v15 = vld [vmem:[%s2480_s1 + $0x1c8] ss:$16 sps:$4 sm:$0xff]   ;;  %v1780_v16 = vld [vmem:[%s2480_s1 + $0x1a4] ss:$16 sps:$4 sm:$0xff]   ;;  %v1782_v17 = vld [vmem:[%s2480_s1 + $0x1ac] ss:$16 sps:$4 sm:$0xff]  }
  0x12   : > { %601 = vmatpush1.bf16.msra.mxu0 %v1766_v6  ;;  %644 = vmatpush1.bf16.msra.mxu1 %v1767_v7  ;;  %v1784_v18 = vld [vmem:[%s2480_s1 + $0x1a0] ss:$16 sps:$4 sm:$0xff]   ;;  %v1785_v19 = vld [vmem:[%s2480_s1 + $0x1a8] ss:$16 sps:$4 sm:$0xff]   ;;  %s2489_s15 = smov (!%p253_p4, %s1960_s15), 1  ;;  %vm386_vm0 = vcmask 1046528  }
  0x13   : > { %602 = vmatprep.subr.bf16.mxu0 %v1768_v8  ;;  %645 = vmatprep.subr.bf16.mxu1 %v1770_v9  ;;  %v1786_v20 = vld [vmem:[%s2480_s1 + $0x184] ss:$16 sps:$4 sm:$0xff]   ;;  %v1788_v21 = vld [vmem:[%s2480_s1 + $0x18c] ss:$16 sps:$4 sm:$0xff]   ;;  %v1790_v22 = vld [vmem:[%s2480_s1 + $0x180] ss:$16 sps:$4 sm:$0xff]  }
  0x14   : > { %s1731_s21 = smul.u32 24, %s2489_s15  ;;  %v1791_v23 = vld [vmem:[%s2480_s1 + $0x188] ss:$16 sps:$4 sm:$0xff]   ;;  %v1792_v24 = vld [vmem:[%s2480_s1 + $0x164] ss:$16 sps:$4 sm:$0xff]   ;;  %vm594_vm1 = vcmask 261120  }
  0x15   : > { %v1794_v25 = vld [vmem:[%s2480_s1 + $0x16c] ss:$16 sps:$4 sm:$0xff]   ;;  %v1796_v26 = vld [vmem:[%s2480_s1 + $0x160] ss:$16 sps:$4 sm:$0xff]   ;;  %v1797_v27 = vld [vmem:[%s2480_s1 + $0x168] ss:$16 sps:$4 sm:$0xff]  }
  0x16   : > { %603 = vmatpush1.bf16.msra.mxu0 %v1772_v10  ;;  %646 = vmatpush1.bf16.msra.mxu1 %v1773_v11  ;;  %s2107_s8 = scalar_lea.vmem %s2479_s0, %s1731_s21  ;;  %v1798_v28 = vld [vmem:[%s2480_s1 + $0x144] ss:$16 sps:$4 sm:$0xff]   ;;  %v1800_v29 = vld [vmem:[%s2480_s1 + $0x14c] ss:$16 sps:$4 sm:$0xff]   ;;  %v1802_v30 = vld [vmem:[%s2480_s1 + $0x140] ss:$16 sps:$4 sm:$0xff]  }
  0x17   : > { %604 = vmatprep.subr.bf16.mxu0 %v1774_v12  ;;  %647 = vmatprep.subr.bf16.mxu1 %v1776_v13  ;;  %v2119_v31 = vld [vmem:[%s2107_s8 + $0x8] sm:$0xff]  ;;  %v330_v32 = vld [vmem:[%s2107_s8] sm:$0xee]  ;;  %v331_v33 = vld [vmem:[%s2107_s8 + $0x10] sm:$0x11]  ;;  %vm1032_vm2 = vcmask 1045504  }
  0x18   : > { %v1803_v34 = vld [vmem:[%s2480_s1 + $0x148] ss:$16 sps:$4 sm:$0xff]   ;;  %v1804_v35 = vld [vmem:[%s2480_s1 + $0x264] ss:$16 sps:$4 sm:$0xff]   ;;  %v1552_v36 = vcombine.high %v330_v32, %v2119_v31  ;;  %v1554_v37 = vcombine.high %v331_v33, %v331_v33  ;;  %v1806_v38 = vld [vmem:[%s2480_s1 + $0x26c] ss:$16 sps:$4 sm:$0xff]   ;;  %v1551_v45 = vcombine.low %v330_v32, %v2119_v31  ;;  %v1553_v46 = vcombine.low %v331_v33, %v331_v33 }
  0x19   : > { %v1808_v41 = vld [vmem:[%s2480_s1 + $0x260] ss:$16 sps:$4 sm:$0xff]   ;;  %v1809_v42 = vld [vmem:[%s2480_s1 + $0x268] ss:$16 sps:$4 sm:$0xff]   ;;  %v1810_v43 = vld [vmem:[%s2480_s1 + $0x244] ss:$16 sps:$4 sm:$0xff]  }
  0x1a   : > { %605 = vmatpush1.bf16.msra.mxu0 %v1778_v14  ;;  %648 = vmatpush1.bf16.msra.mxu1 %v1779_v15  ;;  %v390_v39 = vrot.slane %v1552_v36, 1  ;;  %v391_v40 = vrot.slane %v1554_v37, 1  ;;  %v1812_v47 = vld [vmem:[%s2480_s1 + $0x24c] ss:$16 sps:$4 sm:$0xff]   ;;  %v1814_v48 = vld [vmem:[%s2480_s1 + $0x240] ss:$16 sps:$4 sm:$0xff]  }
  0x1b   : > { %606 = vmatprep.subr.bf16.mxu0 %v1780_v16  ;;  %649 = vmatprep.subr.bf16.mxu1 %v1782_v17  ;;  %v1815_v49 = vld [vmem:[%s2480_s1 + $0x248] ss:$16 sps:$4 sm:$0xff]   ;;  %v387_v50 = vrot.slane %v1551_v45, 1  ;;  %v388_v51 = vrot.slane %v1553_v46, 1  ;;  %v1822_v52 = vld [vmem:[%s2480_s1 + $0xe4] ss:$16 sps:$4 sm:$0xff]  }
  0x1c   : > { %v392_v44 = vsel %vm386_vm0, %v390_v39, %v391_v40  ;;  %v1825_v53 = vld [vmem:[%s2480_s1 + $0xec] ss:$16 sps:$4 sm:$0xff]   ;;  %v1820_v54 = vld [vmem:[%s2480_s1 + $0xe0] ss:$16 sps:$4 sm:$0xff]   ;;  %v1823_v55 = vld [vmem:[%s2480_s1 + $0xe8] ss:$16 sps:$4 sm:$0xff]  }
  0x1d   : > { %1595 = vmatprep.mubr.msk.bf16.mxu0 %vm594_vm1, %v392_v44  ;;  %1596 = vmatprep.mubr.msk.bf16.mxu1 %vm594_vm1, %v392_v44  ;;  %v389_v56 = vsel %vm386_vm0, %v387_v50, %v388_v51  ;;  %v1828_v57 = vld [vmem:[%s2480_s1 + $0xc4] ss:$16 sps:$4 sm:$0xff]   ;;  %v1831_v58 = vld [vmem:[%s2480_s1 + $0xcc] ss:$16 sps:$4 sm:$0xff]   ;;  %v1826_v59 = vld [vmem:[%s2480_s1 + $0xc0] ss:$16 sps:$4 sm:$0xff]  }
  0x1e   : > { %607 = vmatpush1.bf16.msra.mxu0 %v1784_v18  ;;  %650 = vmatpush1.bf16.msra.mxu1 %v1785_v19  ;;  %v1829_v60 = vld [vmem:[%s2480_s1 + $0xc8] ss:$16 sps:$4 sm:$0xff]   ;;  %v1834_v61 = vld [vmem:[%s2480_s1 + $0xa4] ss:$16 sps:$4 sm:$0xff]   ;;  %v1837_v62 = vld [vmem:[%s2480_s1 + $0xac] ss:$16 sps:$4 sm:$0xff]  }
  0x1f   : > { %608 = vmatprep.subr.bf16.mxu0 %v1786_v20  ;;  %651 = vmatprep.subr.bf16.mxu1 %v1788_v21  ;;  %v1832_v63 = vld [vmem:[%s2480_s1 + $0xa0] ss:$16 sps:$4 sm:$0xff]   ;;  %v1835_v0 = vld [vmem:[%s2480_s1 + $0xa8] ss:$16 sps:$4 sm:$0xff]   ;;  %v1840_v1 = vld [vmem:[%s2480_s1 + $0x84] ss:$16 sps:$4 sm:$0xff]  }
  0x20   : > { %v1843_v2 = vld [vmem:[%s2480_s1 + $0x8c] ss:$16 sps:$4 sm:$0xff]   ;;  %v1838_v3 = vld [vmem:[%s2480_s1 + $0x80] ss:$16 sps:$4 sm:$0xff]   ;;  %v1841_v4 = vld [vmem:[%s2480_s1 + $0x88] ss:$16 sps:$4 sm:$0xff]  }
  0x21   : > { %v1846_v5 = vld [vmem:[%s2480_s1 + $0x64] ss:$16 sps:$4 sm:$0xff]   ;;  %v1849_v6 = vld [vmem:[%s2480_s1 + $0x6c] ss:$16 sps:$4 sm:$0xff]   ;;  %v1844_v8 = vld [vmem:[%s2480_s1 + $0x60] ss:$16 sps:$4 sm:$0xff]  }
  0x22   : > { %609 = vmatpush1.bf16.msra.mxu0 %v1790_v22  ;;  %652 = vmatpush1.bf16.msra.mxu1 %v1791_v23  ;;  %v288_v7 = vld [vmem:[%s2107_s8] sm:$0xff]  ;;  %v1847_v10 = vld [vmem:[%s2480_s1 + $0x68] ss:$16 sps:$4 sm:$0xff]   ;;  %v1855_v12 = vld [vmem:[%s2480_s1 + $0x4c] ss:$16 sps:$4 sm:$0xff]   ;;  %s1729_s26 = sshll.u32 %s2489_s15, 6 }
  0x23   : > { %610 = vmatprep.subr.bf16.mxu0 %v1792_v24  ;;  %653 = vmatprep.subr.bf16.mxu1 %v1794_v25  ;;  %v1598_v9 = vcombine.high %v288_v7, %v2119_v31  ;;  %v1852_v11 = vld [vmem:[%s2480_s1 + $0x44] ss:$16 sps:$4 sm:$0xff]   ;;  %v1850_v13 = vld [vmem:[%s2480_s1 + $0x40] ss:$16 sps:$4 sm:$0xff]   ;;  %v1853_v14 = vld [vmem:[%s2480_s1 + $0x48] ss:$16 sps:$4 sm:$0xff]   ;;  %s2423_s28 = scalar_lea.vmem %s2482_s3, %s1729_s26  ;;  %s2442_s13 = scalar_lea.vmem %s2483_s4, %s1729_s26 }
  0x24   : > { %v1858_v15 = vld [vmem:[%s2480_s1 + $0x24] ss:$16 sps:$4 sm:$0xff]   ;;  %v1861_v16 = vld [vmem:[%s2480_s1 + $0x2c] ss:$16 sps:$4 sm:$0xff]   ;;  %v1856_v17 = vld [vmem:[%s2480_s1 + $0x20] ss:$16 sps:$4 sm:$0xff]  }
  0x25   : > { %v1859_v18 = vld [vmem:[%s2480_s1 + $0x28] ss:$16 sps:$4 sm:$0xff]   ;;  %v1864_v19 = vld [vmem:[%s2480_s1 + $0x4] ss:$16 sps:$4 sm:$0xff]   ;;  %v1867_v20 = vld [vmem:[%s2480_s1 + $0xc] ss:$16 sps:$4 sm:$0xff]  }
  0x26   : > { %611 = vmatpush1.bf16.msra.mxu0 %v1796_v26  ;;  %654 = vmatpush1.bf16.msra.mxu1 %v1797_v27  ;;  %v1862_v21 = vld [vmem:[%s2480_s1] ss:$16 sps:$4 sm:$0xff]   ;;  %v1865_v22 = vld [vmem:[%s2480_s1 + $0x8] ss:$16 sps:$4 sm:$0xff]   ;;  %v1870_v23 = vld [vmem:[%s2480_s1 + $0x124] ss:$16 sps:$4 sm:$0xff]  }
  0x27   : > { %612 = vmatprep.subr.bf16.mxu0 %v1798_v28  ;;  %655 = vmatprep.subr.bf16.mxu1 %v1800_v29  ;;  %v1873_v24 = vld [vmem:[%s2480_s1 + $0x12c] ss:$16 sps:$4 sm:$0xff]   ;;  %v1868_v25 = vld [vmem:[%s2480_s1 + $0x120] ss:$16 sps:$4 sm:$0xff]   ;;  %v1871_v26 = vld [vmem:[%s2480_s1 + $0x128] ss:$16 sps:$4 sm:$0xff]  }
  0x28   : > { %v1876_v27 = vld [vmem:[%s2480_s1 + $0x104] ss:$16 sps:$4 sm:$0xff]   ;;  %v1879_v28 = vld [vmem:[%s2480_s1 + $0x10c] ss:$16 sps:$4 sm:$0xff]   ;;  %v1874_v29 = vld [vmem:[%s2480_s1 + $0x100] ss:$16 sps:$4 sm:$0xff]  }
  0x29   : > { %v1884_v32 = vld [vmem:[%s2480_s1 + $0x364] ss:$16 sps:$4 sm:$0xff]   ;;  %v1887_v33 = vld [vmem:[%s2480_s1 + $0x36c] ss:$16 sps:$4 sm:$0xff]   ;;  %v1885_v36 = vld [vmem:[%s2480_s1 + $0x368] ss:$16 sps:$4 sm:$0xff]  }
  0x2a   : > { %613 = vmatpush1.bf16.msra.mxu0 %v1802_v30  ;;  %656 = vmatpush1.bf16.msra.mxu1 %v1803_v34  ;;  %v1877_v30 = vld [vmem:[%s2480_s1 + $0x108] ss:$16 sps:$4 sm:$0xff]   ;;  %v1597_v34 = vcombine.low %v288_v7, %v2119_v31  ;;  %v1890_v37 = vld [vmem:[%s2480_s1 + $0x344] ss:$16 sps:$4 sm:$0xff]   ;;  %v1894_v50 = vld [vmem:[%s2480_s1 + $0x320] ss:$16 sps:$4 sm:$0xff]  }
  0x2b   : > { %626 = vmatprep.subr.bf16.mxu0 %v1804_v35  ;;  %669 = vmatprep.subr.bf16.mxu1 %v1806_v38  ;;  %v1882_v35 = vld [vmem:[%s2480_s1 + $0x360] ss:$16 sps:$4 sm:$0xff]   ;;  %v1893_v38 = vld [vmem:[%s2480_s1 + $0x34c] ss:$16 sps:$4 sm:$0xff]   ;;  %v1891_v44 = vld [vmem:[%s2480_s1 + $0x348] ss:$16 sps:$4 sm:$0xff]  }
  0x2c   : > { %v2300_v39 = vld [vmem:[%s2107_s8] sm:$0xcc]  ;;  %v2303_v40 = vld [vmem:[%s2107_s8 + $0x10] sm:$0x33]  ;;  %v1897_v51 = vld [vmem:[%s2480_s1 + $0x328] ss:$16 sps:$4 sm:$0xff]  }
  0x2d   : > { %v1896_v46 = vld [vmem:[%s2480_s1 + $0x324] ss:$16 sps:$4 sm:$0xff]   ;;  %v1927_v7 = vld [vmem:[%s2480_s1 + $0x288] ss:$16 sps:$4 sm:$0xff]  }
  0x2e   : > { %627 = vmatpush2.bf16.msra.mxu0 %v1808_v41  ;;  %670 = vmatpush2.bf16.msra.mxu1 %v1809_v42  ;;  %v1682_v41 = vcombine.high %v2300_v39, %v2119_v31  ;;  %v1684_v42 = vcombine.high %v2303_v40, %v2303_v40 }
  0x2f   : > { %628 = vmatprep.subr.bf16.mxu0 %v1810_v43  ;;  %671 = vmatprep.subr.bf16.mxu1 %v1812_v47  ;;  %v1888_v43 = vld [vmem:[%s2480_s1 + $0x340] ss:$16 sps:$4 sm:$0xff]   ;;  %v1899_v47 = vld [vmem:[%s2480_s1 + $0x32c] ss:$16 sps:$4 sm:$0xff]  }
  0x30   : > { %v1036_v45 = vrot.slane %v1682_v41, 2 }
  0x32   : > { %629 = vmatpush2.bf16.msra.mxu0 %v1814_v48  ;;  %672 = vmatpush2.bf16.msra.mxu1 %v1815_v49  ;;  %v1037_v48 = vrot.slane %v1684_v42, 2  ;;  %v1339_v42 = vld [vmem:[%s2481_s2 + $0x10] sm:$0xff] }
  0x33   : > { %893 = vmatprep.subr.bf16.mxu0 %v1822_v52  ;;  %936 = vmatprep.subr.bf16.mxu1 %v1825_v53  ;;  %v1902_v52 = vld [vmem:[%s2480_s1 + $0x304] ss:$16 sps:$4 sm:$0xff]   ;;  %v1905_v53 = vld [vmem:[%s2480_s1 + $0x30c] ss:$16 sps:$4 sm:$0xff]  }
  0x34   : > { %v1038_v49 = vsel %vm1032_vm2, %v1036_v45, %v1037_v48  ;;  %v1355_v48 = vld [vmem:[%s2423_s28 + $0x10] sm:$0xff] }
  0x35   : > { %631 = vmatmul.mubr.bf16.vlgmr.msra.gmra.mxu0 %v389_v56  ;;  %674 = vmatmul.mubr.bf16.vlgmr.msra.gmra.mxu1 %v389_v56  ;;  %v1908_v56 = vld [vmem:[%s2480_s1 + $0x2e4] ss:$16 sps:$4 sm:$0xff]  }
  0x36   : > { %894 = vmatpush1.bf16.msra.mxu0 %v1820_v54  ;;  %937 = vmatpush1.bf16.msra.mxu1 %v1823_v55  ;;  %v1900_v54 = vld [vmem:[%s2480_s1 + $0x300] ss:$16 sps:$4 sm:$0xff]   ;;  %v1903_v55 = vld [vmem:[%s2480_s1 + $0x308] ss:$16 sps:$4 sm:$0xff]  }
  0x37   : > { %895 = vmatprep.subr.bf16.mxu0 %v1828_v57  ;;  %938 = vmatprep.subr.bf16.mxu1 %v1831_v58  ;;  %v1911_v57 = vld [vmem:[%s2480_s1 + $0x2ec] ss:$16 sps:$4 sm:$0xff]   ;;  %v1906_v58 = vld [vmem:[%s2480_s1 + $0x2e0] ss:$16 sps:$4 sm:$0xff]  }
  0x38   : > { %1639 = vmatprep.mubr.msk.bf16.mxu0 %vm594_vm1, %v1598_v9  ;;  %1640 = vmatprep.mubr.msk.bf16.mxu1 %vm594_vm1, %v1598_v9  ;;  %v1935_v9 = vld [vmem:[%s2480_s1 + $0x3ac] ss:$16 sps:$4 sm:$0xff]  }
  0x3a   : > { %896 = vmatpush1.bf16.msra.mxu0 %v1826_v59  ;;  %939 = vmatpush1.bf16.msra.mxu1 %v1829_v60  ;;  %v1909_v59 = vld [vmem:[%s2480_s1 + $0x2e8] ss:$16 sps:$4 sm:$0xff]   ;;  %v1914_v60 = vld [vmem:[%s2480_s1 + $0x2c4] ss:$16 sps:$4 sm:$0xff]  }
  0x3b   : > { %897 = vmatprep.subr.bf16.mxu0 %v1834_v61  ;;  %940 = vmatprep.subr.bf16.mxu1 %v1837_v62  ;;  %v1917_v61 = vld [vmem:[%s2480_s1 + $0x2cc] ss:$16 sps:$4 sm:$0xff]   ;;  %v1912_v62 = vld [vmem:[%s2480_s1 + $0x2c0] ss:$16 sps:$4 sm:$0xff]  }
  0x3e   : > { %898 = vmatpush1.bf16.msra.mxu0 %v1832_v63  ;;  %941 = vmatpush1.bf16.msra.mxu1 %v1835_v0  ;;  %v1915_v63 = vld [vmem:[%s2480_s1 + $0x2c8] ss:$16 sps:$4 sm:$0xff]   ;;  %v1920_v0 = vld [vmem:[%s2480_s1 + $0x2a4] ss:$16 sps:$4 sm:$0xff]  }
  0x3f   : > { %899 = vmatprep.subr.bf16.mxu0 %v1840_v1  ;;  %942 = vmatprep.subr.bf16.mxu1 %v1843_v2  ;;  %v1923_v1 = vld [vmem:[%s2480_s1 + $0x2ac] ss:$16 sps:$4 sm:$0xff]   ;;  %v1918_v2 = vld [vmem:[%s2480_s1 + $0x2a0] ss:$16 sps:$4 sm:$0xff]  }
  0x42   : > { %900 = vmatpush1.bf16.msra.mxu0 %v1838_v3  ;;  %943 = vmatpush1.bf16.msra.mxu1 %v1841_v4  ;;  %v1921_v3 = vld [vmem:[%s2480_s1 + $0x2a8] ss:$16 sps:$4 sm:$0xff]   ;;  %v1926_v4 = vld [vmem:[%s2480_s1 + $0x284] ss:$16 sps:$4 sm:$0xff]  }
  0x43   : > { %901 = vmatprep.subr.bf16.mxu0 %v1846_v5  ;;  %944 = vmatprep.subr.bf16.mxu1 %v1849_v6  ;;  %v1929_v5 = vld [vmem:[%s2480_s1 + $0x28c] ss:$16 sps:$4 sm:$0xff]   ;;  %v1924_v6 = vld [vmem:[%s2480_s1 + $0x280] ss:$16 sps:$4 sm:$0xff]  }
  0x46   : > { %902 = vmatpush1.bf16.msra.mxu0 %v1844_v8  ;;  %945 = vmatpush1.bf16.msra.mxu1 %v1847_v10  ;;  %v1932_v8 = vld [vmem:[%s2480_s1 + $0x3a4] ss:$16 sps:$4 sm:$0xff]   ;;  %v1930_v10 = vld [vmem:[%s2480_s1 + $0x3a0] ss:$16 sps:$4 sm:$0xff]  }
  0x47   : > { %903 = vmatprep.subr.bf16.mxu0 %v1852_v11  ;;  %946 = vmatprep.subr.bf16.mxu1 %v1855_v12  ;;  %v1933_v11 = vld [vmem:[%s2480_s1 + $0x3a8] ss:$16 sps:$4 sm:$0xff]   ;;  %v1681_v12 = vcombine.low %v2300_v39, %v2119_v31 }
  0x48   : > { %v1939_v31 = vld [vmem:[%s2480_s1 + $0x388] ss:$16 sps:$4 sm:$0xff]  }
  0x4a   : > { %904 = vmatpush1.bf16.msra.mxu0 %v1850_v13  ;;  %947 = vmatpush1.bf16.msra.mxu1 %v1853_v14  ;;  %v1683_v13 = vcombine.low %v2303_v40, %v2303_v40  ;;  %v1938_v14 = vld [vmem:[%s2480_s1 + $0x384] ss:$16 sps:$4 sm:$0xff]  }
  0x4b   : > { %905 = vmatprep.subr.bf16.mxu0 %v1858_v15  ;;  %948 = vmatprep.subr.bf16.mxu1 %v1861_v16  ;;  %v1941_v15 = vld [vmem:[%s2480_s1 + $0x38c] ss:$16 sps:$4 sm:$0xff]   ;;  %v1936_v16 = vld [vmem:[%s2480_s1 + $0x380] ss:$16 sps:$4 sm:$0xff]  }
  0x4c   : > { %v1337_v40 = vld [vmem:[%s2481_s2] sm:$0xff] }
  0x4e   : > { %906 = vmatpush1.bf16.msra.mxu0 %v1856_v17  ;;  %949 = vmatpush1.bf16.msra.mxu1 %v1859_v18  ;;  %v1033_v17 = vrot.slane %v1681_v12, 2  ;;  %v1034_v18 = vrot.slane %v1683_v13, 2  ;;  %v1344_v12 = vld [vmem:[%s2481_s2 + $0x38] sm:$0xff] }
  0x4f   : > { %907 = vmatprep.subr.bf16.mxu0 %v1864_v19  ;;  %950 = vmatprep.subr.bf16.mxu1 %v1867_v20 }
  0x50   : > { %v1035_v19 = vsel %vm1032_vm2, %v1033_v17, %v1034_v18 }
  0x52   : > { %908 = vmatpush1.bf16.msra.mxu0 %v1862_v21  ;;  %951 = vmatpush1.bf16.msra.mxu1 %v1865_v22 }
  0x53   : > { %921 = vmatprep.subr.bf16.mxu0 %v1870_v23  ;;  %964 = vmatprep.subr.bf16.mxu1 %v1873_v24 }
  0x56   : > { %922 = vmatpush2.bf16.msra.mxu0 %v1868_v25  ;;  %965 = vmatpush2.bf16.msra.mxu1 %v1871_v26 }
  0x57   : > { %923 = vmatprep.subr.bf16.mxu0 %v1876_v27  ;;  %966 = vmatprep.subr.bf16.mxu1 %v1879_v28 }
  0x5a   : > { %924 = vmatpush2.bf16.msra.mxu0 %v1874_v29  ;;  %967 = vmatpush2.bf16.msra.mxu1 %v1877_v30 }
  0x5b   : > { %1243 = vmatprep.subr.bf16.mxu0 %v1884_v32  ;;  %1286 = vmatprep.subr.bf16.mxu1 %v1887_v33 }
  0x5d   : > { %926 = vmatmul.mubr.bf16.vlgmr.msra.gmra.mxu0 %v1597_v34  ;;  %969 = vmatmul.mubr.bf16.vlgmr.msra.gmra.mxu1 %v1597_v34 }
  0x5e   : > { %1244 = vmatpush1.bf16.msra.mxu0 %v1882_v35  ;;  %1287 = vmatpush1.bf16.msra.mxu1 %v1885_v36 }
  0x5f   : > { %1245 = vmatprep.subr.bf16.mxu0 %v1890_v37  ;;  %1288 = vmatprep.subr.bf16.mxu1 %v1893_v38 }
  0x60   : > { %1725 = vmatprep.mubr.msk.bf16.mxu0 %vm594_vm1, %v1038_v49  ;;  %1726 = vmatprep.mubr.msk.bf16.mxu1 %vm594_vm1, %v1038_v49 }
  0x62   : > { %1246 = vmatpush1.bf16.msra.mxu0 %v1888_v43  ;;  %1289 = vmatpush1.bf16.msra.mxu1 %v1891_v44 }
  0x63   : > { %1247 = vmatprep.subr.bf16.mxu0 %v1896_v46  ;;  %1290 = vmatprep.subr.bf16.mxu1 %v1899_v47  ;;  %v1353_v46 = vld [vmem:[%s2423_s28] sm:$0xff] }
  0x66   : > { %1248 = vmatpush1.bf16.msra.mxu0 %v1894_v50  ;;  %1291 = vmatpush1.bf16.msra.mxu1 %v1897_v51  ;;  %v1338_v50 = vld [vmem:[%s2481_s2 + $0x8] sm:$0xff] }
  0x67   : > { %1249 = vmatprep.subr.bf16.mxu0 %v1902_v52  ;;  %1292 = vmatprep.subr.bf16.mxu1 %v1905_v53  ;;  %v1340_v52 = vld [vmem:[%s2481_s2 + $0x18] sm:$0xff] }
  0x6a   : > { %1250 = vmatpush1.bf16.msra.mxu0 %v1900_v54  ;;  %1293 = vmatpush1.bf16.msra.mxu1 %v1903_v55 }
  0x6b   : > { %1251 = vmatprep.subr.bf16.mxu0 %v1908_v56  ;;  %1294 = vmatprep.subr.bf16.mxu1 %v1911_v57 }
  0x6e   : > { %1252 = vmatpush1.bf16.msra.mxu0 %v1906_v58  ;;  %1295 = vmatpush1.bf16.msra.mxu1 %v1909_v59 }
  0x6f   : > { %1253 = vmatprep.subr.bf16.mxu0 %v1914_v60  ;;  %1296 = vmatprep.subr.bf16.mxu1 %v1917_v61  ;;  %v1354_v61 = vld [vmem:[%s2423_s28 + $0x8] sm:$0xff] }
  0x72   : > { %1254 = vmatpush1.bf16.msra.mxu0 %v1912_v62  ;;  %1297 = vmatpush1.bf16.msra.mxu1 %v1915_v63  ;;  %v1356_v62 = vld [vmem:[%s2423_s28 + $0x18] sm:$0xff] }
  0x73   : > { %1255 = vmatprep.subr.bf16.mxu0 %v1920_v0  ;;  %1298 = vmatprep.subr.bf16.mxu1 %v1923_v1 }
  0x76   : > { %1256 = vmatpush1.bf16.msra.mxu0 %v1918_v2  ;;  %1299 = vmatpush1.bf16.msra.mxu1 %v1921_v3 }
  0x77   : > { %1257 = vmatprep.subr.bf16.mxu0 %v1926_v4  ;;  %1300 = vmatprep.subr.bf16.mxu1 %v1929_v5  ;;  %v1341_v5 = vld [vmem:[%s2481_s2 + $0x20] sm:$0xff] }
  0x7a   : > { %1258 = vmatpush1.bf16.msra.mxu0 %v1924_v6  ;;  %1301 = vmatpush1.bf16.msra.mxu1 %v1927_v7  ;;  %v1343_v6 = vld [vmem:[%s2481_s2 + $0x30] sm:$0xff] }
  0x7b   : > { %1271 = vmatprep.subr.bf16.mxu0 %v1932_v8  ;;  %1314 = vmatprep.subr.bf16.mxu1 %v1935_v9 }
  0x7e   : > { %1272 = vmatpush2.bf16.msra.mxu0 %v1930_v10  ;;  %1315 = vmatpush2.bf16.msra.mxu1 %v1933_v11  ;;  %v1342_v10 = vld [vmem:[%s2481_s2 + $0x28] sm:$0xff] }
  0x7f   : > { %1273 = vmatprep.subr.bf16.mxu0 %v1938_v14  ;;  %1316 = vmatprep.subr.bf16.mxu1 %v1941_v15  ;;  %v1357_v15 = vld [vmem:[%s2423_s28 + $0x20] sm:$0xff] }
  0x82   : > { %1274 = vmatpush2.bf16.msra.mxu0 %v1936_v16  ;;  %1317 = vmatpush2.bf16.msra.mxu1 %v1939_v31  ;;  %v1359_v16 = vld [vmem:[%s2423_s28 + $0x30] sm:$0xff] }
  0x85   : > { %1276 = vmatmul.mubr.bf16.vlgmr.msra.gmra.mxu0 %v1035_v19  ;;  %1319 = vmatmul.mubr.bf16.vlgmr.msra.gmra.mxu1 %v1035_v19 }
  0xf5   : > { %v632_v20 = vpop.f32.mrf.mxu0  ;;  %v675_v21 = vpop.f32.mrf.mxu1 }
  0xf7   : > { %v634_v22 = vpop.f32.mrf.mxu0  ;;  %v677_v23 = vpop.f32.mrf.mxu1 }
  0xf9   : > { %v636_v24 = vpop.f32.mrf.mxu0  ;;  %v679_v25 = vpop.f32.mrf.mxu1 }
  0xfb   : > { %v638_v26 = vpop.f32.mrf.mxu0  ;;  %v681_v27 = vpop.f32.mrf.mxu1 }
 0x11d   : > { %v927_v28 = vpop.f32.mrf.mxu0  ;;  %v970_v29 = vpop.f32.mrf.mxu1 }
 0x11e   : > { %v928_v37 = vadd.f32 %v927_v28, %v632_v20  ;;  %v971_v38 = vadd.f32 %v970_v29, %v675_v21  ;;  %v1358_v20 = vld [vmem:[%s2423_s28 + $0x28] sm:$0xff]  ;;  %v1360_v21 = vld [vmem:[%s2423_s28 + $0x38] sm:$0xff] }
 0x11f   : > { %v929_v30 = vpop.f32.mrf.mxu0  ;;  %v972_v32 = vpop.f32.mrf.mxu1 }
 0x120   : > { %v930_v43 = vadd.f32 %v929_v30, %v634_v22  ;;  %v973_v44 = vadd.f32 %v972_v32, %v677_v23 }
 0x121   : > { %v931_v33 = vpop.f32.mrf.mxu0  ;;  %v974_v34 = vpop.f32.mrf.mxu1 }
 0x122   : > { %v932_v57 = vadd.f32 %v931_v33, %v636_v24  ;;  %v975_v58 = vadd.f32 %v974_v34, %v679_v25 }
 0x123   : > { %v933_v35 = vpop.f32.mrf.mxu0  ;;  %v976_v36 = vpop.f32.mrf.mxu1 }
 0x124   : > { %v934_v59 = vadd.f32 %v933_v35, %v638_v26  ;;  %v977_v60 = vadd.f32 %v976_v36, %v681_v27 }
 0x145   : > { %v1277_v39 = vpop.f32.mrf.mxu0  ;;  %v1320_v41 = vpop.f32.mrf.mxu1 }
 0x146   : > { %v1329_v45 = vadd.f32 %v1277_v39, %v928_v37  ;;  %v1331_v47 = vadd.f32 %v1320_v41, %v971_v38 }
 0x147   : > { %v1279_v49 = vpop.f32.mrf.mxu0  ;;  %v1322_v51 = vpop.f32.mrf.mxu1 }
 0x148   : > { %v1345_v53 = vadd.f32 %v1337_v40, %v1329_v45  ;;  %v1347_v54 = vadd.f32 %v1339_v42, %v1331_v47  ;;  %v1330_v55 = vadd.f32 %v1279_v49, %v930_v43  ;;  %v1332_v56 = vadd.f32 %v1322_v51, %v973_v44 }
 0x149   : > { %v1281_v63 = vpop.f32.mrf.mxu0  ;;  %v1324_v0 = vpop.f32.mrf.mxu1 }
 0x14a   : > { %v1361_v1 = vadd.f32 %v1353_v46, %v1345_v53  ;;  %v1363_v2 = vadd.f32 %v1355_v48, %v1347_v54  ;;  %v1346_v3 = vadd.f32 %v1338_v50, %v1330_v55  ;;  %v1348_v4 = vadd.f32 %v1340_v52, %v1332_v56 }
 0x14b   : > { %v1333_v7 = vadd.f32 %v1281_v63, %v932_v57  ;;  %v1335_v8 = vadd.f32 %v1324_v0, %v975_v58  ;;  %v1283_v9 = vpop.f32.mrf.mxu0  ;;  %v1326_v11 = vpop.f32.mrf.mxu1 }
 0x14c   : > { %1369 = vst [vmem:[%s2442_s13] sm:$0xff] %v1361_v1  ;;  %1371 = vst [vmem:[%s2442_s13 + $0x10] sm:$0xff] %v1363_v2  ;;  %v1362_v13 = vadd.f32 %v1354_v61, %v1346_v3  ;;  %v1364_v14 = vadd.f32 %v1356_v62, %v1348_v4  ;;  %v1334_v31 = vadd.f32 %v1283_v9, %v934_v59 }
 0x14d   : > { %v1336_v17 = vadd.f32 %v1326_v11, %v977_v60  ;;  %v1349_v18 = vadd.f32 %v1341_v5, %v1333_v7  ;;  %v1351_v19 = vadd.f32 %v1343_v6, %v1335_v8 }
 0x14e   : > { %1370 = vst [vmem:[%s2442_s13 + $0x8] sm:$0xff] %v1362_v13  ;;  %1372 = vst [vmem:[%s2442_s13 + $0x18] sm:$0xff] %v1364_v14  ;;  %v1350_v22 = vadd.f32 %v1342_v10, %v1334_v31 }
 0x14f   : > { %v1352_v23 = vadd.f32 %v1344_v12, %v1336_v17  ;;  %v1365_v24 = vadd.f32 %v1357_v15, %v1349_v18  ;;  %v1367_v25 = vadd.f32 %v1359_v16, %v1351_v19 }
 0x150   : > { %v1366_v26 = vadd.f32 %v1358_v20, %v1350_v22 }
 0x151   : > { %v1368_v27 = vadd.f32 %v1360_v21, %v1352_v23  ;;  %1373 = vst [vmem:[%s2442_s13 + $0x20] sm:$0xff] %v1365_v24  ;;  %1375 = vst [vmem:[%s2442_s13 + $0x30] sm:$0xff] %v1367_v25 }
 0x152   : > { %1374 = vst [vmem:[%s2442_s13 + $0x28] sm:$0xff] %v1366_v26 }
 0x153   : > { %1376 = vst [vmem:[%s2442_s13 + $0x38] sm:$0xff] %v1368_v27 }
 0x154 PF: > { %s14_s17 = sadd.s32 1, %s1968_s17   ;;  %s2484_s15 = smov %s1964_s16 }
 0x155   : > { %p11_p5 = scmp.ge.s32.totalorder %s14_s17, 4   ;;  %s2485_s16 = smov %s2487_s18 }
 0x157   :  { %13 = sbr.rel (!%p11_p5) target bundleno = 2 (0x2), region = 74 }

// kernel: _lambda_.12
= control target key start
LH: loop header
LB: loop body
LE: loop exit
PB: predicated region body
PF: predicated region fallthrough
CT: control target
= control target key end

     0   :  { %s2133_s15 = smov 0   ;;  %s2135_s16 = smov 0   ;;  %s2653_s0 = inlined_call_operand.vmem [shape: bf16[2,22,176], index: 0, kind: input, shape index: {}]   ;;  %s2654_s1 = inlined_call_operand.vmem [shape: bf16[3,176,512], index: 1, kind: input, shape index: {}]   ;;  %s2655_s2 = inlined_call_operand.vmem [shape: f32[16,512], index: 2, kind: input, shape index: {}]   ;;  %s2656_s3 = inlined_call_operand.vmem [shape: f32[2,16,512], index: 3, kind: input, shape index: {}]   ;;  %s2657_s4 = inlined_call_operand.vmem [shape: f32[2,16,512], index: 4, kind: output, shape index: {}]  }
   0x1   :  { %s2137_s17 = smov 0  }
   0x2 LB: > { %s26_s18 = sadd.s32 1, %s2102_s16  ;;  %p1605_p0 = scmp.ge.s32.totalorder %s2106_s17, 1  ;;  %s2106_s17 = sphi %s2137_s17, %s14_s17   ;;  %s2102_s16 = sphi %s2135_s16, %s2659_s16   ;;  %s2098_s15 = sphi %s2133_s15, %s2658_s15  }
   0x3   : > { %p28_p1 = scmp.ge.s32.totalorder %s26_s18, 2  ;;  %p206_p2 = scmp.lt.s32.totalorder %s2106_s17, 3 }
   0x5   : > { %s2661_s18 = smov (%p28_p1, %s26_s18), 0  ;;  %p207_p3 = pnand %p1605_p0, %p206_p2 }
   0x6   : > { %p253_p4 = scmp.lt.s32.totalorder (!%p207_p3), %s2098_s15, 1 }
   0x7   : > { %210 = sbr.rel (%p207_p3) target bundleno = 352 (0x160), region = 36 }
   0xc   : > { %v1876_v0 = vld [vmem:[%s2654_s1 + $0x244] ss:$16 sps:$4 sm:$0xff]   ;;  %v1878_v1 = vld [vmem:[%s2654_s1 + $0x24c] ss:$16 sps:$4 sm:$0xff]   ;;  %v1880_v2 = vld [vmem:[%s2654_s1 + $0x240] ss:$16 sps:$4 sm:$0xff]  }
   0xd   : > { %654 = vmatprep.subr.bf16.mxu0 %v1876_v0  ;;  %v1881_v3 = vld [vmem:[%s2654_s1 + $0x248] ss:$16 sps:$4 sm:$0xff]   ;;  %697 = vmatprep.subr.bf16.mxu1 %v1878_v1  ;;  %v1882_v4 = vld [vmem:[%s2654_s1 + $0x224] ss:$16 sps:$4 sm:$0xff]   ;;  %v1884_v5 = vld [vmem:[%s2654_s1 + $0x22c] ss:$16 sps:$4 sm:$0xff]  }
   0xe   : > { %655 = vmatpush1.bf16.msra.mxu0 %v1880_v2  ;;  %698 = vmatpush1.bf16.msra.mxu1 %v1881_v3  ;;  %v1886_v6 = vld [vmem:[%s2654_s1 + $0x220] ss:$16 sps:$4 sm:$0xff]   ;;  %v1887_v7 = vld [vmem:[%s2654_s1 + $0x228] ss:$16 sps:$4 sm:$0xff]   ;;  %v1888_v8 = vld [vmem:[%s2654_s1 + $0x204] ss:$16 sps:$4 sm:$0xff]  }
   0xf   : > { %656 = vmatprep.subr.bf16.mxu0 %v1882_v4  ;;  %699 = vmatprep.subr.bf16.mxu1 %v1884_v5  ;;  %v1890_v9 = vld [vmem:[%s2654_s1 + $0x20c] ss:$16 sps:$4 sm:$0xff]   ;;  %v1892_v10 = vld [vmem:[%s2654_s1 + $0x200] ss:$16 sps:$4 sm:$0xff]   ;;  %v1893_v11 = vld [vmem:[%s2654_s1 + $0x208] ss:$16 sps:$4 sm:$0xff]  }
  0x10   : > { %v1894_v12 = vld [vmem:[%s2654_s1 + $0x1e4] ss:$16 sps:$4 sm:$0xff]   ;;  %v1896_v13 = vld [vmem:[%s2654_s1 + $0x1ec] ss:$16 sps:$4 sm:$0xff]   ;;  %v1898_v14 = vld [vmem:[%s2654_s1 + $0x1e0] ss:$16 sps:$4 sm:$0xff]  }
  0x11   : > { %v1899_v15 = vld [vmem:[%s2654_s1 + $0x1e8] ss:$16 sps:$4 sm:$0xff]   ;;  %v1900_v16 = vld [vmem:[%s2654_s1 + $0x1c4] ss:$16 sps:$4 sm:$0xff]   ;;  %v1902_v17 = vld [vmem:[%s2654_s1 + $0x1cc] ss:$16 sps:$4 sm:$0xff]  }
  0x12   : > { %657 = vmatpush1.bf16.msra.mxu0 %v1886_v6  ;;  %700 = vmatpush1.bf16.msra.mxu1 %v1887_v7  ;;  %v1904_v18 = vld [vmem:[%s2654_s1 + $0x1c0] ss:$16 sps:$4 sm:$0xff]   ;;  %v1905_v19 = vld [vmem:[%s2654_s1 + $0x1c8] ss:$16 sps:$4 sm:$0xff]   ;;  %v1906_v20 = vld [vmem:[%s2654_s1 + $0x1a4] ss:$16 sps:$4 sm:$0xff]  }
  0x13   : > { %658 = vmatprep.subr.bf16.mxu0 %v1888_v8  ;;  %701 = vmatprep.subr.bf16.mxu1 %v1890_v9  ;;  %v1908_v21 = vld [vmem:[%s2654_s1 + $0x1ac] ss:$16 sps:$4 sm:$0xff]   ;;  %s2663_s15 = smov (!%p253_p4, %s2098_s15), 1  ;;  %v1910_v22 = vld [vmem:[%s2654_s1 + $0x1a0] ss:$16 sps:$4 sm:$0xff]   ;;  %vm650_vm1 = vcmask 392192  }
  0x14   : > { %v1911_v23 = vld [vmem:[%s2654_s1 + $0x1a8] ss:$16 sps:$4 sm:$0xff]   ;;  %v1912_v24 = vld [vmem:[%s2654_s1 + $0x184] ss:$16 sps:$4 sm:$0xff]   ;;  %v1914_v25 = vld [vmem:[%s2654_s1 + $0x18c] ss:$16 sps:$4 sm:$0xff]  }
  0x15   : > { %s1851_s27 = smul.u32 24, %s2663_s15  ;;  %v1916_v26 = vld [vmem:[%s2654_s1 + $0x180] ss:$16 sps:$4 sm:$0xff]   ;;  %v1917_v27 = vld [vmem:[%s2654_s1 + $0x188] ss:$16 sps:$4 sm:$0xff]   ;;  %vm1112_vm2 = vcmask 1044480  }
  0x16   : > { %659 = vmatpush1.bf16.msra.mxu0 %v1892_v10  ;;  %702 = vmatpush1.bf16.msra.mxu1 %v1893_v11  ;;  %v1918_v28 = vld [vmem:[%s2654_s1 + $0x164] ss:$16 sps:$4 sm:$0xff]   ;;  %v1920_v29 = vld [vmem:[%s2654_s1 + $0x16c] ss:$16 sps:$4 sm:$0xff]   ;;  %v1922_v30 = vld [vmem:[%s2654_s1 + $0x160] ss:$16 sps:$4 sm:$0xff]  }
  0x17   : > { %660 = vmatprep.subr.bf16.mxu0 %v1894_v12  ;;  %703 = vmatprep.subr.bf16.mxu1 %v1896_v13  ;;  %s2251_s12 = scalar_lea.vmem %s2653_s0, %s1851_s27  ;;  %v1923_v31 = vld [vmem:[%s2654_s1 + $0x168] ss:$16 sps:$4 sm:$0xff]   ;;  %v1924_v32 = vld [vmem:[%s2654_s1 + $0x2a4] ss:$16 sps:$4 sm:$0xff]   ;;  %v1926_v33 = vld [vmem:[%s2654_s1 + $0x2ac] ss:$16 sps:$4 sm:$0xff]  }
  0x18   : > { %v2266_v34 = vld [vmem:[%s2251_s12 + $0x8] sm:$0xff]  ;;  %v334_v35 = vld [vmem:[%s2251_s12] sm:$0xee]  ;;  %v335_v37 = vld [vmem:[%s2251_s12 + $0x10] sm:$0x33]  ;;  %s1849_s28 = sshll.u32 %s2663_s15, 6 }
  0x19   : > { %v1928_v36 = vld [vmem:[%s2654_s1 + $0x2a0] ss:$16 sps:$4 sm:$0xff]   ;;  %v1656_v38 = vcombine.high %v334_v35, %v2266_v34  ;;  %v1655_v39 = vcombine.low %v334_v35, %v2266_v34  ;;  %v1929_v40 = vld [vmem:[%s2654_s1 + $0x2a8] ss:$16 sps:$4 sm:$0xff]   ;;  %v1930_v41 = vld [vmem:[%s2654_s1 + $0x284] ss:$16 sps:$4 sm:$0xff]   ;;  %v1658_v42 = vcombine.high %v335_v37, %v335_v37  ;;  %v1657_v43 = vcombine.low %v335_v37, %v335_v37  ;;  %s2597_s5 = scalar_lea.vmem %s2656_s3, %s1849_s28  ;;  %s2616_s20 = scalar_lea.vmem %s2657_s4, %s1849_s28 }
  0x1a   : > { %661 = vmatpush1.bf16.msra.mxu0 %v1898_v14  ;;  %704 = vmatpush1.bf16.msra.mxu1 %v1899_v15  ;;  %v1932_v48 = vld [vmem:[%s2654_s1 + $0x28c] ss:$16 sps:$4 sm:$0xff]   ;;  %v1934_v53 = vld [vmem:[%s2654_s1 + $0x280] ss:$16 sps:$4 sm:$0xff]   ;;  %vm394_vm0 = vsmask.f32 6400 }
  0x1b   : > { %662 = vmatprep.subr.bf16.mxu0 %v1900_v16  ;;  %705 = vmatprep.subr.bf16.mxu1 %v1902_v17  ;;  %v413_v44 = vshrl.u32 %v1656_v38, 16  ;;  %v416_v45 = vshll.u32 %v1656_v38, 16  ;;  %v396_v46 = vshrl.u32 %v1655_v39, 16  ;;  %v399_v47 = vshll.u32 %v1655_v39, 16  ;;  %v1935_v59 = vld [vmem:[%s2654_s1 + $0x288] ss:$16 sps:$4 sm:$0xff]  }
  0x1c   : > { %v421_v49 = vshrl.u32 %v1658_v42, 16  ;;  %v424_v50 = vshll.u32 %v1658_v42, 16  ;;  %v404_v51 = vshrl.u32 %v1657_v43, 16  ;;  %v407_v52 = vshll.u32 %v1657_v43, 16  ;;  %v1936_v0 = vld [vmem:[%s2654_s1 + $0x264] ss:$16 sps:$4 sm:$0xff]  }
  0x1d   : > { %v415_v54 = vrot.slane %v413_v44, 1  ;;  %v418_v55 = vrot.slane %v416_v45, 2  ;;  %v398_v58 = vrot.slane %v396_v46, 1  ;;  %v401_v61 = vrot.slane %v399_v47, 2  ;;  %v1938_v1 = vld [vmem:[%s2654_s1 + $0x26c] ss:$16 sps:$4 sm:$0xff]  }
  0x1e   : > { %663 = vmatpush1.bf16.msra.mxu0 %v1904_v18  ;;  %706 = vmatpush1.bf16.msra.mxu1 %v1905_v19  ;;  %v423_v56 = vrot.slane %v421_v49, 1  ;;  %v426_v57 = vrot.slane %v424_v50, 2  ;;  %v406_v62 = vrot.slane %v404_v51, 1  ;;  %v409_v63 = vrot.slane %v407_v52, 2  ;;  %v1940_v3 = vld [vmem:[%s2654_s1 + $0x260] ss:$16 sps:$4 sm:$0xff]  }
  0x1f   : > { %664 = vmatprep.subr.bf16.mxu0 %v1906_v20  ;;  %707 = vmatprep.subr.bf16.mxu1 %v1908_v21  ;;  %v419_v60 = vor.u32 %v418_v55, %v415_v54  ;;  %v1941_v5 = vld [vmem:[%s2654_s1 + $0x268] ss:$16 sps:$4 sm:$0xff]   ;;  %v402_v6 = vor.u32 %v401_v61, %v398_v58  ;;  %v1948_v8 = vld [vmem:[%s2654_s1 + $0xe4] ss:$16 sps:$4 sm:$0xff]   ;;  %v1951_v9 = vld [vmem:[%s2654_s1 + $0xec] ss:$16 sps:$4 sm:$0xff]  }
  0x20   : > { %v427_v2 = vor.u32 %v426_v57, %v423_v56  ;;  %v410_v7 = vor.u32 %v409_v63, %v406_v62  ;;  %v1946_v10 = vld [vmem:[%s2654_s1 + $0xe0] ss:$16 sps:$4 sm:$0xff]   ;;  %v1949_v12 = vld [vmem:[%s2654_s1 + $0xe8] ss:$16 sps:$4 sm:$0xff]   ;;  %v1954_v13 = vld [vmem:[%s2654_s1 + $0xc4] ss:$16 sps:$4 sm:$0xff]  }
  0x21   : > { %v1957_v14 = vld [vmem:[%s2654_s1 + $0xcc] ss:$16 sps:$4 sm:$0xff]   ;;  %v1952_v15 = vld [vmem:[%s2654_s1 + $0xc0] ss:$16 sps:$4 sm:$0xff]   ;;  %v1955_v16 = vld [vmem:[%s2654_s1 + $0xc8] ss:$16 sps:$4 sm:$0xff]  }
  0x22   : > { %665 = vmatpush1.bf16.msra.mxu0 %v1910_v22  ;;  %708 = vmatpush1.bf16.msra.mxu1 %v1911_v23  ;;  %v428_v4 = vsel %vm394_vm0, %v419_v60, %v427_v2  ;;  %v411_v11 = vsel %vm394_vm0, %v402_v6, %v410_v7  ;;  %v1960_v17 = vld [vmem:[%s2654_s1 + $0xa4] ss:$16 sps:$4 sm:$0xff]   ;;  %v1963_v18 = vld [vmem:[%s2654_s1 + $0xac] ss:$16 sps:$4 sm:$0xff]   ;;  %v1958_v19 = vld [vmem:[%s2654_s1 + $0xa0] ss:$16 sps:$4 sm:$0xff]  }
  0x23   : > { %666 = vmatprep.subr.bf16.mxu0 %v1912_v24  ;;  %709 = vmatprep.subr.bf16.mxu1 %v1914_v25  ;;  %v1961_v20 = vld [vmem:[%s2654_s1 + $0xa8] ss:$16 sps:$4 sm:$0xff]   ;;  %v1966_v21 = vld [vmem:[%s2654_s1 + $0x84] ss:$16 sps:$4 sm:$0xff]   ;;  %v1969_v22 = vld [vmem:[%s2654_s1 + $0x8c] ss:$16 sps:$4 sm:$0xff]  }
  0x24   : > { %1703 = vmatprep.mubr.msk.bf16.mxu0 %vm650_vm1, %v428_v4  ;;  %1704 = vmatprep.mubr.msk.bf16.mxu1 %vm650_vm1, %v428_v4  ;;  %v1964_v23 = vld [vmem:[%s2654_s1 + $0x80] ss:$16 sps:$4 sm:$0xff]   ;;  %v1967_v24 = vld [vmem:[%s2654_s1 + $0x88] ss:$16 sps:$4 sm:$0xff]   ;;  %v1972_v25 = vld [vmem:[%s2654_s1 + $0x64] ss:$16 sps:$4 sm:$0xff]  }
  0x25   : > { %v1979_v35 = vld [vmem:[%s2654_s1 + $0x48] ss:$16 sps:$4 sm:$0xff]   ;;  %v1987_v37 = vld [vmem:[%s2654_s1 + $0x2c] ss:$16 sps:$4 sm:$0xff]   ;;  %v1982_v38 = vld [vmem:[%s2654_s1 + $0x20] ss:$16 sps:$4 sm:$0xff]  }
  0x26   : > { %667 = vmatpush1.bf16.msra.mxu0 %v1916_v26  ;;  %710 = vmatpush1.bf16.msra.mxu1 %v1917_v27  ;;  %v1975_v26 = vld [vmem:[%s2654_s1 + $0x6c] ss:$16 sps:$4 sm:$0xff]   ;;  %v1970_v27 = vld [vmem:[%s2654_s1 + $0x60] ss:$16 sps:$4 sm:$0xff]   ;;  %v1985_v39 = vld [vmem:[%s2654_s1 + $0x28] ss:$16 sps:$4 sm:$0xff]  }
  0x27   : > { %668 = vmatprep.subr.bf16.mxu0 %v1918_v28  ;;  %711 = vmatprep.subr.bf16.mxu1 %v1920_v29  ;;  %v1973_v28 = vld [vmem:[%s2654_s1 + $0x68] ss:$16 sps:$4 sm:$0xff]   ;;  %v1978_v29 = vld [vmem:[%s2654_s1 + $0x44] ss:$16 sps:$4 sm:$0xff]   ;;  %v1988_v42 = vld [vmem:[%s2654_s1] ss:$16 sps:$4 sm:$0xff]  }
  0x28   : > { %v1991_v43 = vld [vmem:[%s2654_s1 + $0x8] ss:$16 sps:$4 sm:$0xff]   ;;  %v1996_v44 = vld [vmem:[%s2654_s1 + $0x144] ss:$16 sps:$4 sm:$0xff]   ;;  %v1999_v45 = vld [vmem:[%s2654_s1 + $0x14c] ss:$16 sps:$4 sm:$0xff]  }
  0x29   : > { %v1994_v46 = vld [vmem:[%s2654_s1 + $0x140] ss:$16 sps:$4 sm:$0xff]   ;;  %v1997_v47 = vld [vmem:[%s2654_s1 + $0x148] ss:$16 sps:$4 sm:$0xff]   ;;  %v2005_v49 = vld [vmem:[%s2654_s1 + $0x12c] ss:$16 sps:$4 sm:$0xff]  }
  0x2a   : > { %669 = vmatpush1.bf16.msra.mxu0 %v1922_v30  ;;  %712 = vmatpush1.bf16.msra.mxu1 %v1923_v31  ;;  %v1981_v30 = vld [vmem:[%s2654_s1 + $0x4c] ss:$16 sps:$4 sm:$0xff]   ;;  %v288_v31 = vld [vmem:[%s2251_s12] sm:$0xff]  ;;  %v2003_v51 = vld [vmem:[%s2654_s1 + $0x128] ss:$16 sps:$4 sm:$0xff]  }
  0x2b   : > { %680 = vmatprep.subr.bf16.mxu0 %v1924_v32  ;;  %723 = vmatprep.subr.bf16.mxu1 %v1926_v33  ;;  %v1706_v32 = vcombine.high %v288_v31, %v2266_v34  ;;  %v1976_v33 = vld [vmem:[%s2654_s1 + $0x40] ss:$16 sps:$4 sm:$0xff]   ;;  %v2008_v52 = vld [vmem:[%s2654_s1 + $0x104] ss:$16 sps:$4 sm:$0xff]   ;;  %v2009_v55 = vld [vmem:[%s2654_s1 + $0x108] ss:$16 sps:$4 sm:$0xff]   ;;  %v1705_v58 = vcombine.low %v288_v31, %v2266_v34 }
  0x2c   : > { %v2000_v50 = vld [vmem:[%s2654_s1 + $0x120] ss:$16 sps:$4 sm:$0xff]   ;;  %v2016_v56 = vld [vmem:[%s2654_s1 + $0x3a4] ss:$16 sps:$4 sm:$0xff]   ;;  %v2019_v57 = vld [vmem:[%s2654_s1 + $0x3ac] ss:$16 sps:$4 sm:$0xff]  }
  0x2d   : > { %v2006_v54 = vld [vmem:[%s2654_s1 + $0x100] ss:$16 sps:$4 sm:$0xff]   ;;  %v2017_v60 = vld [vmem:[%s2654_s1 + $0x3a8] ss:$16 sps:$4 sm:$0xff]   ;;  %v2022_v61 = vld [vmem:[%s2654_s1 + $0x384] ss:$16 sps:$4 sm:$0xff]  }
  0x2e   : > { %681 = vmatpush2.bf16.msra.mxu0 %v1928_v36  ;;  %724 = vmatpush2.bf16.msra.mxu1 %v1929_v40  ;;  %v1984_v36 = vld [vmem:[%s2654_s1 + $0x24] ss:$16 sps:$4 sm:$0xff]   ;;  %v2025_v62 = vld [vmem:[%s2654_s1 + $0x38c] ss:$16 sps:$4 sm:$0xff]   ;;  %v2023_v2 = vld [vmem:[%s2654_s1 + $0x388] ss:$16 sps:$4 sm:$0xff]  }
  0x2f   : > { %682 = vmatprep.subr.bf16.mxu0 %v1930_v41  ;;  %725 = vmatprep.subr.bf16.mxu1 %v1932_v48  ;;  %v1990_v40 = vld [vmem:[%s2654_s1 + $0x4] ss:$16 sps:$4 sm:$0xff]   ;;  %v1993_v41 = vld [vmem:[%s2654_s1 + $0xc] ss:$16 sps:$4 sm:$0xff]   ;;  %v2059_v31 = vld [vmem:[%s2654_s1 + $0x2c8] ss:$16 sps:$4 sm:$0xff]  }
  0x30   : > { %v2002_v48 = vld [vmem:[%s2654_s1 + $0x124] ss:$16 sps:$4 sm:$0xff]   ;;  %v2031_v6 = vld [vmem:[%s2654_s1 + $0x36c] ss:$16 sps:$4 sm:$0xff]  }
  0x31   : > { %v2462_v63 = vld [vmem:[%s2251_s12] sm:$0x88] }
  0x32   : > { %683 = vmatpush2.bf16.msra.mxu0 %v1934_v53  ;;  %726 = vmatpush2.bf16.msra.mxu1 %v1935_v59  ;;  %v2011_v53 = vld [vmem:[%s2654_s1 + $0x10c] ss:$16 sps:$4 sm:$0xff]   ;;  %v2014_v59 = vld [vmem:[%s2654_s1 + $0x3a0] ss:$16 sps:$4 sm:$0xff]  }
  0x33   : > { %684 = vmatprep.subr.bf16.mxu0 %v1936_v0  ;;  %727 = vmatprep.subr.bf16.mxu1 %v1938_v1  ;;  %v2465_v0 = vld [vmem:[%s2251_s12 + $0x10] sm:$0x77] }
  0x34   : > { %v2020_v1 = vld [vmem:[%s2654_s1 + $0x380] ss:$16 sps:$4 sm:$0xff]   ;;  %v1800_v4 = vcombine.high %v2465_v0, %v2465_v0 }
  0x36   : > { %685 = vmatpush2.bf16.msra.mxu0 %v1940_v3  ;;  %728 = vmatpush2.bf16.msra.mxu1 %v1941_v5  ;;  %v1798_v3 = vcombine.high %v2462_v63, %v2266_v34  ;;  %v2028_v5 = vld [vmem:[%s2654_s1 + $0x364] ss:$16 sps:$4 sm:$0xff]  }
  0x37   : > { %969 = vmatprep.subr.bf16.mxu0 %v1948_v8  ;;  %1012 = vmatprep.subr.bf16.mxu1 %v1951_v9  ;;  %v1117_v8 = vrot.slane %v1800_v4, 3  ;;  %v2026_v9 = vld [vmem:[%s2654_s1 + $0x360] ss:$16 sps:$4 sm:$0xff]  }
  0x38   : > { %v1116_v7 = vrot.slane %v1798_v3, 3  ;;  %v1437_v4 = vld [vmem:[%s2655_s2] sm:$0xff] }
  0x39   : > { %687 = vmatmul.mubr.bf16.vlgmr.msra.gmra.mxu0 %v411_v11  ;;  %730 = vmatmul.mubr.bf16.vlgmr.msra.gmra.mxu1 %v411_v11 }
  0x3a   : > { %970 = vmatpush1.bf16.msra.mxu0 %v1946_v10  ;;  %1013 = vmatpush1.bf16.msra.mxu1 %v1949_v12  ;;  %v2029_v10 = vld [vmem:[%s2654_s1 + $0x368] ss:$16 sps:$4 sm:$0xff]   ;;  %v1118_v11 = vsel %vm1112_vm2, %v1116_v7, %v1117_v8  ;;  %v2034_v12 = vld [vmem:[%s2654_s1 + $0x344] ss:$16 sps:$4 sm:$0xff]  }
  0x3b   : > { %971 = vmatprep.subr.bf16.mxu0 %v1954_v13  ;;  %1014 = vmatprep.subr.bf16.mxu1 %v1957_v14  ;;  %v2037_v13 = vld [vmem:[%s2654_s1 + $0x34c] ss:$16 sps:$4 sm:$0xff]   ;;  %v2032_v14 = vld [vmem:[%s2654_s1 + $0x340] ss:$16 sps:$4 sm:$0xff]  }
  0x3c   : > { %1751 = vmatprep.mubr.msk.bf16.mxu0 %vm650_vm1, %v1706_v32  ;;  %1752 = vmatprep.mubr.msk.bf16.mxu1 %vm650_vm1, %v1706_v32  ;;  %v2064_v32 = vld [vmem:[%s2654_s1 + $0x404] ss:$16 sps:$4 sm:$0xff]  }
  0x3e   : > { %972 = vmatpush1.bf16.msra.mxu0 %v1952_v15  ;;  %1015 = vmatpush1.bf16.msra.mxu1 %v1955_v16  ;;  %v2035_v15 = vld [vmem:[%s2654_s1 + $0x348] ss:$16 sps:$4 sm:$0xff]   ;;  %v2040_v16 = vld [vmem:[%s2654_s1 + $0x324] ss:$16 sps:$4 sm:$0xff]  }
  0x3f   : > { %973 = vmatprep.subr.bf16.mxu0 %v1960_v17  ;;  %1016 = vmatprep.subr.bf16.mxu1 %v1963_v18  ;;  %v2043_v17 = vld [vmem:[%s2654_s1 + $0x32c] ss:$16 sps:$4 sm:$0xff]   ;;  %v2038_v18 = vld [vmem:[%s2654_s1 + $0x320] ss:$16 sps:$4 sm:$0xff]  }
  0x42   : > { %974 = vmatpush1.bf16.msra.mxu0 %v1958_v19  ;;  %1017 = vmatpush1.bf16.msra.mxu1 %v1961_v20  ;;  %v2041_v19 = vld [vmem:[%s2654_s1 + $0x328] ss:$16 sps:$4 sm:$0xff]   ;;  %v2046_v20 = vld [vmem:[%s2654_s1 + $0x304] ss:$16 sps:$4 sm:$0xff]  }
  0x43   : > { %975 = vmatprep.subr.bf16.mxu0 %v1966_v21  ;;  %1018 = vmatprep.subr.bf16.mxu1 %v1969_v22  ;;  %v2049_v21 = vld [vmem:[%s2654_s1 + $0x30c] ss:$16 sps:$4 sm:$0xff]   ;;  %v2044_v22 = vld [vmem:[%s2654_s1 + $0x300] ss:$16 sps:$4 sm:$0xff]  }
  0x46   : > { %976 = vmatpush1.bf16.msra.mxu0 %v1964_v23  ;;  %1019 = vmatpush1.bf16.msra.mxu1 %v1967_v24  ;;  %v2047_v23 = vld [vmem:[%s2654_s1 + $0x308] ss:$16 sps:$4 sm:$0xff]   ;;  %v2052_v24 = vld [vmem:[%s2654_s1 + $0x2e4] ss:$16 sps:$4 sm:$0xff]  }
  0x47   : > { %977 = vmatprep.subr.bf16.mxu0 %v1972_v25  ;;  %1020 = vmatprep.subr.bf16.mxu1 %v1975_v26  ;;  %v2055_v25 = vld [vmem:[%s2654_s1 + $0x2ec] ss:$16 sps:$4 sm:$0xff]   ;;  %v2050_v26 = vld [vmem:[%s2654_s1 + $0x2e0] ss:$16 sps:$4 sm:$0xff]  }
  0x4a   : > { %978 = vmatpush1.bf16.msra.mxu0 %v1970_v27  ;;  %1021 = vmatpush1.bf16.msra.mxu1 %v1973_v28  ;;  %v2053_v27 = vld [vmem:[%s2654_s1 + $0x2e8] ss:$16 sps:$4 sm:$0xff]   ;;  %v2058_v28 = vld [vmem:[%s2654_s1 + $0x2c4] ss:$16 sps:$4 sm:$0xff]  }
  0x4b   : > { %979 = vmatprep.subr.bf16.mxu0 %v1978_v29  ;;  %1022 = vmatprep.subr.bf16.mxu1 %v1981_v30  ;;  %v2061_v29 = vld [vmem:[%s2654_s1 + $0x2cc] ss:$16 sps:$4 sm:$0xff]   ;;  %v2056_v30 = vld [vmem:[%s2654_s1 + $0x2c0] ss:$16 sps:$4 sm:$0xff]  }
  0x4e   : > { %980 = vmatpush1.bf16.msra.mxu0 %v1976_v33  ;;  %1023 = vmatpush1.bf16.msra.mxu1 %v1979_v35  ;;  %v2067_v33 = vld [vmem:[%s2654_s1 + $0x40c] ss:$16 sps:$4 sm:$0xff]   ;;  %v2062_v35 = vld [vmem:[%s2654_s1 + $0x400] ss:$16 sps:$4 sm:$0xff]  }
  0x4f   : > { %981 = vmatprep.subr.bf16.mxu0 %v1984_v36  ;;  %1024 = vmatprep.subr.bf16.mxu1 %v1987_v37  ;;  %v2065_v36 = vld [vmem:[%s2654_s1 + $0x408] ss:$16 sps:$4 sm:$0xff]   ;;  %v2070_v37 = vld [vmem:[%s2654_s1 + $0x3e4] ss:$16 sps:$4 sm:$0xff]  }
  0x52   : > { %982 = vmatpush1.bf16.msra.mxu0 %v1982_v38  ;;  %1025 = vmatpush1.bf16.msra.mxu1 %v1985_v39  ;;  %v2073_v38 = vld [vmem:[%s2654_s1 + $0x3ec] ss:$16 sps:$4 sm:$0xff]   ;;  %v2068_v39 = vld [vmem:[%s2654_s1 + $0x3e0] ss:$16 sps:$4 sm:$0xff]  }
  0x53   : > { %983 = vmatprep.subr.bf16.mxu0 %v1990_v40  ;;  %1026 = vmatprep.subr.bf16.mxu1 %v1993_v41  ;;  %v2071_v40 = vld [vmem:[%s2654_s1 + $0x3e8] ss:$16 sps:$4 sm:$0xff]   ;;  %v1797_v41 = vcombine.low %v2462_v63, %v2266_v34 }
  0x54   : > { %v2077_v34 = vld [vmem:[%s2654_s1 + $0x3c8] ss:$16 sps:$4 sm:$0xff]  }
  0x56   : > { %984 = vmatpush1.bf16.msra.mxu0 %v1988_v42  ;;  %1027 = vmatpush1.bf16.msra.mxu1 %v1991_v43  ;;  %v1799_v42 = vcombine.low %v2465_v0, %v2465_v0  ;;  %v2076_v43 = vld [vmem:[%s2654_s1 + $0x3c4] ss:$16 sps:$4 sm:$0xff]  }
  0x57   : > { %995 = vmatprep.subr.bf16.mxu0 %v1996_v44  ;;  %1038 = vmatprep.subr.bf16.mxu1 %v1999_v45  ;;  %v2079_v44 = vld [vmem:[%s2654_s1 + $0x3cc] ss:$16 sps:$4 sm:$0xff]   ;;  %v2074_v45 = vld [vmem:[%s2654_s1 + $0x3c0] ss:$16 sps:$4 sm:$0xff]  }
  0x5a   : > { %996 = vmatpush2.bf16.msra.mxu0 %v1994_v46  ;;  %1039 = vmatpush2.bf16.msra.mxu1 %v1997_v47  ;;  %v1113_v46 = vrot.slane %v1797_v41, 3  ;;  %v1114_v47 = vrot.slane %v1799_v42, 3  ;;  %v1444_v41 = vld [vmem:[%s2655_s2 + $0x38] sm:$0xff] }
  0x5b   : > { %997 = vmatprep.subr.bf16.mxu0 %v2002_v48  ;;  %1040 = vmatprep.subr.bf16.mxu1 %v2005_v49 }
  0x5c   : > { %v1115_v48 = vsel %vm1112_vm2, %v1113_v46, %v1114_v47 }
  0x5e   : > { %998 = vmatpush2.bf16.msra.mxu0 %v2000_v50  ;;  %1041 = vmatpush2.bf16.msra.mxu1 %v2003_v51 }
  0x5f   : > { %999 = vmatprep.subr.bf16.mxu0 %v2008_v52  ;;  %1042 = vmatprep.subr.bf16.mxu1 %v2011_v53 }
  0x62   : > { %1000 = vmatpush2.bf16.msra.mxu0 %v2006_v54  ;;  %1043 = vmatpush2.bf16.msra.mxu1 %v2009_v55 }
  0x63   : > { %1343 = vmatprep.subr.bf16.mxu0 %v2016_v56  ;;  %1386 = vmatprep.subr.bf16.mxu1 %v2019_v57 }
  0x65   : > { %1002 = vmatmul.mubr.bf16.vlgmr.msra.gmra.mxu0 %v1705_v58  ;;  %1045 = vmatmul.mubr.bf16.vlgmr.msra.gmra.mxu1 %v1705_v58 }
  0x66   : > { %1344 = vmatpush1.bf16.msra.mxu0 %v2014_v59  ;;  %1387 = vmatpush1.bf16.msra.mxu1 %v2017_v60 }
  0x67   : > { %1345 = vmatprep.subr.bf16.mxu0 %v2022_v61  ;;  %1388 = vmatprep.subr.bf16.mxu1 %v2025_v62 }
  0x68   : > { %1845 = vmatprep.mubr.msk.bf16.mxu0 %vm650_vm1, %v1118_v11  ;;  %1846 = vmatprep.mubr.msk.bf16.mxu1 %vm650_vm1, %v1118_v11 }
  0x6a   : > { %1346 = vmatpush1.bf16.msra.mxu0 %v2020_v1  ;;  %1389 = vmatpush1.bf16.msra.mxu1 %v2023_v2 }
  0x6b   : > { %1347 = vmatprep.subr.bf16.mxu0 %v2028_v5  ;;  %1390 = vmatprep.subr.bf16.mxu1 %v2031_v6  ;;  %v1439_v6 = vld [vmem:[%s2655_s2 + $0x10] sm:$0xff] }
  0x6e   : > { %1348 = vmatpush1.bf16.msra.mxu0 %v2026_v9  ;;  %1391 = vmatpush1.bf16.msra.mxu1 %v2029_v10  ;;  %v1453_v10 = vld [vmem:[%s2597_s5] sm:$0xff] }
  0x6f   : > { %1349 = vmatprep.subr.bf16.mxu0 %v2034_v12  ;;  %1392 = vmatprep.subr.bf16.mxu1 %v2037_v13  ;;  %v1455_v12 = vld [vmem:[%s2597_s5 + $0x10] sm:$0xff] }
  0x72   : > { %1350 = vmatpush1.bf16.msra.mxu0 %v2032_v14  ;;  %1393 = vmatpush1.bf16.msra.mxu1 %v2035_v15  ;;  %v1438_v14 = vld [vmem:[%s2655_s2 + $0x8] sm:$0xff] }
  0x73   : > { %1351 = vmatprep.subr.bf16.mxu0 %v2040_v16  ;;  %1394 = vmatprep.subr.bf16.mxu1 %v2043_v17  ;;  %v1440_v16 = vld [vmem:[%s2655_s2 + $0x18] sm:$0xff] }
  0x76   : > { %1352 = vmatpush1.bf16.msra.mxu0 %v2038_v18  ;;  %1395 = vmatpush1.bf16.msra.mxu1 %v2041_v19 }
  0x77   : > { %1353 = vmatprep.subr.bf16.mxu0 %v2046_v20  ;;  %1396 = vmatprep.subr.bf16.mxu1 %v2049_v21 }
  0x7a   : > { %1354 = vmatpush1.bf16.msra.mxu0 %v2044_v22  ;;  %1397 = vmatpush1.bf16.msra.mxu1 %v2047_v23 }
  0x7b   : > { %1355 = vmatprep.subr.bf16.mxu0 %v2052_v24  ;;  %1398 = vmatprep.subr.bf16.mxu1 %v2055_v25  ;;  %v1454_v25 = vld [vmem:[%s2597_s5 + $0x8] sm:$0xff] }
  0x7e   : > { %1356 = vmatpush1.bf16.msra.mxu0 %v2050_v26  ;;  %1399 = vmatpush1.bf16.msra.mxu1 %v2053_v27  ;;  %v1456_v26 = vld [vmem:[%s2597_s5 + $0x18] sm:$0xff] }
  0x7f   : > { %1357 = vmatprep.subr.bf16.mxu0 %v2058_v28  ;;  %1400 = vmatprep.subr.bf16.mxu1 %v2061_v29 }
  0x82   : > { %1358 = vmatpush1.bf16.msra.mxu0 %v2056_v30  ;;  %1401 = vmatpush1.bf16.msra.mxu1 %v2059_v31 }
  0x83   : > { %1369 = vmatprep.subr.bf16.mxu0 %v2064_v32  ;;  %1412 = vmatprep.subr.bf16.mxu1 %v2067_v33  ;;  %v1441_v33 = vld [vmem:[%s2655_s2 + $0x20] sm:$0xff] }
  0x86   : > { %1370 = vmatpush2.bf16.msra.mxu0 %v2062_v35  ;;  %1413 = vmatpush2.bf16.msra.mxu1 %v2065_v36  ;;  %v1443_v35 = vld [vmem:[%s2655_s2 + $0x30] sm:$0xff] }
  0x87   : > { %1371 = vmatprep.subr.bf16.mxu0 %v2070_v37  ;;  %1414 = vmatprep.subr.bf16.mxu1 %v2073_v38 }
  0x8a   : > { %1372 = vmatpush2.bf16.msra.mxu0 %v2068_v39  ;;  %1415 = vmatpush2.bf16.msra.mxu1 %v2071_v40  ;;  %v1442_v39 = vld [vmem:[%s2655_s2 + $0x28] sm:$0xff] }
  0x8b   : > { %1373 = vmatprep.subr.bf16.mxu0 %v2076_v43  ;;  %1416 = vmatprep.subr.bf16.mxu1 %v2079_v44  ;;  %v1457_v44 = vld [vmem:[%s2597_s5 + $0x20] sm:$0xff] }
  0x8e   : > { %1374 = vmatpush2.bf16.msra.mxu0 %v2074_v45  ;;  %1417 = vmatpush2.bf16.msra.mxu1 %v2077_v34  ;;  %v1459_v45 = vld [vmem:[%s2597_s5 + $0x30] sm:$0xff] }
  0x91   : > { %1376 = vmatmul.mubr.bf16.vlgmr.msra.gmra.mxu0 %v1115_v48  ;;  %1419 = vmatmul.mubr.bf16.vlgmr.msra.gmra.mxu1 %v1115_v48 }
  0xf9   : > { %v688_v49 = vpop.f32.mrf.mxu0  ;;  %v731_v50 = vpop.f32.mrf.mxu1 }
  0xfb   : > { %v690_v51 = vpop.f32.mrf.mxu0  ;;  %v733_v52 = vpop.f32.mrf.mxu1 }
  0xfd   : > { %v692_v53 = vpop.f32.mrf.mxu0  ;;  %v735_v54 = vpop.f32.mrf.mxu1 }
  0xff   : > { %v694_v55 = vpop.f32.mrf.mxu0  ;;  %v737_v56 = vpop.f32.mrf.mxu1 }
 0x125   : > { %v1003_v57 = vpop.f32.mrf.mxu0  ;;  %v1046_v58 = vpop.f32.mrf.mxu1 }
 0x126   : > { %v1004_v1 = vadd.f32 %v1003_v57, %v688_v49  ;;  %v1047_v2 = vadd.f32 %v1046_v58, %v731_v50  ;;  %v1458_v49 = vld [vmem:[%s2597_s5 + $0x28] sm:$0xff]  ;;  %v1460_v50 = vld [vmem:[%s2597_s5 + $0x38] sm:$0xff] }
 0x127   : > { %v1005_v59 = vpop.f32.mrf.mxu0  ;;  %v1048_v60 = vpop.f32.mrf.mxu1 }
 0x128   : > { %v1006_v7 = vadd.f32 %v1005_v59, %v690_v51  ;;  %v1049_v8 = vadd.f32 %v1048_v60, %v733_v52 }
 0x129   : > { %v1007_v61 = vpop.f32.mrf.mxu0  ;;  %v1050_v62 = vpop.f32.mrf.mxu1 }
 0x12a   : > { %v1008_v21 = vadd.f32 %v1007_v61, %v692_v53  ;;  %v1051_v22 = vadd.f32 %v1050_v62, %v735_v54 }
 0x12b   : > { %v1009_v63 = vpop.f32.mrf.mxu0  ;;  %v1052_v0 = vpop.f32.mrf.mxu1 }
 0x12c   : > { %v1010_v23 = vadd.f32 %v1009_v63, %v694_v55  ;;  %v1053_v24 = vadd.f32 %v1052_v0, %v737_v56 }
 0x151   : > { %v1377_v3 = vpop.f32.mrf.mxu0  ;;  %v1420_v5 = vpop.f32.mrf.mxu1 }
 0x152   : > { %v1429_v9 = vadd.f32 %v1377_v3, %v1004_v1  ;;  %v1431_v11 = vadd.f32 %v1420_v5, %v1047_v2 }
 0x153   : > { %v1379_v13 = vpop.f32.mrf.mxu0  ;;  %v1422_v15 = vpop.f32.mrf.mxu1 }
 0x154   : > { %v1445_v17 = vadd.f32 %v1437_v4, %v1429_v9  ;;  %v1447_v18 = vadd.f32 %v1439_v6, %v1431_v11  ;;  %v1430_v19 = vadd.f32 %v1379_v13, %v1006_v7  ;;  %v1432_v20 = vadd.f32 %v1422_v15, %v1049_v8 }
 0x155   : > { %v1381_v27 = vpop.f32.mrf.mxu0  ;;  %v1424_v28 = vpop.f32.mrf.mxu1 }
 0x156   : > { %v1461_v29 = vadd.f32 %v1453_v10, %v1445_v17  ;;  %v1463_v30 = vadd.f32 %v1455_v12, %v1447_v18  ;;  %v1446_v31 = vadd.f32 %v1438_v14, %v1430_v19  ;;  %v1448_v32 = vadd.f32 %v1440_v16, %v1432_v20 }
 0x157   : > { %v1433_v36 = vadd.f32 %v1381_v27, %v1008_v21  ;;  %v1435_v37 = vadd.f32 %v1424_v28, %v1051_v22  ;;  %v1383_v38 = vpop.f32.mrf.mxu0  ;;  %v1426_v40 = vpop.f32.mrf.mxu1 }
 0x158   : > { %1469 = vst [vmem:[%s2616_s20] sm:$0xff] %v1461_v29  ;;  %1471 = vst [vmem:[%s2616_s20 + $0x10] sm:$0xff] %v1463_v30  ;;  %v1462_v42 = vadd.f32 %v1454_v25, %v1446_v31  ;;  %v1464_v43 = vadd.f32 %v1456_v26, %v1448_v32  ;;  %v1434_v34 = vadd.f32 %v1383_v38, %v1010_v23 }
 0x159   : > { %v1436_v46 = vadd.f32 %v1426_v40, %v1053_v24  ;;  %v1449_v47 = vadd.f32 %v1441_v33, %v1433_v36  ;;  %v1451_v48 = vadd.f32 %v1443_v35, %v1435_v37 }
 0x15a   : > { %1470 = vst [vmem:[%s2616_s20 + $0x8] sm:$0xff] %v1462_v42  ;;  %1472 = vst [vmem:[%s2616_s20 + $0x18] sm:$0xff] %v1464_v43  ;;  %v1450_v51 = vadd.f32 %v1442_v39, %v1434_v34 }
 0x15b   : > { %v1452_v52 = vadd.f32 %v1444_v41, %v1436_v46  ;;  %v1465_v53 = vadd.f32 %v1457_v44, %v1449_v47  ;;  %v1467_v54 = vadd.f32 %v1459_v45, %v1451_v48 }
 0x15c   : > { %v1466_v55 = vadd.f32 %v1458_v49, %v1450_v51 }
 0x15d   : > { %v1468_v56 = vadd.f32 %v1460_v50, %v1452_v52  ;;  %1473 = vst [vmem:[%s2616_s20 + $0x20] sm:$0xff] %v1465_v53  ;;  %1475 = vst [vmem:[%s2616_s20 + $0x30] sm:$0xff] %v1467_v54 }
 0x15e   : > { %1474 = vst [vmem:[%s2616_s20 + $0x28] sm:$0xff] %v1466_v55 }
 0x15f   : > { %1476 = vst [vmem:[%s2616_s20 + $0x38] sm:$0xff] %v1468_v56 }
 0x160 PF: > { %s14_s17 = sadd.s32 1, %s2106_s17   ;;  %s2658_s15 = smov %s2102_s16 }
 0x161   : > { %p11_p5 = scmp.ge.s32.totalorder %s14_s17, 4   ;;  %s2659_s16 = smov %s2661_s18 }
 0x163   :  { %13 = sbr.rel (!%p11_p5) target bundleno = 2 (0x2), region = 74 }

// kernel: _lambda_.15
= control target key start
LH: loop header
LB: loop body
LE: loop exit
PB: predicated region body
PF: predicated region fallthrough
CT: control target
= control target key end

     0   :  { %s2367_s15 = smov 0   ;;  %s2369_s16 = smov 0   ;;  %s2962_s0 = inlined_call_operand.vmem [shape: bf16[2,26,208], index: 0, kind: input, shape index: {}]   ;;  %s2963_s1 = inlined_call_operand.vmem [shape: bf16[3,208,512], index: 1, kind: input, shape index: {}]   ;;  %s2964_s2 = inlined_call_operand.vmem [shape: f32[16,512], index: 2, kind: input, shape index: {}]   ;;  %s2965_s3 = inlined_call_operand.vmem [shape: f32[2,16,512], index: 3, kind: input, shape index: {}]   ;;  %s2966_s4 = inlined_call_operand.vmem [shape: f32[2,16,512], index: 4, kind: output, shape index: {}]  }
   0x1   :  { %s2371_s17 = smov 0  }
   0x2 LB: > { %s26_s18 = sadd.s32 1, %s2336_s16  ;;  %p1761_p0 = scmp.ge.s32.totalorder %s2340_s17, 1  ;;  %s2340_s17 = sphi %s2371_s17, %s14_s17   ;;  %s2336_s16 = sphi %s2369_s16, %s2968_s16   ;;  %s2332_s15 = sphi %s2367_s15, %s2967_s15  }
   0x3   : > { %p28_p1 = scmp.ge.s32.totalorder %s26_s18, 2  ;;  %p206_p2 = scmp.lt.s32.totalorder %s2340_s17, 3 }
   0x5   : > { %s2970_s18 = smov (%p28_p1, %s26_s18), 0  ;;  %p207_p3 = pnand %p1761_p0, %p206_p2 }
   0x6   : > { %p253_p4 = scmp.lt.s32.totalorder (!%p207_p3), %s2332_s15, 1 }
   0x7   : > { %210 = sbr.rel (%p207_p3) target bundleno = 378 (0x17a), region = 36 }
   0xc   : > { %v2073_v0 = vld [vmem:[%s2963_s1 + $0x284] ss:$16 sps:$4 sm:$0xff]   ;;  %v2075_v1 = vld [vmem:[%s2963_s1 + $0x28c] ss:$16 sps:$4 sm:$0xff]   ;;  %v2077_v2 = vld [vmem:[%s2963_s1 + $0x280] ss:$16 sps:$4 sm:$0xff]  }
   0xd   : > { %710 = vmatprep.subr.bf16.mxu0 %v2073_v0  ;;  %v2078_v3 = vld [vmem:[%s2963_s1 + $0x288] ss:$16 sps:$4 sm:$0xff]   ;;  %753 = vmatprep.subr.bf16.mxu1 %v2075_v1  ;;  %v2079_v4 = vld [vmem:[%s2963_s1 + $0x264] ss:$16 sps:$4 sm:$0xff]   ;;  %v2081_v5 = vld [vmem:[%s2963_s1 + $0x26c] ss:$16 sps:$4 sm:$0xff]  }
   0xe   : > { %711 = vmatpush1.bf16.msra.mxu0 %v2077_v2  ;;  %754 = vmatpush1.bf16.msra.mxu1 %v2078_v3  ;;  %v2083_v6 = vld [vmem:[%s2963_s1 + $0x260] ss:$16 sps:$4 sm:$0xff]   ;;  %v2084_v7 = vld [vmem:[%s2963_s1 + $0x268] ss:$16 sps:$4 sm:$0xff]   ;;  %v2085_v8 = vld [vmem:[%s2963_s1 + $0x244] ss:$16 sps:$4 sm:$0xff]  }
   0xf   : > { %712 = vmatprep.subr.bf16.mxu0 %v2079_v4  ;;  %755 = vmatprep.subr.bf16.mxu1 %v2081_v5  ;;  %v2087_v9 = vld [vmem:[%s2963_s1 + $0x24c] ss:$16 sps:$4 sm:$0xff]   ;;  %v2089_v10 = vld [vmem:[%s2963_s1 + $0x240] ss:$16 sps:$4 sm:$0xff]   ;;  %v2090_v11 = vld [vmem:[%s2963_s1 + $0x248] ss:$16 sps:$4 sm:$0xff]  }
  0x10   : > { %v2091_v12 = vld [vmem:[%s2963_s1 + $0x224] ss:$16 sps:$4 sm:$0xff]   ;;  %v2093_v13 = vld [vmem:[%s2963_s1 + $0x22c] ss:$16 sps:$4 sm:$0xff]   ;;  %v2095_v14 = vld [vmem:[%s2963_s1 + $0x220] ss:$16 sps:$4 sm:$0xff]  }
  0x11   : > { %v2096_v15 = vld [vmem:[%s2963_s1 + $0x228] ss:$16 sps:$4 sm:$0xff]   ;;  %v2097_v16 = vld [vmem:[%s2963_s1 + $0x204] ss:$16 sps:$4 sm:$0xff]   ;;  %v2099_v17 = vld [vmem:[%s2963_s1 + $0x20c] ss:$16 sps:$4 sm:$0xff]  }
  0x12   : > { %713 = vmatpush1.bf16.msra.mxu0 %v2083_v6  ;;  %756 = vmatpush1.bf16.msra.mxu1 %v2084_v7  ;;  %v2101_v18 = vld [vmem:[%s2963_s1 + $0x200] ss:$16 sps:$4 sm:$0xff]   ;;  %v2102_v19 = vld [vmem:[%s2963_s1 + $0x208] ss:$16 sps:$4 sm:$0xff]   ;;  %v2103_v20 = vld [vmem:[%s2963_s1 + $0x1e4] ss:$16 sps:$4 sm:$0xff]  }
  0x13   : > { %714 = vmatprep.subr.bf16.mxu0 %v2085_v8  ;;  %757 = vmatprep.subr.bf16.mxu1 %v2087_v9  ;;  %v2105_v21 = vld [vmem:[%s2963_s1 + $0x1ec] ss:$16 sps:$4 sm:$0xff]   ;;  %v2107_v22 = vld [vmem:[%s2963_s1 + $0x1e0] ss:$16 sps:$4 sm:$0xff]   ;;  %v2108_v23 = vld [vmem:[%s2963_s1 + $0x1e8] ss:$16 sps:$4 sm:$0xff]  }
  0x14   : > { %v2109_v24 = vld [vmem:[%s2963_s1 + $0x1c4] ss:$16 sps:$4 sm:$0xff]   ;;  %v2111_v25 = vld [vmem:[%s2963_s1 + $0x1cc] ss:$16 sps:$4 sm:$0xff]   ;;  %v2113_v26 = vld [vmem:[%s2963_s1 + $0x1c0] ss:$16 sps:$4 sm:$0xff]  }
  0x15   : > { %v2114_v27 = vld [vmem:[%s2963_s1 + $0x1c8] ss:$16 sps:$4 sm:$0xff]   ;;  %v2115_v28 = vld [vmem:[%s2963_s1 + $0x1a4] ss:$16 sps:$4 sm:$0xff]   ;;  %s2972_s15 = smov (!%p253_p4, %s2332_s15), 1  ;;  %vm706_vm1 = vcmask 654336  }
  0x16   : > { %715 = vmatpush1.bf16.msra.mxu0 %v2089_v10  ;;  %758 = vmatpush1.bf16.msra.mxu1 %v2090_v11  ;;  %v2117_v29 = vld [vmem:[%s2963_s1 + $0x1ac] ss:$16 sps:$4 sm:$0xff]   ;;  %v2119_v30 = vld [vmem:[%s2963_s1 + $0x1a0] ss:$16 sps:$4 sm:$0xff]   ;;  %v2120_v31 = vld [vmem:[%s2963_s1 + $0x1a8] ss:$16 sps:$4 sm:$0xff]  }
  0x17   : > { %716 = vmatprep.subr.bf16.mxu0 %v2091_v12  ;;  %759 = vmatprep.subr.bf16.mxu1 %v2093_v13  ;;  %v2121_v32 = vld [vmem:[%s2963_s1 + $0x324] ss:$16 sps:$4 sm:$0xff]   ;;  %s2046_s19 = sshll.u32 %s2972_s15, 5  ;;  %v2123_v33 = vld [vmem:[%s2963_s1 + $0x32c] ss:$16 sps:$4 sm:$0xff]   ;;  %vm1220_vm2 = vcmask 1046528  }
  0x18   : > { %v2125_v34 = vld [vmem:[%s2963_s1 + $0x320] ss:$16 sps:$4 sm:$0xff]   ;;  %v2126_v35 = vld [vmem:[%s2963_s1 + $0x328] ss:$16 sps:$4 sm:$0xff]   ;;  %s2503_s28 = scalar_lea.vmem %s2962_s0, %s2046_s19  ;;  %v2127_v36 = vld [vmem:[%s2963_s1 + $0x304] ss:$16 sps:$4 sm:$0xff]  }
  0x19   : > { %v2129_v37 = vld [vmem:[%s2963_s1 + $0x30c] ss:$16 sps:$4 sm:$0xff]   ;;  %v2131_v38 = vld [vmem:[%s2963_s1 + $0x300] ss:$16 sps:$4 sm:$0xff]   ;;  %v2132_v42 = vld [vmem:[%s2963_s1 + $0x308] ss:$16 sps:$4 sm:$0xff]  }
  0x1a   : > { %717 = vmatpush1.bf16.msra.mxu0 %v2095_v14  ;;  %760 = vmatpush1.bf16.msra.mxu1 %v2096_v15  ;;  %v2515_v39 = vld [vmem:[%s2503_s28 + $0x8] sm:$0xff]  ;;  %v342_v40 = vld [vmem:[%s2503_s28] sm:$0xcc]  ;;  %v343_v41 = vld [vmem:[%s2503_s28 + $0x10] sm:$0x77]  ;;  %s2047_s11 = sshll.u32 %s2972_s15, 6 }
  0x1b   : > { %718 = vmatprep.subr.bf16.mxu0 %v2097_v16  ;;  %761 = vmatprep.subr.bf16.mxu1 %v2099_v17  ;;  %v2133_v43 = vld [vmem:[%s2963_s1 + $0x2e4] ss:$16 sps:$4 sm:$0xff]   ;;  %v1821_v44 = vcombine.high %v342_v40, %v2515_v39  ;;  %v1823_v45 = vcombine.high %v343_v41, %v343_v41  ;;  %v1820_v46 = vcombine.low %v342_v40, %v2515_v39  ;;  %v2135_v47 = vld [vmem:[%s2963_s1 + $0x2ec] ss:$16 sps:$4 sm:$0xff]   ;;  %v2137_v49 = vld [vmem:[%s2963_s1 + $0x2e0] ss:$16 sps:$4 sm:$0xff]   ;;  %s2904_s14 = scalar_lea.vmem %s2965_s3, %s2047_s11  ;;  %s2933_s8 = scalar_lea.vmem %s2966_s4, %s2047_s11 }
  0x1c   : > { %v1822_v48 = vcombine.low %v343_v41, %v343_v41  ;;  %v2138_v58 = vld [vmem:[%s2963_s1 + $0x2e8] ss:$16 sps:$4 sm:$0xff]   ;;  %v2139_v63 = vld [vmem:[%s2963_s1 + $0x2c4] ss:$16 sps:$4 sm:$0xff]   ;;  %v2141_v0 = vld [vmem:[%s2963_s1 + $0x2cc] ss:$16 sps:$4 sm:$0xff]  }
  0x1d   : > { %v429_v50 = vshrl.u32 %v1821_v44, 16  ;;  %v432_v51 = vshll.u32 %v1821_v44, 16  ;;  %v437_v52 = vshrl.u32 %v1823_v45, 16  ;;  %v440_v53 = vshll.u32 %v1823_v45, 16  ;;  %v2143_v3 = vld [vmem:[%s2963_s1 + $0x2c0] ss:$16 sps:$4 sm:$0xff]  }
  0x1e   : > { %719 = vmatpush1.bf16.msra.mxu0 %v2101_v18  ;;  %762 = vmatpush1.bf16.msra.mxu1 %v2102_v19  ;;  %v412_v54 = vshrl.u32 %v1820_v46, 16  ;;  %v415_v55 = vshll.u32 %v1820_v46, 16  ;;  %v420_v56 = vshrl.u32 %v1822_v48, 16  ;;  %v423_v57 = vshll.u32 %v1822_v48, 16  ;;  %v2144_v5 = vld [vmem:[%s2963_s1 + $0x2c8] ss:$16 sps:$4 sm:$0xff]  }
  0x1f   : > { %720 = vmatprep.subr.bf16.mxu0 %v2103_v20  ;;  %763 = vmatprep.subr.bf16.mxu1 %v2105_v21  ;;  %v431_v59 = vrot.slane %v429_v50, 2  ;;  %v434_v60 = vrot.slane %v432_v51, 3  ;;  %v439_v61 = vrot.slane %v437_v52, 2  ;;  %v442_v62 = vrot.slane %v440_v53, 3  ;;  %v2145_v10 = vld [vmem:[%s2963_s1 + $0x2a4] ss:$16 sps:$4 sm:$0xff]  }
  0x20   : > { %vm410_vm0 = vsmask.f32 5376  ;;  %v414_v4 = vrot.slane %v412_v54, 2  ;;  %v417_v7 = vrot.slane %v415_v55, 3  ;;  %v422_v8 = vrot.slane %v420_v56, 2 }
  0x21   : > { %v435_v1 = vor.u32 %v434_v60, %v431_v59  ;;  %v443_v2 = vor.u32 %v442_v62, %v439_v61  ;;  %v425_v9 = vrot.slane %v423_v57, 3  ;;  %v2147_v11 = vld [vmem:[%s2963_s1 + $0x2ac] ss:$16 sps:$4 sm:$0xff]   ;;  %v2149_v12 = vld [vmem:[%s2963_s1 + $0x2a0] ss:$16 sps:$4 sm:$0xff]  }
  0x22   : > { %721 = vmatpush1.bf16.msra.mxu0 %v2107_v22  ;;  %764 = vmatpush1.bf16.msra.mxu1 %v2108_v23  ;;  %v2150_v13 = vld [vmem:[%s2963_s1 + $0x2a8] ss:$16 sps:$4 sm:$0xff]   ;;  %v418_v14 = vor.u32 %v417_v7, %v414_v4  ;;  %v2157_v16 = vld [vmem:[%s2963_s1 + $0xe4] ss:$16 sps:$4 sm:$0xff]   ;;  %v2160_v17 = vld [vmem:[%s2963_s1 + $0xec] ss:$16 sps:$4 sm:$0xff]  }
  0x23   : > { %722 = vmatprep.subr.bf16.mxu0 %v2109_v24  ;;  %765 = vmatprep.subr.bf16.mxu1 %v2111_v25  ;;  %v444_v6 = vsel %vm410_vm0, %v435_v1, %v443_v2  ;;  %v426_v15 = vor.u32 %v425_v9, %v422_v8  ;;  %v2155_v19 = vld [vmem:[%s2963_s1 + $0xe0] ss:$16 sps:$4 sm:$0xff]   ;;  %v2158_v20 = vld [vmem:[%s2963_s1 + $0xe8] ss:$16 sps:$4 sm:$0xff]   ;;  %v2163_v21 = vld [vmem:[%s2963_s1 + $0xc4] ss:$16 sps:$4 sm:$0xff]  }
  0x24   : > { %1876 = vmatprep.mubr.msk.bf16.mxu0 %vm706_vm1, %v444_v6  ;;  %1877 = vmatprep.mubr.msk.bf16.mxu1 %vm706_vm1, %v444_v6  ;;  %v2166_v22 = vld [vmem:[%s2963_s1 + $0xcc] ss:$16 sps:$4 sm:$0xff]   ;;  %v2161_v23 = vld [vmem:[%s2963_s1 + $0xc0] ss:$16 sps:$4 sm:$0xff]   ;;  %v2164_v24 = vld [vmem:[%s2963_s1 + $0xc8] ss:$16 sps:$4 sm:$0xff]  }
  0x25   : > { %v427_v18 = vsel %vm410_vm0, %v418_v14, %v426_v15  ;;  %v2169_v25 = vld [vmem:[%s2963_s1 + $0xa4] ss:$16 sps:$4 sm:$0xff]   ;;  %v2185_v40 = vld [vmem:[%s2963_s1 + $0x40] ss:$16 sps:$4 sm:$0xff]   ;;  %v2188_v41 = vld [vmem:[%s2963_s1 + $0x48] ss:$16 sps:$4 sm:$0xff]  }
  0x26   : > { %723 = vmatpush1.bf16.msra.mxu0 %v2113_v26  ;;  %766 = vmatpush1.bf16.msra.mxu1 %v2114_v27  ;;  %v2172_v26 = vld [vmem:[%s2963_s1 + $0xac] ss:$16 sps:$4 sm:$0xff]   ;;  %v2167_v27 = vld [vmem:[%s2963_s1 + $0xa0] ss:$16 sps:$4 sm:$0xff]   ;;  %v2199_v48 = vld [vmem:[%s2963_s1 + $0x4] ss:$16 sps:$4 sm:$0xff]  }
  0x27   : > { %724 = vmatprep.subr.bf16.mxu0 %v2115_v28  ;;  %767 = vmatprep.subr.bf16.mxu1 %v2117_v29  ;;  %v2170_v28 = vld [vmem:[%s2963_s1 + $0xa8] ss:$16 sps:$4 sm:$0xff]   ;;  %v2175_v29 = vld [vmem:[%s2963_s1 + $0x84] ss:$16 sps:$4 sm:$0xff]   ;;  %v2196_v44 = vld [vmem:[%s2963_s1 + $0x2c] ss:$16 sps:$4 sm:$0xff]  }
  0x28   : > { %v2191_v46 = vld [vmem:[%s2963_s1 + $0x20] ss:$16 sps:$4 sm:$0xff]   ;;  %v2200_v51 = vld [vmem:[%s2963_s1 + $0x8] ss:$16 sps:$4 sm:$0xff]   ;;  %v2205_v52 = vld [vmem:[%s2963_s1 + $0x184] ss:$16 sps:$4 sm:$0xff]  }
  0x29   : > { %v2197_v50 = vld [vmem:[%s2963_s1] ss:$16 sps:$4 sm:$0xff]   ;;  %v2208_v53 = vld [vmem:[%s2963_s1 + $0x18c] ss:$16 sps:$4 sm:$0xff]   ;;  %v2206_v55 = vld [vmem:[%s2963_s1 + $0x188] ss:$16 sps:$4 sm:$0xff]  }
  0x2a   : > { %725 = vmatpush1.bf16.msra.mxu0 %v2119_v30  ;;  %768 = vmatpush1.bf16.msra.mxu1 %v2120_v31  ;;  %v2178_v30 = vld [vmem:[%s2963_s1 + $0x8c] ss:$16 sps:$4 sm:$0xff]   ;;  %v2173_v31 = vld [vmem:[%s2963_s1 + $0x80] ss:$16 sps:$4 sm:$0xff]   ;;  %v2211_v56 = vld [vmem:[%s2963_s1 + $0x164] ss:$16 sps:$4 sm:$0xff]  }
  0x2b   : > { %732 = vmatprep.subr.bf16.mxu0 %v2121_v32  ;;  %775 = vmatprep.subr.bf16.mxu1 %v2123_v33  ;;  %v2176_v32 = vld [vmem:[%s2963_s1 + $0x88] ss:$16 sps:$4 sm:$0xff]   ;;  %v2181_v33 = vld [vmem:[%s2963_s1 + $0x64] ss:$16 sps:$4 sm:$0xff]   ;;  %v2203_v54 = vld [vmem:[%s2963_s1 + $0x180] ss:$16 sps:$4 sm:$0xff]  }
  0x2c   : > { %v2214_v57 = vld [vmem:[%s2963_s1 + $0x16c] ss:$16 sps:$4 sm:$0xff]   ;;  %v2212_v59 = vld [vmem:[%s2963_s1 + $0x168] ss:$16 sps:$4 sm:$0xff]   ;;  %v2217_v60 = vld [vmem:[%s2963_s1 + $0x144] ss:$16 sps:$4 sm:$0xff]  }
  0x2d   : > { %v2220_v61 = vld [vmem:[%s2963_s1 + $0x14c] ss:$16 sps:$4 sm:$0xff]   ;;  %v2215_v62 = vld [vmem:[%s2963_s1 + $0x140] ss:$16 sps:$4 sm:$0xff]   ;;  %v2229_v4 = vld [vmem:[%s2963_s1 + $0x104] ss:$16 sps:$4 sm:$0xff]  }
  0x2e   : > { %733 = vmatpush2.bf16.msra.mxu0 %v2125_v34  ;;  %776 = vmatpush2.bf16.msra.mxu1 %v2126_v35  ;;  %v2184_v34 = vld [vmem:[%s2963_s1 + $0x6c] ss:$16 sps:$4 sm:$0xff]   ;;  %v2179_v35 = vld [vmem:[%s2963_s1 + $0x60] ss:$16 sps:$4 sm:$0xff]   ;;  %v2230_v7 = vld [vmem:[%s2963_s1 + $0x108] ss:$16 sps:$4 sm:$0xff]  }
  0x2f   : > { %734 = vmatprep.subr.bf16.mxu0 %v2127_v36  ;;  %777 = vmatprep.subr.bf16.mxu1 %v2129_v37  ;;  %v2182_v36 = vld [vmem:[%s2963_s1 + $0x68] ss:$16 sps:$4 sm:$0xff]   ;;  %v2187_v37 = vld [vmem:[%s2963_s1 + $0x44] ss:$16 sps:$4 sm:$0xff]   ;;  %v2226_v1 = vld [vmem:[%s2963_s1 + $0x12c] ss:$16 sps:$4 sm:$0xff]  }
  0x30   : > { %v2221_v2 = vld [vmem:[%s2963_s1 + $0x120] ss:$16 sps:$4 sm:$0xff]   ;;  %v2237_v8 = vld [vmem:[%s2963_s1 + $0x424] ss:$16 sps:$4 sm:$0xff]   ;;  %v2240_v9 = vld [vmem:[%s2963_s1 + $0x42c] ss:$16 sps:$4 sm:$0xff]  }
  0x31   : > { %v2227_v6 = vld [vmem:[%s2963_s1 + $0x100] ss:$16 sps:$4 sm:$0xff]   ;;  %v2244_v15 = vld [vmem:[%s2963_s1 + $0x408] ss:$16 sps:$4 sm:$0xff]  }
  0x32   : > { %735 = vmatpush2.bf16.msra.mxu0 %v2131_v38  ;;  %778 = vmatpush2.bf16.msra.mxu1 %v2132_v42  ;;  %v2190_v38 = vld [vmem:[%s2963_s1 + $0x4c] ss:$16 sps:$4 sm:$0xff]   ;;  %v2193_v42 = vld [vmem:[%s2963_s1 + $0x24] ss:$16 sps:$4 sm:$0xff]   ;;  %v2241_v14 = vld [vmem:[%s2963_s1 + $0x400] ss:$16 sps:$4 sm:$0xff]  }
  0x33   : > { %736 = vmatprep.subr.bf16.mxu0 %v2133_v43  ;;  %779 = vmatprep.subr.bf16.mxu1 %v2135_v47  ;;  %v2640_v43 = vld [vmem:[%s2503_s28] sm:$0xff]  ;;  %v2194_v47 = vld [vmem:[%s2963_s1 + $0x28] ss:$16 sps:$4 sm:$0xff]  }
  0x34   : > { %v1879_v45 = vcombine.high %v2640_v43, %v2515_v39 }
  0x36   : > { %737 = vmatpush2.bf16.msra.mxu0 %v2137_v49  ;;  %780 = vmatpush2.bf16.msra.mxu1 %v2138_v58  ;;  %v2202_v49 = vld [vmem:[%s2963_s1 + $0xc] ss:$16 sps:$4 sm:$0xff]   ;;  %v2209_v58 = vld [vmem:[%s2963_s1 + $0x160] ss:$16 sps:$4 sm:$0xff]  }
  0x37   : > { %738 = vmatprep.subr.bf16.mxu0 %v2139_v63  ;;  %781 = vmatprep.subr.bf16.mxu1 %v2141_v0  ;;  %v2218_v63 = vld [vmem:[%s2963_s1 + $0x148] ss:$16 sps:$4 sm:$0xff]   ;;  %v2223_v0 = vld [vmem:[%s2963_s1 + $0x124] ss:$16 sps:$4 sm:$0xff]  }
  0x3a   : > { %739 = vmatpush2.bf16.msra.mxu0 %v2143_v3  ;;  %782 = vmatpush2.bf16.msra.mxu1 %v2144_v5  ;;  %v2224_v3 = vld [vmem:[%s2963_s1 + $0x128] ss:$16 sps:$4 sm:$0xff]   ;;  %v2232_v5 = vld [vmem:[%s2963_s1 + $0x10c] ss:$16 sps:$4 sm:$0xff]  }
  0x3b   : > { %740 = vmatprep.subr.bf16.mxu0 %v2145_v10  ;;  %783 = vmatprep.subr.bf16.mxu1 %v2147_v11  ;;  %v1878_v10 = vcombine.low %v2640_v43, %v2515_v39  ;;  %v2235_v11 = vld [vmem:[%s2963_s1 + $0x420] ss:$16 sps:$4 sm:$0xff]   ;;  %v2246_v39 = vld [vmem:[%s2963_s1 + $0x40c] ss:$16 sps:$4 sm:$0xff]   ;;  %v2279_v43 = vld [vmem:[%s2963_s1 + $0x344] ss:$16 sps:$4 sm:$0xff]  }
  0x3e   : > { %741 = vmatpush2.bf16.msra.mxu0 %v2149_v12  ;;  %784 = vmatpush2.bf16.msra.mxu1 %v2150_v13  ;;  %v2238_v12 = vld [vmem:[%s2963_s1 + $0x428] ss:$16 sps:$4 sm:$0xff]   ;;  %v2243_v13 = vld [vmem:[%s2963_s1 + $0x404] ss:$16 sps:$4 sm:$0xff]  }
  0x3f   : > { %1065 = vmatprep.subr.bf16.mxu0 %v2157_v16  ;;  %1108 = vmatprep.subr.bf16.mxu1 %v2160_v17  ;;  %v2754_v16 = vld [vmem:[%s2503_s28 + $0x18] sm:$0x11]  ;;  %v2313_v17 = vld [vmem:[%s2503_s28 + $0xc] ss:$8 sps:$4 sm:$0xfe]  }
  0x41   : > { %743 = vmatmul.mubr.bf16.vlgmr.msra.gmra.mxu0 %v427_v18  ;;  %786 = vmatmul.mubr.bf16.vlgmr.msra.gmra.mxu1 %v427_v18  ;;  %v2249_v18 = vld [vmem:[%s2963_s1 + $0x3e4] ss:$16 sps:$4 sm:$0xff]  }
  0x42   : > { %1066 = vmatpush1.bf16.msra.mxu0 %v2155_v19  ;;  %1109 = vmatpush1.bf16.msra.mxu1 %v2158_v20  ;;  %v2252_v19 = vld [vmem:[%s2963_s1 + $0x3ec] ss:$16 sps:$4 sm:$0xff]   ;;  %v1989_v20 = vcombine.high %v2754_v16, %v2754_v16 }
  0x43   : > { %1067 = vmatprep.subr.bf16.mxu0 %v2163_v21  ;;  %1110 = vmatprep.subr.bf16.mxu1 %v2166_v22  ;;  %v1224_v21 = vrot.slane %v2313_v17, 1 }
  0x44   : > { %1932 = vmatprep.mubr.msk.bf16.mxu0 %vm706_vm1, %v1879_v45  ;;  %1933 = vmatprep.mubr.msk.bf16.mxu1 %vm706_vm1, %v1879_v45  ;;  %v1225_v22 = vrot.slane %v1989_v20, 1  ;;  %v2277_v45 = vld [vmem:[%s2963_s1 + $0x340] ss:$16 sps:$4 sm:$0xff]  }
  0x46   : > { %1068 = vmatpush1.bf16.msra.mxu0 %v2161_v23  ;;  %1111 = vmatpush1.bf16.msra.mxu1 %v2164_v24  ;;  %v2247_v23 = vld [vmem:[%s2963_s1 + $0x3e0] ss:$16 sps:$4 sm:$0xff]   ;;  %v2250_v24 = vld [vmem:[%s2963_s1 + $0x3e8] ss:$16 sps:$4 sm:$0xff]  }
  0x47   : > { %1069 = vmatprep.subr.bf16.mxu0 %v2169_v25  ;;  %1112 = vmatprep.subr.bf16.mxu1 %v2172_v26  ;;  %v2255_v25 = vld [vmem:[%s2963_s1 + $0x3c4] ss:$16 sps:$4 sm:$0xff]   ;;  %v2258_v26 = vld [vmem:[%s2963_s1 + $0x3cc] ss:$16 sps:$4 sm:$0xff]  }
  0x4a   : > { %1070 = vmatpush1.bf16.msra.mxu0 %v2167_v27  ;;  %1113 = vmatpush1.bf16.msra.mxu1 %v2170_v28  ;;  %v1226_v27 = vsel %vm1220_vm2, %v1224_v21, %v1225_v22  ;;  %v2253_v28 = vld [vmem:[%s2963_s1 + $0x3c0] ss:$16 sps:$4 sm:$0xff]  }
  0x4b   : > { %1071 = vmatprep.subr.bf16.mxu0 %v2175_v29  ;;  %1114 = vmatprep.subr.bf16.mxu1 %v2178_v30  ;;  %v2256_v29 = vld [vmem:[%s2963_s1 + $0x3c8] ss:$16 sps:$4 sm:$0xff]   ;;  %v2261_v30 = vld [vmem:[%s2963_s1 + $0x3a4] ss:$16 sps:$4 sm:$0xff]  }
  0x4e   : > { %1072 = vmatpush1.bf16.msra.mxu0 %v2173_v31  ;;  %1115 = vmatpush1.bf16.msra.mxu1 %v2176_v32  ;;  %v2264_v31 = vld [vmem:[%s2963_s1 + $0x3ac] ss:$16 sps:$4 sm:$0xff]   ;;  %v2259_v32 = vld [vmem:[%s2963_s1 + $0x3a0] ss:$16 sps:$4 sm:$0xff]  }
  0x4f   : > { %1073 = vmatprep.subr.bf16.mxu0 %v2181_v33  ;;  %1116 = vmatprep.subr.bf16.mxu1 %v2184_v34  ;;  %v2262_v33 = vld [vmem:[%s2963_s1 + $0x3a8] ss:$16 sps:$4 sm:$0xff]   ;;  %v2267_v34 = vld [vmem:[%s2963_s1 + $0x384] ss:$16 sps:$4 sm:$0xff]  }
  0x52   : > { %1074 = vmatpush1.bf16.msra.mxu0 %v2179_v35  ;;  %1117 = vmatpush1.bf16.msra.mxu1 %v2182_v36  ;;  %v2270_v35 = vld [vmem:[%s2963_s1 + $0x38c] ss:$16 sps:$4 sm:$0xff]   ;;  %v2265_v36 = vld [vmem:[%s2963_s1 + $0x380] ss:$16 sps:$4 sm:$0xff]  }
  0x53   : > { %1075 = vmatprep.subr.bf16.mxu0 %v2187_v37  ;;  %1118 = vmatprep.subr.bf16.mxu1 %v2190_v38  ;;  %v2268_v37 = vld [vmem:[%s2963_s1 + $0x388] ss:$16 sps:$4 sm:$0xff]   ;;  %v2273_v38 = vld [vmem:[%s2963_s1 + $0x364] ss:$16 sps:$4 sm:$0xff]  }
  0x56   : > { %1076 = vmatpush1.bf16.msra.mxu0 %v2185_v40  ;;  %1119 = vmatpush1.bf16.msra.mxu1 %v2188_v41  ;;  %v2276_v40 = vld [vmem:[%s2963_s1 + $0x36c] ss:$16 sps:$4 sm:$0xff]   ;;  %v2271_v41 = vld [vmem:[%s2963_s1 + $0x360] ss:$16 sps:$4 sm:$0xff]  }
  0x57   : > { %1077 = vmatprep.subr.bf16.mxu0 %v2193_v42  ;;  %1120 = vmatprep.subr.bf16.mxu1 %v2196_v44  ;;  %v2274_v42 = vld [vmem:[%s2963_s1 + $0x368] ss:$16 sps:$4 sm:$0xff]   ;;  %v2282_v44 = vld [vmem:[%s2963_s1 + $0x34c] ss:$16 sps:$4 sm:$0xff]  }
  0x5a   : > { %1078 = vmatpush1.bf16.msra.mxu0 %v2191_v46  ;;  %1121 = vmatpush1.bf16.msra.mxu1 %v2194_v47  ;;  %v2280_v46 = vld [vmem:[%s2963_s1 + $0x348] ss:$16 sps:$4 sm:$0xff]   ;;  %v2285_v47 = vld [vmem:[%s2963_s1 + $0x4c4] ss:$16 sps:$4 sm:$0xff]  }
  0x5b   : > { %1079 = vmatprep.subr.bf16.mxu0 %v2199_v48  ;;  %1122 = vmatprep.subr.bf16.mxu1 %v2202_v49  ;;  %v2288_v48 = vld [vmem:[%s2963_s1 + $0x4cc] ss:$16 sps:$4 sm:$0xff]   ;;  %v2283_v49 = vld [vmem:[%s2963_s1 + $0x4c0] ss:$16 sps:$4 sm:$0xff]  }
  0x5e   : > { %1080 = vmatpush1.bf16.msra.mxu0 %v2197_v50  ;;  %1123 = vmatpush1.bf16.msra.mxu1 %v2200_v51  ;;  %v2286_v50 = vld [vmem:[%s2963_s1 + $0x4c8] ss:$16 sps:$4 sm:$0xff]   ;;  %v2291_v51 = vld [vmem:[%s2963_s1 + $0x4a4] ss:$16 sps:$4 sm:$0xff]  }
  0x5f   : > { %1087 = vmatprep.subr.bf16.mxu0 %v2205_v52  ;;  %1130 = vmatprep.subr.bf16.mxu1 %v2208_v53  ;;  %v2294_v52 = vld [vmem:[%s2963_s1 + $0x4ac] ss:$16 sps:$4 sm:$0xff]   ;;  %v2289_v53 = vld [vmem:[%s2963_s1 + $0x4a0] ss:$16 sps:$4 sm:$0xff]  }
  0x62   : > { %1088 = vmatpush2.bf16.msra.mxu0 %v2203_v54  ;;  %1131 = vmatpush2.bf16.msra.mxu1 %v2206_v55  ;;  %v2292_v54 = vld [vmem:[%s2963_s1 + $0x4a8] ss:$16 sps:$4 sm:$0xff]   ;;  %v2297_v55 = vld [vmem:[%s2963_s1 + $0x484] ss:$16 sps:$4 sm:$0xff]  }
  0x63   : > { %1089 = vmatprep.subr.bf16.mxu0 %v2211_v56  ;;  %1132 = vmatprep.subr.bf16.mxu1 %v2214_v57  ;;  %v2300_v56 = vld [vmem:[%s2963_s1 + $0x48c] ss:$16 sps:$4 sm:$0xff]   ;;  %v2295_v57 = vld [vmem:[%s2963_s1 + $0x480] ss:$16 sps:$4 sm:$0xff]  }
  0x66   : > { %1090 = vmatpush2.bf16.msra.mxu0 %v2209_v58  ;;  %1133 = vmatpush2.bf16.msra.mxu1 %v2212_v59  ;;  %v2298_v58 = vld [vmem:[%s2963_s1 + $0x488] ss:$16 sps:$4 sm:$0xff]   ;;  %v2303_v59 = vld [vmem:[%s2963_s1 + $0x464] ss:$16 sps:$4 sm:$0xff]  }
  0x67   : > { %1091 = vmatprep.subr.bf16.mxu0 %v2217_v60  ;;  %1134 = vmatprep.subr.bf16.mxu1 %v2220_v61  ;;  %v2306_v60 = vld [vmem:[%s2963_s1 + $0x46c] ss:$16 sps:$4 sm:$0xff]   ;;  %v2301_v61 = vld [vmem:[%s2963_s1 + $0x460] ss:$16 sps:$4 sm:$0xff]  }
  0x6a   : > { %1092 = vmatpush2.bf16.msra.mxu0 %v2215_v62  ;;  %1135 = vmatpush2.bf16.msra.mxu1 %v2218_v63  ;;  %v2304_v62 = vld [vmem:[%s2963_s1 + $0x468] ss:$16 sps:$4 sm:$0xff]  }
  0x6b   : > { %1093 = vmatprep.subr.bf16.mxu0 %v2223_v0  ;;  %1136 = vmatprep.subr.bf16.mxu1 %v2226_v1  ;;  %v2316_v63 = vld [vmem:[%s2503_s28 + $0x8] ss:$8 sps:$4 sm:$0xfe]   ;;  %v1988_v0 = vcombine.low %v2754_v16, %v2754_v16  ;;  %v2309_v1 = vld [vmem:[%s2963_s1 + $0x444] ss:$16 sps:$4 sm:$0xff]  }
  0x6e   : > { %1094 = vmatpush2.bf16.msra.mxu0 %v2221_v2  ;;  %1137 = vmatpush2.bf16.msra.mxu1 %v2224_v3  ;;  %v2312_v2 = vld [vmem:[%s2963_s1 + $0x44c] ss:$16 sps:$4 sm:$0xff]   ;;  %v2307_v3 = vld [vmem:[%s2963_s1 + $0x440] ss:$16 sps:$4 sm:$0xff]  }
  0x6f   : > { %1095 = vmatprep.subr.bf16.mxu0 %v2229_v4  ;;  %1138 = vmatprep.subr.bf16.mxu1 %v2232_v5  ;;  %v2310_v4 = vld [vmem:[%s2963_s1 + $0x448] ss:$16 sps:$4 sm:$0xff]   ;;  %v1221_v5 = vrot.slane %v2316_v63, 1 }
  0x72   : > { %1096 = vmatpush2.bf16.msra.mxu0 %v2227_v6  ;;  %1139 = vmatpush2.bf16.msra.mxu1 %v2230_v7  ;;  %v1222_v6 = vrot.slane %v1988_v0, 1 }
  0x73   : > { %1491 = vmatprep.subr.bf16.mxu0 %v2237_v8  ;;  %1534 = vmatprep.subr.bf16.mxu1 %v2240_v9 }
  0x74   : > { %v1223_v7 = vsel %vm1220_vm2, %v1221_v5, %v1222_v6  ;;  %v1592_v5 = vld [vmem:[%s2964_s2 + $0x38] sm:$0xff] }
  0x75   : > { %1098 = vmatmul.mubr.bf16.vlgmr.msra.gmra.mxu0 %v1878_v10  ;;  %1141 = vmatmul.mubr.bf16.vlgmr.msra.gmra.mxu1 %v1878_v10 }
  0x76   : > { %1492 = vmatpush1.bf16.msra.mxu0 %v2235_v11  ;;  %1535 = vmatpush1.bf16.msra.mxu1 %v2238_v12 }
  0x77   : > { %1493 = vmatprep.subr.bf16.mxu0 %v2243_v13  ;;  %1536 = vmatprep.subr.bf16.mxu1 %v2246_v39 }
  0x78   : > { %2042 = vmatprep.mubr.msk.bf16.mxu0 %vm706_vm1, %v1226_v27  ;;  %2043 = vmatprep.mubr.msk.bf16.mxu1 %vm706_vm1, %v1226_v27 }
  0x7a   : > { %1494 = vmatpush1.bf16.msra.mxu0 %v2241_v14  ;;  %1537 = vmatpush1.bf16.msra.mxu1 %v2244_v15 }
  0x7b   : > { %1495 = vmatprep.subr.bf16.mxu0 %v2249_v18  ;;  %1538 = vmatprep.subr.bf16.mxu1 %v2252_v19 }
  0x7e   : > { %1496 = vmatpush1.bf16.msra.mxu0 %v2247_v23  ;;  %1539 = vmatpush1.bf16.msra.mxu1 %v2250_v24 }
  0x7f   : > { %1497 = vmatprep.subr.bf16.mxu0 %v2255_v25  ;;  %1540 = vmatprep.subr.bf16.mxu1 %v2258_v26  ;;  %v1585_v26 = vld [vmem:[%s2964_s2] sm:$0xff] }
  0x82   : > { %1498 = vmatpush1.bf16.msra.mxu0 %v2253_v28  ;;  %1541 = vmatpush1.bf16.msra.mxu1 %v2256_v29  ;;  %v1587_v28 = vld [vmem:[%s2964_s2 + $0x10] sm:$0xff] }
  0x83   : > { %1499 = vmatprep.subr.bf16.mxu0 %v2261_v30  ;;  %1542 = vmatprep.subr.bf16.mxu1 %v2264_v31 }
  0x86   : > { %1500 = vmatpush1.bf16.msra.mxu0 %v2259_v32  ;;  %1543 = vmatpush1.bf16.msra.mxu1 %v2262_v33  ;;  %v1601_v32 = vld [vmem:[%s2904_s14] sm:$0xff] }
  0x87   : > { %1501 = vmatprep.subr.bf16.mxu0 %v2267_v34  ;;  %1544 = vmatprep.subr.bf16.mxu1 %v2270_v35  ;;  %v1603_v34 = vld [vmem:[%s2904_s14 + $0x10] sm:$0xff] }
  0x8a   : > { %1502 = vmatpush1.bf16.msra.mxu0 %v2265_v36  ;;  %1545 = vmatpush1.bf16.msra.mxu1 %v2268_v37  ;;  %v1586_v36 = vld [vmem:[%s2964_s2 + $0x8] sm:$0xff] }
  0x8b   : > { %1503 = vmatprep.subr.bf16.mxu0 %v2273_v38  ;;  %1546 = vmatprep.subr.bf16.mxu1 %v2276_v40  ;;  %v1588_v38 = vld [vmem:[%s2964_s2 + $0x18] sm:$0xff] }
  0x8e   : > { %1504 = vmatpush1.bf16.msra.mxu0 %v2271_v41  ;;  %1547 = vmatpush1.bf16.msra.mxu1 %v2274_v42 }
  0x8f   : > { %1505 = vmatprep.subr.bf16.mxu0 %v2279_v43  ;;  %1548 = vmatprep.subr.bf16.mxu1 %v2282_v44 }
  0x92   : > { %1506 = vmatpush1.bf16.msra.mxu0 %v2277_v45  ;;  %1549 = vmatpush1.bf16.msra.mxu1 %v2280_v46  ;;  %v1602_v46 = vld [vmem:[%s2904_s14 + $0x8] sm:$0xff] }
  0x93   : > { %1513 = vmatprep.subr.bf16.mxu0 %v2285_v47  ;;  %1556 = vmatprep.subr.bf16.mxu1 %v2288_v48  ;;  %v1604_v47 = vld [vmem:[%s2904_s14 + $0x18] sm:$0xff] }
  0x96   : > { %1514 = vmatpush2.bf16.msra.mxu0 %v2283_v49  ;;  %1557 = vmatpush2.bf16.msra.mxu1 %v2286_v50 }
  0x97   : > { %1515 = vmatprep.subr.bf16.mxu0 %v2291_v51  ;;  %1558 = vmatprep.subr.bf16.mxu1 %v2294_v52 }
  0x9a   : > { %1516 = vmatpush2.bf16.msra.mxu0 %v2289_v53  ;;  %1559 = vmatpush2.bf16.msra.mxu1 %v2292_v54  ;;  %v1589_v54 = vld [vmem:[%s2964_s2 + $0x20] sm:$0xff] }
  0x9b   : > { %1517 = vmatprep.subr.bf16.mxu0 %v2297_v55  ;;  %1560 = vmatprep.subr.bf16.mxu1 %v2300_v56  ;;  %v1591_v55 = vld [vmem:[%s2964_s2 + $0x30] sm:$0xff] }
  0x9e   : > { %1518 = vmatpush2.bf16.msra.mxu0 %v2295_v57  ;;  %1561 = vmatpush2.bf16.msra.mxu1 %v2298_v58 }
  0x9f   : > { %1519 = vmatprep.subr.bf16.mxu0 %v2303_v59  ;;  %1562 = vmatprep.subr.bf16.mxu1 %v2306_v60  ;;  %v1605_v59 = vld [vmem:[%s2904_s14 + $0x20] sm:$0xff] }
  0xa2   : > { %1520 = vmatpush2.bf16.msra.mxu0 %v2301_v61  ;;  %1563 = vmatpush2.bf16.msra.mxu1 %v2304_v62 }
  0xa3   : > { %1521 = vmatprep.subr.bf16.mxu0 %v2309_v1  ;;  %1564 = vmatprep.subr.bf16.mxu1 %v2312_v2 }
  0xa6   : > { %1522 = vmatpush2.bf16.msra.mxu0 %v2307_v3  ;;  %1565 = vmatpush2.bf16.msra.mxu1 %v2310_v4  ;;  %v1607_v3 = vld [vmem:[%s2904_s14 + $0x30] sm:$0xff]  ;;  %v1590_v4 = vld [vmem:[%s2964_s2 + $0x28] sm:$0xff] }
  0xa9   : > { %1524 = vmatmul.mubr.bf16.vlgmr.msra.gmra.mxu0 %v1223_v7  ;;  %1567 = vmatmul.mubr.bf16.vlgmr.msra.gmra.mxu1 %v1223_v7 }
 0x101   : > { %v744_v8 = vpop.f32.mrf.mxu0  ;;  %v787_v9 = vpop.f32.mrf.mxu1 }
 0x103   : > { %v746_v10 = vpop.f32.mrf.mxu0  ;;  %v789_v11 = vpop.f32.mrf.mxu1 }
 0x105   : > { %v748_v12 = vpop.f32.mrf.mxu0  ;;  %v791_v13 = vpop.f32.mrf.mxu1 }
 0x107   : > { %v750_v39 = vpop.f32.mrf.mxu0  ;;  %v793_v14 = vpop.f32.mrf.mxu1 }
 0x135   : > { %v1099_v15 = vpop.f32.mrf.mxu0  ;;  %v1142_v16 = vpop.f32.mrf.mxu1 }
 0x136   : > { %v1100_v23 = vadd.f32 %v1099_v15, %v744_v8  ;;  %v1143_v24 = vadd.f32 %v1142_v16, %v787_v9 }
 0x137   : > { %v1101_v17 = vpop.f32.mrf.mxu0  ;;  %v1144_v18 = vpop.f32.mrf.mxu1 }
 0x138   : > { %v1102_v29 = vadd.f32 %v1101_v17, %v746_v10  ;;  %v1145_v30 = vadd.f32 %v1144_v18, %v789_v11 }
 0x139   : > { %v1103_v19 = vpop.f32.mrf.mxu0  ;;  %v1146_v20 = vpop.f32.mrf.mxu1 }
 0x13a   : > { %v1104_v44 = vadd.f32 %v1103_v19, %v748_v12  ;;  %v1147_v45 = vadd.f32 %v1146_v20, %v791_v13  ;;  %v1606_v12 = vld [vmem:[%s2904_s14 + $0x28] sm:$0xff]  ;;  %v1608_v13 = vld [vmem:[%s2904_s14 + $0x38] sm:$0xff] }
 0x13b   : > { %v1105_v21 = vpop.f32.mrf.mxu0  ;;  %v1148_v22 = vpop.f32.mrf.mxu1 }
 0x13c   : > { %v1106_v56 = vadd.f32 %v1105_v21, %v750_v39  ;;  %v1149_v57 = vadd.f32 %v1148_v22, %v793_v14 }
 0x169   : > { %v1525_v25 = vpop.f32.mrf.mxu0  ;;  %v1568_v27 = vpop.f32.mrf.mxu1 }
 0x16a   : > { %v1577_v31 = vadd.f32 %v1525_v25, %v1100_v23  ;;  %v1579_v33 = vadd.f32 %v1568_v27, %v1143_v24 }
 0x16b   : > { %v1527_v35 = vpop.f32.mrf.mxu0  ;;  %v1570_v37 = vpop.f32.mrf.mxu1 }
 0x16c   : > { %v1593_v40 = vadd.f32 %v1585_v26, %v1577_v31  ;;  %v1595_v41 = vadd.f32 %v1587_v28, %v1579_v33  ;;  %v1578_v42 = vadd.f32 %v1527_v35, %v1102_v29  ;;  %v1580_v43 = vadd.f32 %v1570_v37, %v1145_v30 }
 0x16d   : > { %v1529_v48 = vpop.f32.mrf.mxu0  ;;  %v1572_v49 = vpop.f32.mrf.mxu1 }
 0x16e   : > { %v1609_v50 = vadd.f32 %v1601_v32, %v1593_v40  ;;  %v1611_v51 = vadd.f32 %v1603_v34, %v1595_v41  ;;  %v1594_v52 = vadd.f32 %v1586_v36, %v1578_v42  ;;  %v1596_v53 = vadd.f32 %v1588_v38, %v1580_v43 }
 0x16f   : > { %v1581_v58 = vadd.f32 %v1529_v48, %v1104_v44  ;;  %v1583_v60 = vadd.f32 %v1572_v49, %v1147_v45  ;;  %v1531_v61 = vpop.f32.mrf.mxu0  ;;  %v1574_v62 = vpop.f32.mrf.mxu1 }
 0x170   : > { %v1617_v63 = vmax.f32 %v1609_v50, 0.0  ;;  %v1619_v0 = vmax.f32 %v1611_v51, 0.0  ;;  %v1610_v1 = vadd.f32 %v1602_v46, %v1594_v52  ;;  %v1612_v2 = vadd.f32 %v1604_v47, %v1596_v53 }
 0x171   : > { %v1597_v6 = vadd.f32 %v1589_v54, %v1581_v58  ;;  %v1599_v7 = vadd.f32 %v1591_v55, %v1583_v60  ;;  %v1582_v8 = vadd.f32 %v1531_v61, %v1106_v56  ;;  %v1584_v9 = vadd.f32 %v1574_v62, %v1149_v57 }
 0x172   : > { %1625 = vst [vmem:[%s2933_s8] sm:$0xff] %v1617_v63  ;;  %1627 = vst [vmem:[%s2933_s8 + $0x10] sm:$0xff] %v1619_v0  ;;  %v1618_v10 = vmax.f32 %v1610_v1, 0.0  ;;  %v1620_v11 = vmax.f32 %v1612_v2, 0.0 }
 0x173   : > { %v1613_v39 = vadd.f32 %v1605_v59, %v1597_v6  ;;  %v1615_v14 = vadd.f32 %v1607_v3, %v1599_v7  ;;  %v1598_v15 = vadd.f32 %v1590_v4, %v1582_v8  ;;  %v1600_v16 = vadd.f32 %v1592_v5, %v1584_v9 }
 0x174   : > { %1626 = vst [vmem:[%s2933_s8 + $0x8] sm:$0xff] %v1618_v10  ;;  %1628 = vst [vmem:[%s2933_s8 + $0x18] sm:$0xff] %v1620_v11 }
 0x175   : > { %v1621_v17 = vmax.f32 %v1613_v39, 0.0  ;;  %v1623_v18 = vmax.f32 %v1615_v14, 0.0  ;;  %v1614_v19 = vadd.f32 %v1606_v12, %v1598_v15  ;;  %v1616_v20 = vadd.f32 %v1608_v13, %v1600_v16 }
 0x177   : > { %1629 = vst [vmem:[%s2933_s8 + $0x20] sm:$0xff] %v1621_v17  ;;  %1631 = vst [vmem:[%s2933_s8 + $0x30] sm:$0xff] %v1623_v18  ;;  %v1622_v21 = vmax.f32 %v1614_v19, 0.0  ;;  %v1624_v22 = vmax.f32 %v1616_v20, 0.0 }
 0x179   : > { %1630 = vst [vmem:[%s2933_s8 + $0x28] sm:$0xff] %v1622_v21  ;;  %1632 = vst [vmem:[%s2933_s8 + $0x38] sm:$0xff] %v1624_v22 }
 0x17a PF: > { %s14_s17 = sadd.s32 1, %s2340_s17   ;;  %s2967_s15 = smov %s2336_s16 }
 0x17b   : > { %p11_p5 = scmp.ge.s32.totalorder %s14_s17, 4   ;;  %s2968_s16 = smov %s2970_s18 }
 0x17d   :  { %13 = sbr.rel (!%p11_p5) target bundleno = 2 (0x2), region = 74 }

</bundles_post_ra>
